<compile_context>
chip_gen: v7x
topology: tpu7x:2x2x1
jax: 0.10.0
libtpu: 0.0.40
codegen_flags: <defaults>
</compile_context>

<pallas_src>
import functools

import jax
import jax.numpy as jnp
from jax import lax
from jax.experimental import pallas as pl
from jax.experimental.pallas import tpu as pltpu

KSIZE = 3   # 3x3 convs
LPAD = 8    # left column halo -> interior scratch stores are sublane-aligned


def _round_up(v, m):
    return -(-v // m) * m


# ---------------------------------------------------------------------------
# Kernel
# ---------------------------------------------------------------------------
def _rcu_kernel(x_top_ref, x_mid_ref, x_bot_ref,
                w1_ref, b1_ref, w2_ref, b2_ref,
                out_ref, pad1_ref, pad2_ref,
                *, th, wp, w_true, h_true, h_pad, num_row_tiles, split_dy):
    """One (batch, row-tile) grid step.  r0 = r * th.

    x_top_ref : (1, 2,  wp, C) f32   rows [r0-2, r0)      (clamped; zeroed if r==0)
    x_mid_ref : (1, th, wp, C) f32   rows [r0, r0+th)
    x_bot_ref : (1, 2,  wp, C) f32   rows [r0+th, r0+th+2) (clamped; zeroed if last)
    w*_ref    : (9C, C) bf16 im2col weights;  b*_ref : (1, C) f32
    out_ref   : (1, th, wp, C) f32
    pad1_ref  : VMEM (th+4, LPAD+wp+1, C) bf16  -- relu(x) + zero halo (conv1 input)
    pad2_ref  : VMEM (th+2, LPAD+wp+1, C) bf16  -- relu(conv1+b1) + zero halo (conv2 input)
    """
    C = out_ref.shape[-1]
    r = pl.program_id(1)
    r1 = th + 2                      # conv1 output rows needed: [r0-1, r0+th+1)
    bf16 = jnp.bfloat16

    # --- conv1 input: relu(x) into pad1 interior (sublane-aligned at LPAD) ----
    pad1_ref[2:2 + th, LPAD:LPAD + wp, :] = (
        jnp.maximum(x_mid_ref[0], 0.0).astype(bf16))

    top = jnp.maximum(x_top_ref[0], 0.0)
    top = jnp.where(r == 0, jnp.zeros_like(top), top)             # above image
    pad1_ref[0:2, LPAD:LPAD + wp, :] = top.astype(bf16)

    bot = jnp.maximum(x_bot_ref[0], 0.0)
    bot = jnp.where(r == num_row_tiles - 1, jnp.zeros_like(bot), bot)  # below image
    pad1_ref[th + 2:th + 4, LPAD:LPAD + wp, :] = bot.astype(bf16)

    # Only the two halo columns that are actually read are kept zero (per step:
    # cheap, and megacore-safe since each core's scratch copy is re-initialised).
    zc1 = jnp.zeros((th + 4, 1, C), bf16)
    pad1_ref[:, LPAD - 1:LPAD, :] = zc1
    pad1_ref[:, LPAD + wp:LPAD + wp + 1, :] = zc1

    def conv3x3(pad_ref, rows, w_ref):
        """'same' 3x3 conv of pad_ref's interior via im2col + MXU matmul(s).
        Taps are sliced directly off the bf16 scratch ref; f32 accumulation."""
        if not split_dy:
            taps = [pad_ref[dy:dy + rows, dx:dx + wp, :]
                    for dy in range(KSIZE) for dx in range(LPAD - 1, LPAD + 2)]
            col = jnp.concatenate(taps, axis=-1)                  # (rows, wp, 9C) bf16
            col2d = col.reshape(rows * wp, KSIZE * KSIZE * C)
            return jnp.dot(col2d, w_ref[...], preferred_element_type=jnp.float32)
        # K = 3C variant: 3 accumulated matmuls over dy (smaller im2col transient).
        acc = None
        for dy in range(KSIZE):
            taps = [pad_ref[dy:dy + rows, dx:dx + wp, :]
                    for dx in range(LPAD - 1, LPAD + 2)]
            col2d = jnp.concatenate(taps, axis=-1).reshape(rows * wp, KSIZE * C)
            part = jnp.dot(col2d, w_ref[dy * KSIZE * C:(dy + 1) * KSIZE * C, :],
                           preferred_element_type=jnp.float32)
            acc = part if acc is None else acc + part
        return acc

    # --- conv1 over rows [r0-1, r0+th+1) -> relu -> pad2 interior -------------
    y1 = conv3x3(pad1_ref, r1, w1_ref)                            # (r1*wp, C) f32
    v1 = jnp.maximum(y1 + b1_ref[...], 0.0)
    pad2_ref[:, LPAD:LPAD + wp, :] = v1.reshape(r1, wp, C).astype(bf16)

    # conv2's zero padding (and any wrapper padding) requires exactly-zero rows
    # and columns outside the true image in its input.
    zc2 = jnp.zeros((r1, 1, C), bf16)
    pad2_ref[:, LPAD - 1:LPAD, :] = zc2
    pad2_ref[:, LPAD + wp:LPAD + wp + 1, :] = zc2
    if w_true < wp:                                               # wrapper W padding
        pad2_ref[:, LPAD + w_true:LPAD + wp, :] = (
            jnp.zeros((r1, wp - w_true, C), bf16))

    @pl.when(r == 0)
    def _():                                                      # global row -1
        pad2_ref[0:1, LPAD:LPAD + wp, :] = jnp.zeros((1, wp, C), bf16)

    n_zero_bot = (h_pad - h_true) + 1                             # rows >= h_true (+ row h_pad)
    @pl.when(r == num_row_tiles - 1)
    def _():
        pad2_ref[r1 - n_zero_bot:r1, LPAD:LPAD + wp, :] = (
            jnp.zeros((n_zero_bot, wp, C), bf16))

    # --- conv2 + bias + residual (all elementwise work in f32) -----------------
    y2 = conv3x3(pad2_ref, th, w2_ref)                            # (th*wp, C) f32
    out = y2 + b2_ref[...] + x_mid_ref[0].reshape(th * wp, C)
    out_ref[0] = out.reshape(th, wp, C).astype(out_ref.dtype)


# ---------------------------------------------------------------------------
# Planning helpers
# ---------------------------------------------------------------------------
def _vmem_capacity_bytes():
    try:
        cap = getattr(pltpu.get_tpu_info(), "vmem_capacity_bytes", None)
        if cap:
            return int(cap)
    except Exception:
        pass
    return 64 * 1024 * 1024   # conservative default (v7x per-TensorCore)


def _step_bytes(th, wp, c, split_dy):
    """Rough per-grid-step VMEM footprint (with layout padding & margins)."""
    lane, sub = 128, 8
    cl = _round_up(c, lane)
    f32, b16 = 4, 2
    k = KSIZE * KSIZE * c
    n = 2 * th * wp * cl * f32                       # x_mid (double-buffered)
    n += 2 * 2 * 2 * wp * cl * f32                   # x_top + x_bot
    n += 2 * th * wp * cl * f32                      # out block
    n += 2 * 2 * _round_up(k, sub) * cl * b16        # two weight matrices
    n += (2 * th + 6) * _round_up(wp + LPAD + 1, sub) * cl * b16   # pad1 + pad2
    rows = th + 2
    kcol = (KSIZE * c) if split_dy else k
    n += 2 * (rows * wp * _round_up(kcol, lane) * b16 +            # im2col transient
              rows * wp * cl * f32)                                # f32 conv result
    return n


def _choose_plan(h, w, c, row_tile=None, split_dy=None):
    wp = max(8, _round_up(w, 8))
    cap = _vmem_capacity_bytes()
    budget = int(0.55 * cap)
    if row_tile is not None:
        th = max(8, _round_up(row_tile, 8))
        sd = split_dy if split_dy is not None else (
            _step_bytes(th, wp, c, False) > budget)
        return th, wp, sd, cap
    h8 = max(8, _round_up(h, 8))
    cands = [t for t in (64, 48, 32, 24, 16, 8) if t <= h8] or [8]
    splits = (False, True) if split_dy is None else (bool(split_dy),)
    for sd in splits:
        for th in cands:                              # biggest tile that fits
            if _step_bytes(th, wp, c, sd) <= budget:
                return th, wp, sd, cap
    return 8, wp, True, cap


# ---------------------------------------------------------------------------
# Wrappers
# ---------------------------------------------------------------------------
def residual_conv_unit_nhwc(x_nhwc, w1_oihw, b1, w2_oihw, b2,
                            row_tile=None, split_dy=None):
    """Production entry point: NHWC activations in / out (no layout transposes).

    x_nhwc  : (N, H, W, C) float32
    w*_oihw : (C, C, 3, 3) float32 (PyTorch conv weight layout)
    b*      : (C,)         float32
    """
    n, h, w, c = x_nhwc.shape
    th, wp, sd, cap = _choose_plan(h, w, c, row_tile, split_dy)
    h_pad = _round_up(h, th)
    num_row_tiles = h_pad // th
    ht = th // 2

    x_k = x_nhwc
    if (h_pad, wp) != (h, w):
        x_k = jnp.pad(x_nhwc, ((0, 0), (0, h_pad - h), (0, wp - w), (0, 0)))

    # OIHW -> im2col layout ((kh*3+kw)*Cin + cin, cout), bf16 for the MXU.
    w1c = jnp.transpose(w1_oihw, (2, 3, 1, 0)).reshape(KSIZE * KSIZE * c, c)
    w2c = jnp.transpose(w2_oihw, (2, 3, 1, 0)).reshape(KSIZE * KSIZE * c, c)
    w1c = w1c.astype(jnp.bfloat16)
    w2c = w2c.astype(jnp.bfloat16)
    b1_2d = b1.reshape(1, c).astype(jnp.float32)
    b2_2d = b2.reshape(1, c).astype(jnp.float32)

    kernel = functools.partial(
        _rcu_kernel, th=th, wp=wp, w_true=w, h_true=h, h_pad=h_pad,
        num_row_tiles=num_row_tiles, split_dy=sd)

    vmem_limit = int(min(0.9 * cap,
                         max(32 * 2 ** 20, 1.5 * _step_bytes(th, wp, c, sd))))

    out = pl.pallas_call(
        kernel,
        out_shape=jax.ShapeDtypeStruct((n, h_pad, wp, c), x_nhwc.dtype),
        grid_spec=pltpu.PrefetchScalarGridSpec(
            num_scalar_prefetch=0,
            grid=(n, num_row_tiles),
            in_specs=[
                # 2-row halo above the tile (clamped; zeroed in-kernel at r==0)
                pl.BlockSpec((1, 2, wp, c),
                             lambda b, r: (b, jnp.maximum(r * ht - 1, 0), 0, 0)),
                # the tile itself
                pl.BlockSpec((1, th, wp, c), lambda b, r: (b, r, 0, 0)),
                # 2-row halo below the tile (clamped; zeroed in-kernel at last r)
                pl.BlockSpec((1, 2, wp, c),
                             lambda b, r: (b, jnp.minimum(r * ht + ht,
                                                          h_pad // 2 - 1), 0, 0)),
                pl.BlockSpec((KSIZE * KSIZE * c, c), lambda b, r: (0, 0)),
                pl.BlockSpec((1, c), lambda b, r: (0, 0)),
                pl.BlockSpec((KSIZE * KSIZE * c, c), lambda b, r: (0, 0)),
                pl.BlockSpec((1, c), lambda b, r: (0, 0)),
            ],
            out_specs=pl.BlockSpec((1, th, wp, c), lambda b, r: (b, r, 0, 0)),
            scratch_shapes=[
                pltpu.VMEM((th + 4, LPAD + wp + 1, c), jnp.bfloat16),   # conv1 input
                pltpu.VMEM((th + 2, LPAD + wp + 1, c), jnp.bfloat16),   # conv2 input
            ],
        ),
        compiler_params=pltpu.CompilerParams(
            dimension_semantics=("parallel", "parallel"),
            vmem_limit_bytes=vmem_limit),
    )(x_k, x_k, x_k, w1c, b1_2d, w2c, b2_2d)

    if (h_pad, wp) != (h, w):
        out = out[:, :h, :w, :]
    return out


@functools.partial(jax.jit, static_argnames=("row_tile", "split_dy"))
def residual_conv_unit(x_nchw, w1_oihw, b1, w2_oihw, b2,
                       row_tile=None, split_dy=None):
    """PyTorch-layout compatibility shim (NCHW in/out) used for reference tests.
    The extra HBM transposes are only paid here, not on the NHWC production path."""
    x_nhwc = jnp.transpose(x_nchw, (0, 2, 3, 1))
    out = residual_conv_unit_nhwc(x_nhwc, w1_oihw, b1, w2_oihw, b2,
                                  row_tile=row_tile, split_dy=split_dy)
    return jnp.transpose(out, (0, 3, 1, 2))


# ---------------------------------------------------------------------------
# Reference + test
# ---------------------------------------------------------------------------
def _reference(x_nchw, w1, b1, w2, b2):
    """Plain-JAX f32 reference (lax conv, NCHW/OIHW)."""
    dn = ("NCHW", "OIHW", "NCHW")

    def conv(x, w, b):
        y = lax.conv_general_dilated(x, w, window_strides=(1, 1),
                                     padding=((1, 1), (1, 1)),
                                     dimension_numbers=dn)
        return y + b.reshape(1, -1, 1, 1)

    out = jnp.maximum(x_nchw, 0.0)
    out = conv(out, w1, b1)
    out = jnp.maximum(out, 0.0)
    out = conv(out, w2, b2)
    return out + x_nchw


if __name__ == "__main__":
    key = jax.random.PRNGKey(0)

    def make(k, n, c, h, w):
        kx, kw1, kb1, kw2, kb2 = jax.random.split(k, 5)
        x = jax.random.normal(kx, (n, c, h, w), dtype=jnp.float32)
        w1 = jax.random.normal(kw1, (c, c, KSIZE, KSIZE), dtype=jnp.float32) * 0.1
        b1 = jax.random.normal(kb1, (c,), dtype=jnp.float32) * 0.1
        w2 = jax.random.normal(kw2, (c, c, KSIZE, KSIZE), dtype=jnp.float32) * 0.1
        b2 = jax.random.normal(kb2, (c,), dtype=jnp.float32) * 0.1
        return x, w1, b1, w2, b2

    k1, k2 = jax.random.split(key)

    # Case 1: aligned shapes, multi row-tile grid (2, 2), fused K=9C matmul path.
    x, w1, b1, w2, b2 = make(k1, 2, 8, 16, 16)
    out = jax.block_until_ready(residual_conv_unit(x, w1, b1, w2, b2, row_tile=8))
    ref = jax.block_until_ready(_reference(x, w1, b1, w2, b2))
    assert out.shape == x.shape
    # Tolerance reflects bf16 MXU operands through two chained convs (f32 accum).
    assert jnp.allclose(out, ref, atol=3e-2, rtol=3e-2), "case1 mismatch vs reference"

    # Case 2: odd H/W (exercises wrapper padding + boundary masking) and the
    #         K=3C split-dy matmul path.
    x, w1, b1, w2, b2 = make(k2, 1, 8, 13, 11)
    out = jax.block_until_ready(
        residual_conv_unit(x, w1, b1, w2, b2, row_tile=8, split_dy=True))
    ref = jax.block_until_ready(_reference(x, w1, b1, w2, b2))
    assert out.shape == x.shape
    assert jnp.allclose(out, ref, atol=3e-2, rtol=3e-2), "case2 mismatch vs reference"

    print("KERNEL_OK")
</pallas_src>

<mosaic_0001>
module attributes {stable_mosaic.version = 11 : i64} {
  func.func @_rcu_kernel(%arg0: i32, %arg1: i32, %arg2: memref<1x2x16x8xf32, #tpu.memory_space<vmem>>, %arg3: memref<1x8x16x8xf32, #tpu.memory_space<vmem>>, %arg4: memref<1x2x16x8xf32, #tpu.memory_space<vmem>>, %arg5: memref<72x8xbf16, #tpu.memory_space<vmem>>, %arg6: memref<1x8xf32, #tpu.memory_space<vmem>>, %arg7: memref<72x8xbf16, #tpu.memory_space<vmem>>, %arg8: memref<1x8xf32, #tpu.memory_space<vmem>>, %arg9: memref<1x8x16x8xf32, #tpu.memory_space<vmem>>, %arg10: memref<12x25x8xbf16, #tpu.memory_space<vmem>>, %arg11: memref<10x25x8xbf16, #tpu.memory_space<vmem>>) attributes {dimension_semantics = [#tpu.dimension_semantics<parallel>, #tpu.dimension_semantics<parallel>], iteration_bounds = array<i64: 2, 2>, scalar_prefetch = 0 : i64, scratch_operands = 2 : i64, tpu.core_type = #tpu.core_type<tc>, window_params = [{transform_indices = @transform_0, window_bounds = array<i64: 1, 2, 16, 8>}, {transform_indices = @transform_1, window_bounds = array<i64: 1, 8, 16, 8>}, {transform_indices = @transform_2, window_bounds = array<i64: 1, 2, 16, 8>}, {pipeline_mode = #tpu.pipeline_mode<synchronous>, transform_indices = @transform_3, window_bounds = array<i64: 72, 8>}, {pipeline_mode = #tpu.pipeline_mode<synchronous>, transform_indices = @transform_4, window_bounds = array<i64: 1, 8>}, {pipeline_mode = #tpu.pipeline_mode<synchronous>, transform_indices = @transform_5, window_bounds = array<i64: 72, 8>}, {pipeline_mode = #tpu.pipeline_mode<synchronous>, transform_indices = @transform_6, window_bounds = array<i64: 1, 8>}, {transform_indices = @transform_7, window_bounds = array<i64: 1, 8, 16, 8>}]} {
    %c0 = arith.constant 0 : index
    %c0_0 = arith.constant 0 : index
    %c0_1 = arith.constant 0 : index
    %c0_2 = arith.constant 0 : index
    %0 = vector.load %arg3[%c0, %c0_0, %c0_1, %c0_2] : memref<1x8x16x8xf32, #tpu.memory_space<vmem>>, vector<1x8x16x8xf32>
    %1 = vector.shape_cast %0 : vector<1x8x16x8xf32> to vector<8x16x8xf32>
    %cst = arith.constant 0.000000e+00 : f32
    %2 = vector.broadcast %cst : f32 to vector<8x16x8xf32>
    %3 = arith.maximumf %1, %2 : vector<8x16x8xf32>
    %4 = arith.truncf %3 : vector<8x16x8xf32> to vector<8x16x8xbf16>
    %c2 = arith.constant 2 : index
    %c8 = arith.constant 8 : index
    %c0_3 = arith.constant 0 : index
    %5 = vector.load %arg10[%c2, %c8, %c0_3] : memref<12x25x8xbf16, #tpu.memory_space<vmem>>, vector<8x16x8xbf16>
    tpu.vector_store %arg10[%c2, %c8, %c0_3], %4 {strides = array<i32>} : memref<12x25x8xbf16, #tpu.memory_space<vmem>>, vector<8x16x8xbf16>,
    %c0_4 = arith.constant 0 : index
    %c0_5 = arith.constant 0 : index
    %c0_6 = arith.constant 0 : index
    %c0_7 = arith.constant 0 : index
    %6 = vector.load %arg2[%c0_4, %c0_5, %c0_6, %c0_7] : memref<1x2x16x8xf32, #tpu.memory_space<vmem>>, vector<1x2x16x8xf32>
    %7 = vector.shape_cast %6 : vector<1x2x16x8xf32> to vector<2x16x8xf32>
    %cst_8 = arith.constant 0.000000e+00 : f32
    %8 = vector.broadcast %cst_8 : f32 to vector<2x16x8xf32>
    %9 = arith.maximumf %7, %8 : vector<2x16x8xf32>
    %c0_i32 = arith.constant 0 : i32
    %10 = arith.cmpi eq, %arg1, %c0_i32 : i32
    %cst_9 = arith.constant 0.000000e+00 : f32
    %11 = vector.broadcast %cst_9 : f32 to vector<2x16x8xf32>
    %12 = arith.select %10, %11, %9 : vector<2x16x8xf32>
    %13 = arith.truncf %12 : vector<2x16x8xf32> to vector<2x16x8xbf16>
    %c0_10 = arith.constant 0 : index
    %c8_11 = arith.constant 8 : index
    %c0_12 = arith.constant 0 : index
    %14 = vector.load %arg10[%c0_10, %c8_11, %c0_12] : memref<12x25x8xbf16, #tpu.memory_space<vmem>>, vector<2x16x8xbf16>
    tpu.vector_store %arg10[%c0_10, %c8_11, %c0_12], %13 {strides = array<i32>} : memref<12x25x8xbf16, #tpu.memory_space<vmem>>, vector<2x16x8xbf16>,
    %c0_13 = arith.constant 0 : index
    %c0_14 = arith.constant 0 : index
    %c0_15 = arith.constant 0 : index
    %c0_16 = arith.constant 0 : index
    %15 = vector.load %arg4[%c0_13, %c0_14, %c0_15, %c0_16] : memref<1x2x16x8xf32, #tpu.memory_space<vmem>>, vector<1x2x16x8xf32>
    %16 = vector.shape_cast %15 : vector<1x2x16x8xf32> to vector<2x16x8xf32>
    %cst_17 = arith.constant 0.000000e+00 : f32
    %17 = vector.broadcast %cst_17 : f32 to vector<2x16x8xf32>
    %18 = arith.maximumf %16, %17 : vector<2x16x8xf32>
    %c1_i32 = arith.constant 1 : i32
    %19 = arith.cmpi eq, %arg1, %c1_i32 : i32
    %cst_18 = arith.constant 0.000000e+00 : f32
    %20 = vector.broadcast %cst_18 : f32 to vector<2x16x8xf32>
    %21 = arith.select %19, %20, %18 : vector<2x16x8xf32>
    %22 = arith.truncf %21 : vector<2x16x8xf32> to vector<2x16x8xbf16>
    %c10 = arith.constant 10 : index
    %c8_19 = arith.constant 8 : index
    %c0_20 = arith.constant 0 : index
    %23 = vector.load %arg10[%c10, %c8_19, %c0_20] : memref<12x25x8xbf16, #tpu.memory_space<vmem>>, vector<2x16x8xbf16>
    tpu.vector_store %arg10[%c10, %c8_19, %c0_20], %22 {strides = array<i32>} : memref<12x25x8xbf16, #tpu.memory_space<vmem>>, vector<2x16x8xbf16>,
    %cst_21 = arith.constant 0.000000e+00 : bf16
    %24 = vector.broadcast %cst_21 : bf16 to vector<12x1x8xbf16>
    %c0_22 = arith.constant 0 : index
    %c7 = arith.constant 7 : index
    %c0_23 = arith.constant 0 : index
    %25 = vector.load %arg10[%c0_22, %c7, %c0_23] : memref<12x25x8xbf16, #tpu.memory_space<vmem>>, vector<12x1x8xbf16>
    tpu.vector_store %arg10[%c0_22, %c7, %c0_23], %24 {strides = array<i32>} : memref<12x25x8xbf16, #tpu.memory_space<vmem>>, vector<12x1x8xbf16>,
    %c0_24 = arith.constant 0 : index
    %c24 = arith.constant 24 : index
    %c0_25 = arith.constant 0 : index
    %26 = vector.load %arg10[%c0_24, %c24, %c0_25] : memref<12x25x8xbf16, #tpu.memory_space<vmem>>, vector<12x1x8xbf16>
    tpu.vector_store %arg10[%c0_24, %c24, %c0_25], %24 {strides = array<i32>} : memref<12x25x8xbf16, #tpu.memory_space<vmem>>, vector<12x1x8xbf16>,
    %c0_26 = arith.constant 0 : index
    %c7_27 = arith.constant 7 : index
    %c0_28 = arith.constant 0 : index
    %27 = vector.load %arg10[%c0_26, %c7_27, %c0_28] : memref<12x25x8xbf16, #tpu.memory_space<vmem>>, vector<10x16x8xbf16>
    %c0_29 = arith.constant 0 : index
    %c8_30 = arith.constant 8 : index
    %c0_31 = arith.constant 0 : index
    %28 = vector.load %arg10[%c0_29, %c8_30, %c0_31] : memref<12x25x8xbf16, #tpu.memory_space<vmem>>, vector<10x16x8xbf16>
    %c0_32 = arith.constant 0 : index
    %c9 = arith.constant 9 : index
    %c0_33 = arith.constant 0 : index
    %29 = vector.load %arg10[%c0_32, %c9, %c0_33] : memref<12x25x8xbf16, #tpu.memory_space<vmem>>, vector<10x16x8xbf16>
    %c1 = arith.constant 1 : index
    %c7_34 = arith.constant 7 : index
    %c0_35 = arith.constant 0 : index
    %30 = vector.load %arg10[%c1, %c7_34, %c0_35] : memref<12x25x8xbf16, #tpu.memory_space<vmem>>, vector<10x16x8xbf16>
    %c1_36 = arith.constant 1 : index
    %c8_37 = arith.constant 8 : index
    %c0_38 = arith.constant 0 : index
    %31 = vector.load %arg10[%c1_36, %c8_37, %c0_38] : memref<12x25x8xbf16, #tpu.memory_space<vmem>>, vector<10x16x8xbf16>
    %c1_39 = arith.constant 1 : index
    %c9_40 = arith.constant 9 : index
    %c0_41 = arith.constant 0 : index
    %32 = vector.load %arg10[%c1_39, %c9_40, %c0_41] : memref<12x25x8xbf16, #tpu.memory_space<vmem>>, vector<10x16x8xbf16>
    %c2_42 = arith.constant 2 : index
    %c7_43 = arith.constant 7 : index
    %c0_44 = arith.constant 0 : index
    %33 = vector.load %arg10[%c2_42, %c7_43, %c0_44] : memref<12x25x8xbf16, #tpu.memory_space<vmem>>, vector<10x16x8xbf16>
    %c2_45 = arith.constant 2 : index
    %c8_46 = arith.constant 8 : index
    %c0_47 = arith.constant 0 : index
    %34 = vector.load %arg10[%c2_45, %c8_46, %c0_47] : memref<12x25x8xbf16, #tpu.memory_space<vmem>>, vector<10x16x8xbf16>
    %c2_48 = arith.constant 2 : index
    %c9_49 = arith.constant 9 : index
    %c0_50 = arith.constant 0 : index
    %35 = vector.load %arg10[%c2_48, %c9_49, %c0_50] : memref<12x25x8xbf16, #tpu.memory_space<vmem>>, vector<10x16x8xbf16>
    %36 = tpu.concatenate %27, %28, %29, %30, %31, %32, %33, %34, %35 in 2 : vector<10x16x8xbf16>, vector<10x16x8xbf16>, vector<10x16x8xbf16>, vector<10x16x8xbf16>, vector<10x16x8xbf16>, vector<10x16x8xbf16>, vector<10x16x8xbf16>, vector<10x16x8xbf16>, vector<10x16x8xbf16> -> vector<10x16x72xbf16>
    %37 = vector.shape_cast %36 : vector<10x16x72xbf16> to vector<160x72xbf16>
    %c0_51 = arith.constant 0 : index
    %c0_52 = arith.constant 0 : index
    %38 = vector.load %arg5[%c0_51, %c0_52] : memref<72x8xbf16, #tpu.memory_space<vmem>>, vector<72x8xbf16>
    %cst_53 = arith.constant dense<0.000000e+00> : vector<160x8xf32>
    %39 = tpu.matmul %37, %38, %cst_53 {dimension_numbers = #tpu.dot_dimension_numbers<[1], [0], [0], [1], [0, 0, 1, 1], [], []>} : vector<160x72xbf16>, vector<72x8xbf16>, vector<160x8xf32> -> vector<160x8xf32>
    %c0_54 = arith.constant 0 : index
    %c0_55 = arith.constant 0 : index
    %40 = vector.load %arg6[%c0_54, %c0_55] : memref<1x8xf32, #tpu.memory_space<vmem>>, vector<1x8xf32>
    %41 = vector.broadcast %40 : vector<1x8xf32> to vector<160x8xf32>
    %42 = arith.addf %39, %41 : vector<160x8xf32>
    %cst_56 = arith.constant 0.000000e+00 : f32
    %43 = vector.broadcast %cst_56 : f32 to vector<160x8xf32>
    %44 = arith.maximumf %42, %43 : vector<160x8xf32>
    %45 = vector.shape_cast %44 : vector<160x8xf32> to vector<10x16x8xf32>
    %46 = arith.truncf %45 : vector<10x16x8xf32> to vector<10x16x8xbf16>
    %c0_57 = arith.constant 0 : index
    %c8_58 = arith.constant 8 : index
    %c0_59 = arith.constant 0 : index
    %47 = vector.load %arg11[%c0_57, %c8_58, %c0_59] : memref<10x25x8xbf16, #tpu.memory_space<vmem>>, vector<10x16x8xbf16>
    tpu.vector_store %arg11[%c0_57, %c8_58, %c0_59], %46 {strides = array<i32>} : memref<10x25x8xbf16, #tpu.memory_space<vmem>>, vector<10x16x8xbf16>,
    %cst_60 = arith.constant 0.000000e+00 : bf16
    %48 = vector.broadcast %cst_60 : bf16 to vector<10x1x8xbf16>
    %c0_61 = arith.constant 0 : index
    %c7_62 = arith.constant 7 : index
    %c0_63 = arith.constant 0 : index
    %49 = vector.load %arg11[%c0_61, %c7_62, %c0_63] : memref<10x25x8xbf16, #tpu.memory_space<vmem>>, vector<10x1x8xbf16>
    tpu.vector_store %arg11[%c0_61, %c7_62, %c0_63], %48 {strides = array<i32>} : memref<10x25x8xbf16, #tpu.memory_space<vmem>>, vector<10x1x8xbf16>,
    %c0_64 = arith.constant 0 : index
    %c24_65 = arith.constant 24 : index
    %c0_66 = arith.constant 0 : index
    %50 = vector.load %arg11[%c0_64, %c24_65, %c0_66] : memref<10x25x8xbf16, #tpu.memory_space<vmem>>, vector<10x1x8xbf16>
    tpu.vector_store %arg11[%c0_64, %c24_65, %c0_66], %48 {strides = array<i32>} : memref<10x25x8xbf16, #tpu.memory_space<vmem>>, vector<10x1x8xbf16>,
    %c0_i32_67 = arith.constant 0 : i32
    %51 = arith.cmpi eq, %arg1, %c0_i32_67 : i32
    %52 = arith.extui %51 : i1 to i32
    %c0_i32_68 = arith.constant 0 : i32
    %53 = arith.cmpi ne, %52, %c0_i32_68 : i32
    scf.if %53 {
      %cst_111 = arith.constant 0.000000e+00 : bf16
      %81 = vector.broadcast %cst_111 : bf16 to vector<1x16x8xbf16>
      %c0_112 = arith.constant 0 : index
      %c8_113 = arith.constant 8 : index
      %c0_114 = arith.constant 0 : index
      %82 = vector.load %arg11[%c0_112, %c8_113, %c0_114] : memref<10x25x8xbf16, #tpu.memory_space<vmem>>, vector<1x16x8xbf16>
      tpu.vector_store %arg11[%c0_112, %c8_113, %c0_114], %81 {strides = array<i32>} : memref<10x25x8xbf16, #tpu.memory_space<vmem>>, vector<1x16x8xbf16>,
    } else {
    }
    %c1_i32_69 = arith.constant 1 : i32
    %54 = arith.cmpi eq, %arg1, %c1_i32_69 : i32
    %55 = arith.extui %54 : i1 to i32
    %c0_i32_70 = arith.constant 0 : i32
    %56 = arith.cmpi ne, %55, %c0_i32_70 : i32
    scf.if %56 {
      %cst_111 = arith.constant 0.000000e+00 : bf16
      %81 = vector.broadcast %cst_111 : bf16 to vector<1x16x8xbf16>
      %c9_112 = arith.constant 9 : index
      %c8_113 = arith.constant 8 : index
      %c0_114 = arith.constant 0 : index
      %82 = vector.load %arg11[%c9_112, %c8_113, %c0_114] : memref<10x25x8xbf16, #tpu.memory_space<vmem>>, vector<1x16x8xbf16>
      tpu.vector_store %arg11[%c9_112, %c8_113, %c0_114], %81 {strides = array<i32>} : memref<10x25x8xbf16, #tpu.memory_space<vmem>>, vector<1x16x8xbf16>,
    } else {
    }
    %c0_71 = arith.constant 0 : index
    %c7_72 = arith.constant 7 : index
    %c0_73 = arith.constant 0 : index
    %57 = vector.load %arg11[%c0_71, %c7_72, %c0_73] : memref<10x25x8xbf16, #tpu.memory_space<vmem>>, vector<8x16x8xbf16>
    %c0_74 = arith.constant 0 : index
    %c8_75 = arith.constant 8 : index
    %c0_76 = arith.constant 0 : index
    %58 = vector.load %arg11[%c0_74, %c8_75, %c0_76] : memref<10x25x8xbf16, #tpu.memory_space<vmem>>, vector<8x16x8xbf16>
    %c0_77 = arith.constant 0 : index
    %c9_78 = arith.constant 9 : index
    %c0_79 = arith.constant 0 : index
    %59 = vector.load %arg11[%c0_77, %c9_78, %c0_79] : memref<10x25x8xbf16, #tpu.memory_space<vmem>>, vector<8x16x8xbf16>
    %c1_80 = arith.constant 1 : index
    %c7_81 = arith.constant 7 : index
    %c0_82 = arith.constant 0 : index
    %60 = vector.load %arg11[%c1_80, %c7_81, %c0_82] : memref<10x25x8xbf16, #tpu.memory_space<vmem>>, vector<8x16x8xbf16>
    %c1_83 = arith.constant 1 : index
    %c8_84 = arith.constant 8 : index
    %c0_85 = arith.constant 0 : index
    %61 = vector.load %arg11[%c1_83, %c8_84, %c0_85] : memref<10x25x8xbf16, #tpu.memory_space<vmem>>, vector<8x16x8xbf16>
    %c1_86 = arith.constant 1 : index
    %c9_87 = arith.constant 9 : index
    %c0_88 = arith.constant 0 : index
    %62 = vector.load %arg11[%c1_86, %c9_87, %c0_88] : memref<10x25x8xbf16, #tpu.memory_space<vmem>>, vector<8x16x8xbf16>
    %c2_89 = arith.constant 2 : index
    %c7_90 = arith.constant 7 : index
    %c0_91 = arith.constant 0 : index
    %63 = vector.load %arg11[%c2_89, %c7_90, %c0_91] : memref<10x25x8xbf16, #tpu.memory_space<vmem>>, vector<8x16x8xbf16>
    %c2_92 = arith.constant 2 : index
    %c8_93 = arith.constant 8 : index
    %c0_94 = arith.constant 0 : index
    %64 = vector.load %arg11[%c2_92, %c8_93, %c0_94] : memref<10x25x8xbf16, #tpu.memory_space<vmem>>, vector<8x16x8xbf16>
    %c2_95 = arith.constant 2 : index
    %c9_96 = arith.constant 9 : index
    %c0_97 = arith.constant 0 : index
    %65 = vector.load %arg11[%c2_95, %c9_96, %c0_97] : memref<10x25x8xbf16, #tpu.memory_space<vmem>>, vector<8x16x8xbf16>
    %66 = tpu.concatenate %57, %58, %59, %60, %61, %62, %63, %64, %65 in 2 : vector<8x16x8xbf16>, vector<8x16x8xbf16>, vector<8x16x8xbf16>, vector<8x16x8xbf16>, vector<8x16x8xbf16>, vector<8x16x8xbf16>, vector<8x16x8xbf16>, vector<8x16x8xbf16>, vector<8x16x8xbf16> -> vector<8x16x72xbf16>
    %67 = vector.shape_cast %66 : vector<8x16x72xbf16> to vector<128x72xbf16>
    %c0_98 = arith.constant 0 : index
    %c0_99 = arith.constant 0 : index
    %68 = vector.load %arg7[%c0_98, %c0_99] : memref<72x8xbf16, #tpu.memory_space<vmem>>, vector<72x8xbf16>
    %cst_100 = arith.constant dense<0.000000e+00> : vector<128x8xf32>
    %69 = tpu.matmul %67, %68, %cst_100 {dimension_numbers = #tpu.dot_dimension_numbers<[1], [0], [0], [1], [0, 0, 1, 1], [], []>} : vector<128x72xbf16>, vector<72x8xbf16>, vector<128x8xf32> -> vector<128x8xf32>
    %c0_101 = arith.constant 0 : index
    %c0_102 = arith.constant 0 : index
    %70 = vector.load %arg8[%c0_101, %c0_102] : memref<1x8xf32, #tpu.memory_space<vmem>>, vector<1x8xf32>
    %71 = vector.broadcast %70 : vector<1x8xf32> to vector<128x8xf32>
    %72 = arith.addf %69, %71 : vector<128x8xf32>
    %c0_103 = arith.constant 0 : index
    %c0_104 = arith.constant 0 : index
    %c0_105 = arith.constant 0 : index
    %c0_106 = arith.constant 0 : index
    %73 = vector.load %arg3[%c0_103, %c0_104, %c0_105, %c0_106] : memref<1x8x16x8xf32, #tpu.memory_space<vmem>>, vector<1x8x16x8xf32>
    %74 = vector.shape_cast %73 : vector<1x8x16x8xf32> to vector<8x16x8xf32>
    %75 = vector.shape_cast %74 : vector<8x16x8xf32> to vector<128x8xf32>
    %76 = arith.addf %72, %75 : vector<128x8xf32>
    %77 = vector.shape_cast %76 : vector<128x8xf32> to vector<8x16x8xf32>
    %c0_107 = arith.constant 0 : index
    %c0_108 = arith.constant 0 : index
    %c0_109 = arith.constant 0 : index
    %c0_110 = arith.constant 0 : index
    %78 = vector.load %arg9[%c0_107, %c0_108, %c0_109, %c0_110] : memref<1x8x16x8xf32, #tpu.memory_space<vmem>>, vector<1x8x16x8xf32>
    %79 = vector.shape_cast %78 : vector<1x8x16x8xf32> to vector<8x16x8xf32>
    %80 = vector.shape_cast %77 : vector<8x16x8xf32> to vector<1x8x16x8xf32>
    tpu.vector_store %arg9[%c0_107, %c0_108, %c0_109, %c0_110], %80 {strides = array<i32>} : memref<1x8x16x8xf32, #tpu.memory_space<vmem>>, vector<1x8x16x8xf32>,
    return
  }
  func.func @transform_0(%arg0: i32, %arg1: i32) -> (i32, i32, i32, i32) {
    %c4_i32 = arith.constant 4 : i32
    %0 = arith.muli %arg1, %c4_i32 : i32
    %c1_i32 = arith.constant 1 : i32
    %1 = arith.subi %0, %c1_i32 : i32
    %c0_i32 = arith.constant 0 : i32
    %2 = arith.maxsi %1, %c0_i32 : i32
    %c0_i32_0 = arith.constant 0 : i32
    %c0_i32_1 = arith.constant 0 : i32
    %c0_i32_2 = arith.constant 0 : i32
    return %arg0, %2, %c0_i32_0, %c0_i32_1 : i32, i32, i32, i32
  }
  func.func @transform_1(%arg0: i32, %arg1: i32) -> (i32, i32, i32, i32) {
    %c0_i32 = arith.constant 0 : i32
    %c0_i32_0 = arith.constant 0 : i32
    %c0_i32_1 = arith.constant 0 : i32
    return %arg0, %arg1, %c0_i32, %c0_i32_0 : i32, i32, i32, i32
  }
  func.func @transform_2(%arg0: i32, %arg1: i32) -> (i32, i32, i32, i32) {
    %c4_i32 = arith.constant 4 : i32
    %0 = arith.muli %arg1, %c4_i32 : i32
    %c4_i32_0 = arith.constant 4 : i32
    %1 = arith.addi %0, %c4_i32_0 : i32
    %c7_i32 = arith.constant 7 : i32
    %2 = arith.minsi %1, %c7_i32 : i32
    %c0_i32 = arith.constant 0 : i32
    %c0_i32_1 = arith.constant 0 : i32
    %c0_i32_2 = arith.constant 0 : i32
    return %arg0, %2, %c0_i32, %c0_i32_1 : i32, i32, i32, i32
  }
  func.func @transform_3(%arg0: i32, %arg1: i32) -> (i32, i32) {
    %c0_i32 = arith.constant 0 : i32
    %c0_i32_0 = arith.constant 0 : i32
    %c0_i32_1 = arith.constant 0 : i32
    return %c0_i32, %c0_i32_0 : i32, i32
  }
  func.func @transform_4(%arg0: i32, %arg1: i32) -> (i32, i32) {
    %c0_i32 = arith.constant 0 : i32
    %c0_i32_0 = arith.constant 0 : i32
    %c0_i32_1 = arith.constant 0 : i32
    return %c0_i32, %c0_i32_0 : i32, i32
  }
  func.func @transform_5(%arg0: i32, %arg1: i32) -> (i32, i32) {
    %c0_i32 = arith.constant 0 : i32
    %c0_i32_0 = arith.constant 0 : i32
    %c0_i32_1 = arith.constant 0 : i32
    return %c0_i32, %c0_i32_0 : i32, i32
  }
  func.func @transform_6(%arg0: i32, %arg1: i32) -> (i32, i32) {
    %c0_i32 = arith.constant 0 : i32
    %c0_i32_0 = arith.constant 0 : i32
    %c0_i32_1 = arith.constant 0 : i32
    return %c0_i32, %c0_i32_0 : i32, i32
  }
  func.func @transform_7(%arg0: i32, %arg1: i32) -> (i32, i32, i32, i32) {
    %c0_i32 = arith.constant 0 : i32
    %c0_i32_0 = arith.constant 0 : i32
    %c0_i32_1 = arith.constant 0 : i32
    return %arg0, %arg1, %c0_i32, %c0_i32_0 : i32, i32, i32, i32
  }
}

</mosaic_0001>

<bundles_post_ra>
// kernel: residual_conv_unit.1
= control target key start
LH: loop header
LB: loop body
LE: loop exit
PB: predicated region body
PF: predicated region fallthrough
CT: control target
= control target key end

     0   :  { %s5029_s24 = smov 0   ;;  %s5031_s25 = smov 0   ;;  %s6634_s0 = inlined_call_operand.vmem [shape: f32[2,16,16,8], index: 0, kind: input, shape index: {}, may-alias: {0,1,2}]   ;;  %s6635_s1 = inlined_call_operand.vmem [shape: f32[2,16,16,8], index: 1, kind: input, shape index: {}, may-alias: {0,1,2}]   ;;  %s6636_s2 = inlined_call_operand.vmem [shape: f32[2,16,16,8], index: 2, kind: input, shape index: {}, may-alias: {0,1,2}]   ;;  %s6637_s3 = inlined_call_operand.vmem [shape: bf16[72,8], index: 3, kind: input, shape index: {}]   ;;  %s6638_s4 = inlined_call_operand.vmem [shape: f32[1,8], index: 4, kind: input, shape index: {}]   ;;  %s6639_s5 = inlined_call_operand.vmem [shape: bf16[72,8], index: 5, kind: input, shape index: {}]   ;;  %s6640_s6 = inlined_call_operand.vmem [shape: f32[1,8], index: 6, kind: input, shape index: {}]   ;;  %s6641_s7 = inlined_call_operand.vmem [shape: f32[2,16,16,8], index: 7, kind: output, shape index: {}]  }
   0x1   :  { %s5033_s26 = smov 0   ;;  %s5035_s27 = smov 0  }
   0x2   :  { %s5037_s28 = smov 0  }
   0x3 LB: > { %s26_s29 = sadd.s32 1, %s4969_s26  ;;  %s29_s30 = sadd.s32 1, %s4973_s27  ;;  %s4977_s28 = sphi %s5037_s28, %s17_s28   ;;  %s4973_s27 = sphi %s5035_s27, %s6654_s27   ;;  %s4969_s26 = sphi %s5033_s26, %s6653_s26   ;;  %s4965_s25 = sphi %s5031_s25, %s6652_s25   ;;  %s4961_s24 = sphi %s5029_s24, %s6651_s24  }
   0x4   : > { %p27_p0 = scmp.ge.s32.totalorder %s26_s29, 2  ;;  %p4238_p1 = scmp.ge.s32.totalorder %s4977_s28, 1 }
   0x5   : > { %p327_p2 = scmp.lt.s32.totalorder %s4977_s28, 5 }
   0x6   : > { %s6656_s29 = smov (%p27_p0, %s26_s29), 0  ;;  %s6658_s30 = smov (!%p27_p0, %s29_s30), %s4973_s27 }
   0x7   : > { %p328_p3 = pnand %p4238_p1, %p327_p2  ;;  %p31_p4 = scmp.ge.s32.totalorder %s6658_s30, 2 }
   0x8   : > { %p402_p5 = scmp.lt.s32.totalorder (!%p328_p3), %s4965_s25, 1  ;;  %s4245_s8 = sshll.u32 (!%p328_p3), %s4961_s24, 3  ;;  %vm645_vm0 = vcmask (!%p328_p3), 60419   ;;  %vm646_vm1 = vsmask.f32 (!%p328_p3), 7950  ;;  %vm684_vm3 = vcmask (!%p328_p3), 57344  }
   0x9   : > { %s6660_s30 = smov (%p31_p4, %s6658_s30), 0  ;;  %331 = sbr.rel (%p328_p3) target bundleno = 1210 (0x4ba), region = 48 }
   0xa   : > { %p419_p6 = scmp.lt.s32.totalorder (!%p328_p3), %s4245_s8, 15  ;;  %vm5062_vm2 = vmand (!%p328_p3), %vm645_vm0, %vm646_vm1  ;;  %v654_v1 = vld [vmem:[#allocation2 + $0x20] sm:$0x8] (!%p328_p3)  ;;  %v2578_v5 = vld [vmem:[#allocation3 + $0x10] sm:$0x8] (!%p328_p3)  ;;  %vm555_vm6 = vcmask (!%p328_p3), 60416  }
   0xb   : > { %v2575_v2 = vld [vmem:[#allocation3] sm:$0x8] (!%p328_p3)  ;;  %v655_v3 = vsel (!%p328_p3), %vm5062_vm2, 0, %v654_v1  ;;  %v2579_v6 = vsel (!%p328_p3), %vm5062_vm2, 0, %v2578_v5  ;;  %v2584_v8 = vld [vmem:[#allocation3 + $0x30] sm:$0x8] (!%p328_p3) }
   0xc   : > { %v2576_v4 = vsel (!%p328_p3), %vm5062_vm2, 0, %v2575_v2  ;;  %656 = vst [vmem:[#allocation2 + $0x20] sm:$0x8] (!%p328_p3), %v655_v3  ;;  %v2581_v7 = vld [vmem:[#allocation3 + $0x20] sm:$0x8] (!%p328_p3)  ;;  %v2585_v10 = vsel (!%p328_p3), %vm5062_vm2, 0, %v2584_v8 }
   0xd   : > { %2577 = vst [vmem:[#allocation3] sm:$0x8] (!%p328_p3), %v2576_v4  ;;  %2580 = vst [vmem:[#allocation3 + $0x10] sm:$0x8] (!%p328_p3), %v2579_v6  ;;  %v2582_v9 = vsel (!%p328_p3), %vm5062_vm2, 0, %v2581_v7  ;;  %s4239_s19 = sshll.u32 (!%p328_p3), %s4961_s24, 2 }
   0xe   : > { %v2587_v11 = vld [vmem:[#allocation3 + $0x40] sm:$0x8] (!%p328_p3)  ;;  %2583 = vst [vmem:[#allocation3 + $0x20] sm:$0x8] (!%p328_p3), %v2582_v9  ;;  %2586 = vst [vmem:[#allocation3 + $0x30] sm:$0x8] (!%p328_p3), %v2585_v10 }
   0xf   : > { %v2588_v12 = vsel (!%p328_p3), %vm5062_vm2, 0, %v2587_v11  ;;  %v2590_v13 = vld [vmem:[#allocation3 + $0x50] sm:$0x8] (!%p328_p3)  ;;  %v2593_v14 = vld [vmem:[#allocation3 + $0x60] sm:$0x8] (!%p328_p3)  ;;  %s4240_s20 = sadd.s32 (!%p328_p3), 4294967295, %s4239_s19 }
  0x10   : > { %s6662_s25 = smov (!%p402_p5, %s4965_s25), 1  ;;  %s6664_s8 = smov (!%p419_p6, %s4245_s8), 15  ;;  %2589 = vst [vmem:[#allocation3 + $0x40] sm:$0x8] %v2588_v12  ;;  %v2591_v15 = vsel %vm5062_vm2, 0, %v2590_v13  ;;  %v2594_v16 = vsel %vm5062_vm2, 0, %v2593_v14 }
  0x11   : > { %s5072_s9 = sshll.u32 %s6662_s25, 5  ;;  %s4246_s10 = sshll.u32 %s6664_s8, 1  ;;  %v2596_v17 = vld [vmem:[#allocation3 + $0x70] sm:$0x8]  ;;  %v2599_v18 = vld [vmem:[#allocation3 + $0x80] sm:$0x8] }
  0x12   : > { %s423_s11 = sadd.s32 %s4246_s10, %s5072_s9  ;;  %2592 = vst [vmem:[#allocation3 + $0x50] sm:$0x8] %v2591_v15  ;;  %2595 = vst [vmem:[#allocation3 + $0x60] sm:$0x8] %v2594_v16  ;;  %v2597_v19 = vsel %vm5062_vm2, 0, %v2596_v17  ;;  %v2600_v20 = vsel %vm5062_vm2, 0, %v2599_v18 }
  0x13   : > { %s4248_s12 = sshll.u32 %s423_s11, 3  ;;  %v2602_v21 = vld [vmem:[#allocation3 + $0x90] sm:$0x8]  ;;  %2598 = vst [vmem:[#allocation3 + $0x70] sm:$0x8] %v2597_v19  ;;  %p399_p7 = scmp.gt.s32.totalorder %s4240_s20, 0 }
  0x14   : > { %s5092_s15 = scalar_lea.vmem %s6635_s1, %s4248_s12  ;;  %s5097_s18 = scalar_lea.vmem %s6641_s7, %s4248_s12  ;;  %2601 = vst [vmem:[#allocation3 + $0x80] sm:$0x8] %v2600_v20  ;;  %v2603_v22 = vsel %vm5062_vm2, 0, %v2602_v21  ;;  %vm685_vm4 = vsmask.f32 256  ;;  %vm1064_vm7 = vcmask 1042432  }
  0x15   : > { %v693_v23 = vld [vmem:[#allocation2 + $0x2c] sm:$0x1]  ;;  %v458_v25 = vld [vmem:[%s5092_s15] sm:$0xff]  ;;  %2604 = vst [vmem:[#allocation3 + $0x90] sm:$0x8] %v2603_v22  ;;  %vm5104_vm5 = vmand %vm684_vm3, %vm685_vm4  ;;  %p580_p8 = scmp.eq.s32.totalorder %s4961_s24, 0 }
  0x16   : > { %v459_v24 = vld [vmem:[%s5092_s15 + $0x8] sm:$0xff]  ;;  %v474_v28 = vmax.f32 %v458_v25, 0.0  ;;  %v694_v29 = vsel %vm5104_vm5, 0, %v693_v23  ;;  %v2608_v31 = vld [vmem:[#allocation3 + $0x1c] sm:$0x1]  ;;  %v460_v32 = vld [vmem:[%s5092_s15 + $0x10] sm:$0xff] }
  0x17   : > { %v475_v27 = vmax.f32 %v459_v24, 0.0  ;;  %v2605_v30 = vld [vmem:[#allocation3 + $0xc] sm:$0x1]  ;;  %695 = vst [vmem:[#allocation2 + $0x2c] sm:$0x1] %v694_v29  ;;  %v2609_v36 = vsel %vm5104_vm5, 0, %v2608_v31 }
  0x18   : > { %v4552_v34 = vpack.c.bf16 %v474_v28, %v474_v28  ;;  %v2606_v35 = vsel %vm5104_vm5, 0, %v2605_v30  ;;  %v2611_v37 = vld [vmem:[#allocation3 + $0x2c] sm:$0x1]  ;;  %v2614_v38 = vld [vmem:[#allocation3 + $0x3c] sm:$0x1]  ;;  %v476_v53 = vmax.f32 %v460_v32, 0.0 }
  0x19   : > { %v4553_v33 = vpack.c.bf16 %v475_v27, %v475_v27  ;;  %2607 = vst [vmem:[#allocation3 + $0xc] sm:$0x1] %v2606_v35  ;;  %2610 = vst [vmem:[#allocation3 + $0x1c] sm:$0x1] %v2609_v36  ;;  %v2612_v39 = vsel %vm5104_vm5, 0, %v2611_v37  ;;  %v2615_v40 = vsel %vm5104_vm5, 0, %v2614_v38 }
  0x1a   : > { %v2617_v41 = vld [vmem:[#allocation3 + $0x4c] sm:$0x1]  ;;  %v2620_v42 = vld [vmem:[#allocation3 + $0x5c] sm:$0x1]  ;;  %556 = vst.msk [vmem:[#allocation2 + $0x24] sm:$0xf] %vm555_vm6, %v4552_v34  ;;  %v4554_v59 = vpack.c.bf16 %v476_v53, %v476_v53 }
  0x1b   : > { %557 = vst.msk [vmem:[#allocation2 + $0x28] sm:$0xf] %vm555_vm6, %v4553_v33  ;;  %2613 = vst [vmem:[#allocation3 + $0x2c] sm:$0x1] %v2612_v39  ;;  %v2618_v43 = vsel %vm5104_vm5, 0, %v2617_v41  ;;  %v2621_v44 = vsel %vm5104_vm5, 0, %v2620_v42 }
  0x1c   : > { %2616 = vst [vmem:[#allocation3 + $0x3c] sm:$0x1] %v2615_v40  ;;  %v2623_v45 = vld [vmem:[#allocation3 + $0x6c] sm:$0x1]  ;;  %v2626_v46 = vld [vmem:[#allocation3 + $0x7c] sm:$0x1] }
  0x1d   : > { %2619 = vst [vmem:[#allocation3 + $0x4c] sm:$0x1] %v2618_v43  ;;  %2622 = vst [vmem:[#allocation3 + $0x5c] sm:$0x1] %v2621_v44  ;;  %v2624_v47 = vsel %vm5104_vm5, 0, %v2623_v45  ;;  %v2627_v48 = vsel %vm5104_vm5, 0, %v2626_v46 }
  0x1e   : > { %v2629_v49 = vld [vmem:[#allocation3 + $0x8c] sm:$0x1]  ;;  %v2632_v50 = vld [vmem:[#allocation3 + $0x9c] sm:$0x1]  ;;  %2625 = vst [vmem:[#allocation3 + $0x6c] sm:$0x1] %v2624_v47 }
  0x1f   : > { %2628 = vst [vmem:[#allocation3 + $0x7c] sm:$0x1] %v2627_v48  ;;  %v2630_v51 = vsel %vm5104_vm5, 0, %v2629_v49  ;;  %v2633_v52 = vsel %vm5104_vm5, 0, %v2632_v50  ;;  %v657_v54 = vld [vmem:[#allocation2 + $0x30] sm:$0x8] }
  0x20   : > { %v767_v55 = vld [vmem:[#allocation2 + $0x20] sm:$0x8]  ;;  %2631 = vst [vmem:[#allocation3 + $0x8c] sm:$0x1] %v2630_v51  ;;  %2634 = vst [vmem:[#allocation3 + $0x9c] sm:$0x1] %v2633_v52 }
  0x21   : > { %v658_v56 = vsel %vm5062_vm2, 0, %v657_v54  ;;  %v651_v57 = vld [vmem:[#allocation2 + $0x10] sm:$0x8]  ;;  %v461_v58 = vld [vmem:[%s5092_s15 + $0x18] sm:$0xff]  ;;  %v687_v61 = vld [vmem:[#allocation2 + $0xc] sm:$0x1] }
  0x22   : > { %659 = vst [vmem:[#allocation2 + $0x30] sm:$0x8] %v658_v56  ;;  %v652_v60 = vsel %vm5062_vm2, 0, %v651_v57  ;;  %v477_v62 = vmax.f32 %v461_v58, 0.0  ;;  %v804_v63 = vld [vmem:[#allocation2 + $0x20] sm:$0x8] }
  0x23   : > { %v4737_v1 = vld [vmem:[#allocation2 + $0x2c] ss:$0 sps:$4 sm:$0x11]   ;;  %653 = vst [vmem:[#allocation2 + $0x10] sm:$0x8] %v652_v60  ;;  %s6666_s20 = smov (!%p399_p7, %s4240_s20), 0 }
  0x24   : > { %558 = vst.msk [vmem:[#allocation2 + $0x34] sm:$0xf] %vm555_vm6, %v4554_v59  ;;  %v688_v2 = vsel %vm5104_vm5, 0, %v687_v61  ;;  %v690_v3 = vld [vmem:[#allocation2 + $0x1c] sm:$0x1]  ;;  %v4555_v4 = vpack.c.bf16 %v477_v62, %v477_v62  ;;  %s4241_s21 = sshll.u32 %s6666_s20, 1 }
  0x25   : > { %v769_v5 = vld [vmem:[#allocation2 + $0x28] sm:$0xf]  ;;  %v768_v6 = vld [vmem:[#allocation2 + $0x24] sm:$0xf]  ;;  %689 = vst [vmem:[#allocation2 + $0xc] sm:$0x1] %v688_v2 }
  0x26   : > { %v5145_v7 = vld [vmem:[#allocation2 + $0x28] sm:$0xf]  ;;  %v4325_v8 = vcombine.low %v769_v5, %v769_v5  ;;  %v4324_v9 = vcombine.low %v767_v55, %v768_v6  ;;  %v4343_v10 = vcombine.low %v768_v6, %v769_v5  ;;  %v5147_v11 = vld [vmem:[#allocation2 + $0x24] sm:$0xf]  ;;  %559 = vst.msk [vmem:[#allocation2 + $0x38] sm:$0xf] %vm555_vm6, %v4555_v4 }
  0x27   : > { %p5150_p9 = scmp.lt.s32.totalorder %s4241_s21, 15  ;;  %v691_v12 = vsel %vm5104_vm5, 0, %v690_v3  ;;  %s4979_s23 = smov 24   ;;  %v4363_v13 = vcombine.low %v5145_v7, %v5145_v7  ;;  %v4362_v14 = vcombine.low %v804_v63, %v5147_v11  ;;  %v1399_v18 = vrot.slane %v4737_v1, 5  ;;  %v696_v44 = vld [vmem:[#allocation2 + $0x3c] sm:$0x1] }
  0x28   : > { %1221 = vrot.lane.b32.xlu1 %v4325_v8, %s4979_s23  ;;  %1219 = vrot.lane.b32.xlu0 %v4324_v9, %s4979_s23  ;;  %v1274_v15 = vshrl.u32 %v4343_v10, 16  ;;  %v1277_v16 = vshll.u32 %v4343_v10, 16  ;;  %s581_s25 = scalar_select %p580_p8, 1, 0  ;;  %692 = vst [vmem:[#allocation2 + $0x1c] sm:$0x1] %v691_v12 }
  0x29   : > { %v1398_v17 = vrot.slane %v4343_v10, 5  ;;  %v807_v19 = vld [vmem:[#allocation2 + $0x30] sm:$0x8]  ;;  %s6668_s21 = smov (!%p5150_p9, %s4241_s21), 15  ;;  %s4980_s10 = smov 48   ;;  %v697_v46 = vsel %vm5104_vm5, 0, %v696_v44 }
  0x2a   : > { %s4242_s8 = sshll.u32 %s6668_s21, 1  ;;  %v1276_v22 = vrot.slane %v1274_v15, 4  ;;  %v1279_v23 = vrot.slane %v1277_v16, 5  ;;  %v582_v24 = vstv %s581_s25  ;;  %s4981_s17 = smov 40   ;;  %v463_v47 = vld [vmem:[%s5092_s15 + $0x28] sm:$0xff]  ;;  %v462_v48 = vld [vmem:[%s5092_s15 + $0x20] sm:$0xff] }
  0x2b   : > { %v5165_v20 = vld [vmem:[#allocation2 + $0x34] sm:$0xf]  ;;  %s408_s11 = sadd.s32 %s5072_s9, %s4242_s8  ;;  %v1400_v25 = vsel %vm1064_vm7, %v1398_v17, %v1399_v18  ;;  %vm5175_vm8 = vcmp.eq.s32.totalorder %v582_v24, 1  ;;  %s4982_s20 = smov 32   ;;  %698 = vst [vmem:[#allocation2 + $0x3c] sm:$0x1] %v697_v46  ;;  %v5223_v18 = vcombine.low %v5147_v11, %v5145_v7 }
  0x2c   : > { %1547 = vrot.lane.b32.xlu1 %v4363_v13, %s4980_s10  ;;  %1545 = vrot.lane.b32.xlu0 %v4362_v14, %s4980_s10  ;;  %v4364_v21 = vcombine.low %v807_v19, %v5165_v20  ;;  %s4244_s12 = sshll.u32 %s408_s11, 3  ;;  %v1280_v31 = vor.u32 %v1279_v23, %v1276_v22  ;;  %v465_v49 = vld [vmem:[%s5092_s15 + $0x38] sm:$0xff]  ;;  %v660_v50 = vld [vmem:[#allocation2 + $0x40] sm:$0x8]  ;;  %v699_v51 = vld [vmem:[#allocation2 + $0x4c] sm:$0x1] }
  0x2d   : > { %s410_s16 = scalar_lea.vmem %s6634_s0, %s4244_s12  ;;  %v479_v52 = vmax.f32 %v463_v47, 0.0  ;;  %v478_v53 = vmax.f32 %v462_v48, 0.0  ;;  %v764_v54 = vld [vmem:[#allocation2 + $0x10] sm:$0x8]  ;;  %v661_v55 = vsel %vm5062_vm2, 0, %v660_v50  ;;  %v700_v56 = vsel %vm5104_vm5, 0, %v699_v51 }
  0x2e   : > { %v575_v27 = vld [vmem:[%s410_s16 + $0x18] sm:$0xff]  ;;  %v574_v29 = vld [vmem:[%s410_s16 + $0x10] sm:$0xff]  ;;  %v572_v30 = vld [vmem:[%s410_s16] sm:$0xff]  ;;  %v481_v57 = vmax.f32 %v465_v49, 0.0  ;;  %662 = vst [vmem:[#allocation2 + $0x40] sm:$0x8] %v661_v55 }
  0x2f   : > { %v579_v32 = vmax.f32 %v575_v27, 0.0  ;;  %v578_v33 = vmax.f32 %v574_v29, 0.0  ;;  %v573_v34 = vld [vmem:[%s410_s16 + $0x8] sm:$0xff]  ;;  %v576_v35 = vmax.f32 %v572_v30, 0.0  ;;  %v4557_v59 = vpack.c.bf16 %v479_v52, %v479_v52  ;;  %701 = vst [vmem:[#allocation2 + $0x4c] sm:$0x1] %v700_v56 }
  0x30   : > { %1431 = vrot.lane.b32.xlu1 %v1400_v25, %s4981_s17  ;;  %1549 = vrot.lane.b32.xlu0 %v4364_v21, %s4980_s10  ;;  %v577_v36 = vmax.f32 %v573_v34, 0.0  ;;  %v4743_v58 = vld [vmem:[#allocation2 + $0xc] ss:$0 sps:$4 sm:$0x11]   ;;  %v4556_v60 = vpack.c.bf16 %v478_v53, %v478_v53  ;;  %v4559_v1 = vpack.c.bf16 %v481_v57, %v481_v57  ;;  %v5225_v21 = vld [vmem:[#allocation2 + $0x38] sm:$0xf] }
  0x31   : > { %v587_v37 = vsel %vm5175_vm8, 0.0, %v579_v32  ;;  %v586_v38 = vsel %vm5175_vm8, 0.0, %v578_v33  ;;  %v584_v39 = vsel %vm5175_vm8, 0.0, %v576_v35  ;;  %561 = vst.msk [vmem:[#allocation2 + $0x48] sm:$0xf] %vm555_vm6, %v4557_v59  ;;  %v1066_v12 = vrot.slane %v4743_v58, 5 }
  0x32   : > { %v4571_v40 = vpack.c.bf16 %v587_v37, %v587_v37  ;;  %v4570_v41 = vpack.c.bf16 %v586_v38, %v586_v38  ;;  %v585_v42 = vsel %vm5175_vm8, 0.0, %v577_v36  ;;  %v4568_v43 = vpack.c.bf16 %v584_v39, %v584_v39  ;;  %560 = vst.msk [vmem:[#allocation2 + $0x44] sm:$0xf] %vm555_vm6, %v4556_v60  ;;  %563 = vst.msk [vmem:[#allocation2 + $0x58] sm:$0xf] %vm555_vm6, %v4559_v1  ;;  %s4983_s21 = smov 16  }
  0x33   : > { %v4569_v45 = vpack.c.bf16 %v585_v42, %v585_v42  ;;  %v4744_v13 = vld [vmem:[#allocation2 + $0x1c] ss:$0 sps:$4 sm:$0x11]   ;;  %v5232_v7 = vcombine.low %v5165_v20, %v5225_v21  ;;  %v1596_v30 = vshrl.u32 %v5223_v18, 16  ;;  %v663_v32 = vld [vmem:[#allocation2 + $0x50] sm:$0x8] }
  0x34   : > { %1347 = vrot.lane.b32.xlu1 %v1280_v31, %s4982_s20  ;;  %1429 = vrot.lane.b32.xlu0 %v1398_v17, %s4981_s17  ;;  %607 = vst.msk [vmem:[#allocation2 + $0x18] sm:$0xf] %vm555_vm6, %v4571_v40  ;;  %606 = vst.msk [vmem:[#allocation2 + $0x14] sm:$0xf] %vm555_vm6, %v4570_v41  ;;  %v1069_v28 = vrot.slane %v4744_v13, 5  ;;  %v464_v31 = vld [vmem:[%s5092_s15 + $0x30] sm:$0xff] }
  0x35   : > { %604 = vst.msk [vmem:[#allocation2 + $0x4] sm:$0xf] %vm555_vm6, %v4568_v43  ;;  %605 = vst.msk [vmem:[#allocation2 + $0x8] sm:$0xf] %vm555_vm6, %v4569_v45  ;;  %v1599_v39 = vshll.u32 %v5223_v18, 16  ;;  %v1604_v40 = vshrl.u32 %v5232_v7, 16 }
  0x36   : > { %v4745_v29 = vld [vmem:[#allocation2 + $0x1c] ss:$0 sps:$4 sm:$0x11]   ;;  %v730_v20 = vld [vmem:[#allocation2 + $0x24] sm:$0xf]  ;;  %v1607_v41 = vshll.u32 %v5232_v7, 16 }
  0x37   : > { %v1396_v38 = vrot.slane %v4745_v29, 5  ;;  %v480_v42 = vmax.f32 %v464_v31, 0.0  ;;  %v664_v43 = vsel %vm5062_vm2, 0, %v663_v32  ;;  %v702_v44 = vld [vmem:[#allocation2 + $0x5c] sm:$0x1]  ;;  %v5244_v45 = vrot.slane %v1596_v30, 4 }
  0x38   : > { %v731_v46 = vld [vmem:[#allocation2 + $0x28] sm:$0xf]  ;;  %665 = vst [vmem:[#allocation2 + $0x50] sm:$0x8] %v664_v43  ;;  %s4984_s22 = smov 8   ;;  %v703_v53 = vsel %vm5104_vm5, 0, %v702_v44 }
  0x39   : > { %v4558_v50 = vpack.c.bf16 %v480_v42, %v480_v42  ;;  %v467_v51 = vld [vmem:[%s5092_s15 + $0x48] sm:$0xff]  ;;  %v666_v55 = vld [vmem:[#allocation2 + $0x60] sm:$0x8]  ;;  %v1606_v57 = vrot.slane %v1604_v40, 4  ;;  %v1609_v58 = vrot.slane %v1607_v41, 5  ;;  %v1601_v59 = vrot.slane %v1599_v39, 5 }
  0x3a   : > { %v705_v56 = vld [vmem:[#allocation2 + $0x6c] sm:$0x1]  ;;  %v5253_v60 = vcombine.low %v730_v20, %v731_v46  ;;  %704 = vst [vmem:[#allocation2 + $0x5c] sm:$0x1] %v703_v53  ;;  %v469_v1 = vld [vmem:[%s5092_s15 + $0x58] sm:$0xff]  ;;  %s4985_s13 = smov 56  }
  0x3b   : > { %v766_v61 = vld [vmem:[#allocation2 + $0x18] sm:$0xf]  ;;  %v765_v62 = vld [vmem:[#allocation2 + $0x14] sm:$0xf]  ;;  %562 = vst.msk [vmem:[#allocation2 + $0x54] sm:$0xf] %vm555_vm6, %v4558_v50  ;;  %v1610_v30 = vor.u32 %v1609_v58, %v1606_v57 }
  0x3c   : > { %v5204_v63 = vld [vmem:[#allocation2 + $0x14] sm:$0xf]  ;;  %v4323_v2 = vcombine.low %v766_v61, %v766_v61  ;;  %v4322_v3 = vcombine.low %v764_v54, %v765_v62  ;;  %v5206_v4 = vld [vmem:[#allocation2 + $0x18] sm:$0xf]  ;;  %v5208_v5 = vld [vmem:[#allocation2 + $0x4] sm:$0xf]  ;;  %v4342_v8 = vcombine.low %v765_v62, %v766_v61 }
  0x3d   : > { %v5210_v6 = vld [vmem:[#allocation2 + $0x8] sm:$0xf]  ;;  %v4303_v9 = vcombine.low %v5204_v63, %v5206_v4  ;;  %v466_v54 = vld [vmem:[%s5092_s15 + $0x40] sm:$0xff]  ;;  %v733_v61 = vld [vmem:[#allocation2 + $0x34] sm:$0xf]  ;;  %v954_v31 = vshll.u32 %v5253_v60, 16 }
  0x3e   : > { %v4302_v10 = vcombine.low %v5208_v5, %v5210_v6  ;;  %1217 = vrot.lane.b32.xlu1 %v4323_v2, %s4979_s23  ;;  %1215 = vrot.lane.b32.xlu0 %v4322_v3, %s4979_s23  ;;  %v1395_v19 = vrot.slane %v4342_v8, 5  ;;  %v1266_v11 = vshrl.u32 %v4342_v8, 16  ;;  %v1269_v36 = vshll.u32 %v4342_v8, 16  ;;  %v734_v62 = vld [vmem:[#allocation2 + $0x38] sm:$0xf]  ;;  %v4790_v40 = vld [vmem:[%s6637_s3 + $0x10] sm:$0xff]  }
  0x3f   : > { %v1068_v14 = vrot.slane %v4303_v9, 5  ;;  %v943_v24 = vshrl.u32 %v4303_v9, 16  ;;  %v946_v25 = vshll.u32 %v4303_v9, 16  ;;  %v669_v2 = vld [vmem:[#allocation2 + $0x70] sm:$0x8]  ;;  %v4365_v3 = vcombine.low %v5225_v21, %v5225_v21  ;;  %s4986_s25 = smov 64  }
  0x40   : > { %v1065_v15 = vrot.slane %v4302_v10, 5  ;;  %v935_v16 = vshrl.u32 %v4302_v10, 16  ;;  %v938_v17 = vshll.u32 %v4302_v10, 16  ;;  %v1268_v48 = vrot.slane %v1266_v11, 4  ;;  %v468_v9 = vld [vmem:[%s5092_s15 + $0x50] sm:$0xff]  ;;  %v4788_v11 = vld [vmem:[%s6637_s3 + $0x8] sm:$0xff]  }
  0x41   : > { %v945_v34 = vrot.slane %v943_v24, 4  ;;  %v948_v35 = vrot.slane %v946_v25, 5  ;;  %v1070_v37 = vsel %vm1064_vm7, %v1068_v14, %v1069_v28  ;;  %v1271_v49 = vrot.slane %v1269_v36, 5  ;;  %v648_v10 = vld [vmem:[#allocation2] sm:$0x8]  ;;  %s5324_s12 = sadd.s32 4, %s4239_s19 }
  0x42   : > { %1099 = vrot.lane.b32.xlu0 %v1068_v14, %s4983_s21  ;;  %1095 = vrot.lane.b32.xlu1 %v1065_v15, %s4983_s21  ;;  %v937_v22 = vrot.slane %v935_v16, 4  ;;  %v940_v23 = vrot.slane %v938_v17, 5  ;;  %v1067_v27 = vsel %vm1064_vm7, %v1065_v15, %v1066_v12  ;;  %v1397_v52 = vsel %vm1064_vm7, %v1395_v19, %v1396_v38  ;;  %v4785_v16 = vld [vmem:[%s6637_s3] sm:$0xff]   ;;  %v4747_v17 = vld [vmem:[#allocation2 + $0x2c] ss:$0 sps:$4 sm:$0x11]  }
  0x43   : > { %v949_v47 = vor.u32 %v948_v35, %v945_v34  ;;  %v483_v8 = vmax.f32 %v467_v51, 0.0  ;;  %v1272_v12 = vor.u32 %v1271_v49, %v1268_v48  ;;  %v482_v13 = vmax.f32 %v466_v54, 0.0  ;;  %4624 = vmatprep.subr.bf16.mxu0 %v4785_v16  ;;  %v4750_v20 = vld [vmem:[#allocation2 + $0x3c] ss:$0 sps:$4 sm:$0x11]   ;;  %p429_p10 = scmp.lt.s32.totalorder %s5324_s12, 7 }
  0x44   : > { %v941_v33 = vor.u32 %v940_v23, %v937_v22  ;;  %v667_v14 = vsel %vm5062_vm2, 0, %v666_v55  ;;  %v706_v15 = vsel %vm5104_vm5, 0, %v705_v56  ;;  %v951_v21 = vshrl.u32 %v5253_v60, 16  ;;  %4625 = vmatpush3.bf16.msra.mxu0 %v4785_v16  ;;  %v4751_v46 = vld [vmem:[#allocation2 + $0x2c] ss:$0 sps:$4 sm:$0x11]  }
  0x45   : > { %668 = vst [vmem:[#allocation2 + $0x60] sm:$0x8] %v667_v14  ;;  %707 = vst [vmem:[#allocation2 + $0x6c] sm:$0x1] %v706_v15  ;;  %v4560_v22 = vpack.c.bf16 %v482_v13, %v482_v13  ;;  %v485_v23 = vmax.f32 %v469_v1, 0.0  ;;  %v484_v24 = vmax.f32 %v468_v9, 0.0  ;;  %v1602_v25 = vor.u32 %v1601_v59, %v5244_v45  ;;  %4626 = vmatprep.subr.bf16.mxu0 %v4788_v11 }
  0x46   : > { %1425 = vrot.lane.b32.xlu0 %v1395_v19, %s4981_s17  ;;  %1097 = vrot.lane.b32.xlu1 %v1067_v27, %s4983_s21  ;;  %v4561_v19 = vpack.c.bf16 %v483_v8, %v483_v8  ;;  %v5271_v27 = vcombine.low %v733_v61, %v734_v62  ;;  %v670_v28 = vsel %vm5062_vm2, 0, %v669_v2  ;;  %v649_v29 = vsel %vm5062_vm2, 0, %v648_v10  ;;  %v4752_v51 = vld [vmem:[#allocation2 + $0x3c] ss:$0 sps:$4 sm:$0x11]   ;;  %v471_v9 = vld [vmem:[%s5092_s15 + $0x68] sm:$0xff] }
  0x47   : > { %564 = vst.msk [vmem:[#allocation2 + $0x64] sm:$0xf] %vm555_vm6, %v4560_v22  ;;  %v4563_v32 = vpack.c.bf16 %v485_v23, %v485_v23  ;;  %671 = vst [vmem:[#allocation2 + $0x70] sm:$0x8] %v670_v28  ;;  %v1725_v34 = vrot.slane %v5223_v18, 5  ;;  %v1726_v35 = vrot.slane %v4747_v17, 5 }
  0x48   : > { %565 = vst.msk [vmem:[#allocation2 + $0x68] sm:$0xf] %vm555_vm6, %v4561_v19  ;;  %650 = vst [vmem:[#allocation2] sm:$0x8] %v649_v29  ;;  %4627 = vmatpush3.bf16.msra.mxu0 %v4788_v11  ;;  %v953_v36 = vrot.slane %v951_v21, 4  ;;  %v959_v38 = vshrl.u32 %v5271_v27, 16 }
  0x49   : > { %567 = vst.msk [vmem:[#allocation2 + $0x78] sm:$0xf] %vm555_vm6, %v4563_v32  ;;  %v962_v39 = vshll.u32 %v5271_v27, 16  ;;  %v1727_v18 = vsel %vm1064_vm7, %v1725_v34, %v1726_v35  ;;  %v1728_v41 = vrot.slane %v5232_v7, 5  ;;  %v1729_v45 = vrot.slane %v4750_v20, 5  ;;  %4628 = vmatprep.subr.bf16.mxu0 %v4790_v40  ;;  %v470_v13 = vld [vmem:[%s5092_s15 + $0x60] sm:$0xff] }
  0x4a   : > { %1101 = vrot.lane.b32.xlu1 %v1070_v37, %s4983_s21  ;;  %1014 = vrot.lane.b32.xlu0 %v941_v33, %s4984_s22  ;;  %v4562_v33 = vpack.c.bf16 %v484_v24, %v484_v24  ;;  %v956_v37 = vrot.slane %v954_v31, 5  ;;  %v961_v43 = vrot.slane %v959_v38, 4  ;;  %v1071_v49 = vrot.slane %v5253_v60, 5  ;;  %v771_v53 = vld [vmem:[#allocation2 + $0x34] sm:$0xf]  ;;  %v473_v14 = vld [vmem:[%s5092_s15 + $0x78] sm:$0xff] }
  0x4b   : > { %v964_v44 = vrot.slane %v962_v39, 5  ;;  %v1730_v7 = vsel %vm1064_vm7, %v1728_v41, %v1729_v45  ;;  %v1072_v50 = vrot.slane %v4751_v46, 5  ;;  %v775_v55 = vld [vmem:[#allocation2 + $0x48] sm:$0xf]  ;;  %v774_v56 = vld [vmem:[#allocation2 + $0x44] sm:$0xf] }
  0x4c   : > { %566 = vst.msk [vmem:[#allocation2 + $0x74] sm:$0xf] %vm555_vm6, %v4562_v33  ;;  %v957_v42 = vor.u32 %v956_v37, %v953_v36  ;;  %4629 = vmatpush3.bf16.msra.mxu0 %v4790_v40  ;;  %v708_v57 = vld [vmem:[#allocation2 + $0x7c] sm:$0x1]  ;;  %v1074_v59 = vrot.slane %v5271_v27, 5  ;;  %v1075_v60 = vrot.slane %v4752_v51, 5  ;;  %v5312_v61 = vcombine.low %v774_v56, %v775_v55 }
  0x4d   : > { %v965_v48 = vor.u32 %v964_v44, %v961_v43  ;;  %v1073_v58 = vsel %vm1064_vm7, %v1071_v49, %v1072_v50  ;;  %v709_v1 = vsel %vm5104_vm5, 0, %v708_v57  ;;  %v770_v8 = vld [vmem:[#allocation2 + $0x30] sm:$0x8]  ;;  %v773_v19 = vld [vmem:[#allocation2 + $0x40] sm:$0x8]  ;;  %v4329_v23 = vcombine.low %v775_v55, %v775_v55  ;;  %s6670_s12 = smov (!%p429_p10, %s5324_s12), 7 }
  0x4e   : > { %1427 = vrot.lane.b32.xlu1 %v1397_v52, %s4981_s17  ;;  %1016 = vrot.lane.b32.xlu0 %v949_v47, %s4984_s22  ;;  %v4792_v47 = vld [vmem:[%s6637_s3 + $0x18] sm:$0xff]   ;;  %710 = vst [vmem:[#allocation2 + $0x7c] sm:$0x1] %v709_v1  ;;  %v1290_v10 = vshrl.u32 %v5312_v61, 16  ;;  %v472_v15 = vld [vmem:[%s5092_s15 + $0x70] sm:$0xff]  ;;  %v4326_v17 = vcombine.low %v770_v8, %v771_v53  ;;  %v1293_v21 = vshll.u32 %v5312_v61, 16  ;;  %v4328_v32 = vcombine.low %v773_v19, %v774_v56 }
  0x4f   : > { %4630 = vmatprep.subr.bf16.mxu0 %v4792_v47  ;;  %v772_v52 = vld [vmem:[#allocation2 + $0x38] sm:$0xf]  ;;  %v4796_v24 = vld [vmem:[%s6637_s3 + $0x20] ss:$0 sps:$4 sm:$0xff]   ;;  %vm2338_vm9 = vcmask 1043456   ;;  %v486_v28 = vmax.f32 %v470_v13, 0.0 }
  0x50   : > { %4631 = vmatpush3.bf16.msra.mxu0 %v4792_v47  ;;  %v5306_v54 = vcombine.low %v771_v53, %v772_v52  ;;  %v4327_v16 = vcombine.low %v772_v52, %v772_v52  ;;  %v672_v27 = vld [vmem:[#allocation2 + $0x80] sm:$0x8]  ;;  %v711_v11 = vld [vmem:[#allocation2 + $0x8c] sm:$0x1]  ;;  %v488_v31 = vmax.f32 %v472_v15, 0.0  ;;  %v1292_v33 = vrot.slane %v1290_v10, 4 }
  0x51   : > { %v673_v29 = vsel %vm5062_vm2, 0, %v672_v27  ;;  %4680 = vmatprep.subr.msk.bf16.mxu0 %vm2338_vm9, %v4796_v24  ;;  %v1295_v36 = vrot.slane %v1293_v21, 5  ;;  %v4564_v37 = vpack.c.bf16 %v486_v28, %v486_v28  ;;  %v712_v20 = vsel %vm5104_vm5, 0, %v711_v11  ;;  %v675_v40 = vld [vmem:[#allocation2 + $0x90] sm:$0x8]  ;;  %s4250_s16 = sshll.u32 %s6670_s12, 1 }
  0x52   : > { %1551 = vrot.lane.b32.xlu1 %v4365_v3, %s4980_s10  ;;  %1345 = vrot.lane.b32.xlu0 %v1272_v12, %s4982_s20  ;;  %v1282_v62 = vshrl.u32 %v5306_v54, 16  ;;  %v1285_v2 = vshll.u32 %v5306_v54, 16  ;;  %v1076_v3 = vsel %vm1064_vm7, %v1074_v59, %v1075_v60  ;;  %674 = vst [vmem:[#allocation2 + $0x80] sm:$0x8] %v673_v29  ;;  %v4566_v39 = vpack.c.bf16 %v488_v31, %v488_v31  ;;  %p434_p11 = scmp.lt.s32.totalorder %s4250_s16, 15  ;;  %p616_p12 = scmp.eq.s32.totalorder %s4961_s24, 1 }
  0x53   : > { %568 = vst.msk [vmem:[#allocation2 + $0x84] sm:$0xf] %vm555_vm6, %v4564_v37  ;;  %713 = vst [vmem:[#allocation2 + $0x8c] sm:$0x1] %v712_v20  ;;  %v676_v44 = vsel %vm5062_vm2, 0, %v675_v40  ;;  %v1401_v46 = vrot.slane %v5306_v54, 5 }
  0x54   : > { %v1284_v12 = vrot.slane %v1282_v62, 4  ;;  %v1287_v22 = vrot.slane %v1285_v2, 5  ;;  %570 = vst.msk [vmem:[#allocation2 + $0x94] sm:$0xf] %vm555_vm6, %v4566_v39  ;;  %677 = vst [vmem:[#allocation2 + $0x90] sm:$0x8] %v676_v44 }
  0x55   : > { %v1404_v50 = vrot.slane %v5312_v61, 5  ;;  %v814_v52 = vld [vmem:[#allocation2 + $0x54] sm:$0xf]  ;;  %v812_v53 = vld [vmem:[#allocation2 + $0x48] sm:$0xf]  ;;  %s6672_s16 = smov (!%p434_p11, %s4250_s16), 15 }
  0x56   : > { %1677 = vrot.lane.b32.xlu1 %v1610_v30, %s4985_s13  ;;  %1675 = vrot.lane.b32.xlu0 %v1602_v25, %s4985_s13  ;;  %v487_v25 = vmax.f32 %v471_v9, 0.0  ;;  %v489_v30 = vmax.f32 %v473_v14, 0.0  ;;  %v1288_v43 = vor.u32 %v1287_v22, %v1284_v12  ;;  %v811_v54 = vld [vmem:[#allocation2 + $0x44] sm:$0xf]  ;;  %s4251_s8 = sshll.u32 %s6672_s16, 1  ;;  %v4367_v1 = vcombine.low %v812_v53, %v812_v53  ;;  %p4438_p13 = scmp.ne.s32.totalorder %s4961_s24, 0 }
  0x57   : > { %v5363_v55 = vcombine.low %v811_v54, %v812_v53  ;;  %v737_v60 = vld [vmem:[#allocation2 + $0x48] sm:$0xf]  ;;  %s438_s11 = sadd.s32 %s4251_s8, %s5072_s9  ;;  %v813_v9 = vld [vmem:[#allocation2 + $0x50] sm:$0x8]  ;;  %v678_v27 = vld [vmem:[#allocation2 + $0xa0] sm:$0x8] }
  0x58   : > { %v4565_v35 = vpack.c.bf16 %v487_v25, %v487_v25  ;;  %v4567_v38 = vpack.c.bf16 %v489_v30, %v489_v30  ;;  %s4253_s12 = sshll.u32 %s438_s11, 3  ;;  %v4368_v15 = vcombine.low %v813_v9, %v814_v52  ;;  %v4765_v19 = vld [vmem:[#allocation2 + $0x4c] ss:$0 sps:$4 sm:$0x11]   ;;  %v720_v37 = vld [vmem:[#allocation2 + $0xbc] sm:$0x1] }
  0x59   : > { %v1612_v61 = vshrl.u32 %v5363_v55, 16  ;;  %v1615_v62 = vshll.u32 %v5363_v55, 16  ;;  %s5382_s19 = scalar_lea.vmem %s6636_s2, %s4253_s12  ;;  %vm1795_vm11 = vcmask 64512   ;;  %vm1846_vm12 = vcmask 130048  }
  0x5a   : > { %1757 = vrot.lane.b32.xlu1 %v1727_v18, %s4986_s25  ;;  %1755 = vrot.lane.b32.xlu0 %v1725_v34, %s4986_s25  ;;  %v2340_v34 = vsel %vm2338_vm9, %v4796_v24, 0  ;;  %v4758_v18 = vld [vmem:[#allocation2 + $0x3c] ss:$0 sps:$4 sm:$0x11]   ;;  %569 = vst.msk [vmem:[#allocation2 + $0x88] sm:$0xf] %vm555_vm6, %v4565_v35 }
  0x5b   : > { %4633 = vmatpush3.bf16.msra.mxu0 %v2340_v34  ;;  %571 = vst.msk [vmem:[#allocation2 + $0x98] sm:$0xf] %vm555_vm6, %v4567_v38  ;;  %v1402_v47 = vrot.slane %v4758_v18, 5  ;;  %v1614_v12 = vrot.slane %v1612_v61, 4  ;;  %v1617_v13 = vrot.slane %v1615_v62, 5  ;;  %v609_v21 = vld [vmem:[%s5382_s19 + $0x8] sm:$0xff] }
  0x5c   : > { %v740_v24 = vld [vmem:[#allocation2 + $0x58] sm:$0xf]  ;;  %v608_v25 = vld [vmem:[%s5382_s19] sm:$0xff]  ;;  %s617_s16 = scalar_select %p616_p12, 1, 0  ;;  %v613_v11 = vmax.f32 %v609_v21, 0.0 }
  0x5d   : > { %v1618_v28 = vor.u32 %v1617_v13, %v1614_v12  ;;  %v612_v30 = vmax.f32 %v608_v25, 0.0  ;;  %v679_v34 = vsel %vm5062_vm2, 0, %v678_v27  ;;  %v1731_v35 = vrot.slane %v5363_v55, 5  ;;  %v611_v53 = vld [vmem:[%s5382_s19 + $0x18] sm:$0xff]  ;;  %v781_v13 = vld [vmem:[#allocation2 + $0x68] sm:$0xf] }
  0x5e   : > { %1759 = vrot.lane.b32.xlu1 %v1728_v41, %s4986_s25  ;;  %1018 = vrot.lane.b32.xlu0 %v957_v42, %s4984_s22  ;;  %v714_v41 = vld [vmem:[#allocation2 + $0x9c] sm:$0x1]  ;;  %v1296_v42 = vor.u32 %v1295_v36, %v1292_v33  ;;  %v618_v33 = vstv %s617_s16  ;;  %v1732_v36 = vrot.slane %v4765_v19, 5  ;;  %680 = vst [vmem:[#allocation2 + $0xa0] sm:$0x8] %v679_v34  ;;  %v4333_v34 = vcombine.low %v781_v13, %v781_v13 }
  0x5f   : > { %v715_v45 = vsel %vm5104_vm5, 0, %v714_v41  ;;  %vm5400_vm10 = vcmp.eq.s32.totalorder %v618_v33, 1  ;;  %v776_v25 = vld [vmem:[#allocation2 + $0x50] sm:$0x8]  ;;  %vm1887_vm13 = vcmask 195584   ;;  %vm1928_vm14 = vcmask 261120  }
  0x60   : > { %716 = vst [vmem:[#allocation2 + $0x9c] sm:$0x1] %v715_v45  ;;  %v621_v18 = vsel %vm5400_vm10, 0.0, %v613_v11  ;;  %v620_v20 = vsel %vm5400_vm10, 0.0, %v612_v30  ;;  %v1733_v44 = vsel %vm1064_vm7, %v1731_v35, %v1732_v36  ;;  %v779_v30 = vld [vmem:[#allocation2 + $0x60] sm:$0x8] }
  0x61   : > { %v4768_v45 = vld [vmem:[#allocation2 + $0x5c] ss:$0 sps:$4 sm:$0x11]   ;;  %vm1959_vm15 = vcmask 326656   ;;  %vm2000_vm0 = vcmask 392192   ;;  %vm2041_vm1 = vcmask 457728  }
  0x62   : > { %1020 = vrot.lane.b32.xlu1 %v965_v48, %s4984_s22  ;;  %1761 = vrot.lane.b32.xlu0 %v1730_v7, %s4986_s25  ;;  %v4759_v48 = vld [vmem:[#allocation2 + $0x4c] ss:$0 sps:$4 sm:$0x11]   ;;  %v1403_v7 = vsel %vm1064_vm7, %v1401_v46, %v1402_v47  ;;  %vm2113_vm3 = vsmask.f32 4352  ;;  %vm2307_vm4 = vcmask 588800  }
  0x63   : > { %v1405_v51 = vrot.slane %v4759_v48, 5  ;;  %v717_v47 = vld [vmem:[#allocation2 + $0xac] sm:$0x1] }
  0x65   : > { %v1406_v57 = vsel %vm1064_vm7, %v1404_v50, %v1405_v51  ;;  %v1735_v51 = vrot.slane %v4768_v45, 5 }
  0x66   : > { %1105 = vrot.lane.b32.xlu1 %v1073_v58, %s4983_s21  ;;  %1103 = vrot.lane.b32.xlu0 %v1071_v49, %s4983_s21  ;;  %v815_v49 = vld [vmem:[#allocation2 + $0x58] sm:$0xf]  ;;  %v810_v58 = vld [vmem:[#allocation2 + $0x40] sm:$0x8] }
  0x67   : > { %v5367_v56 = vcombine.low %v814_v52, %v815_v49  ;;  %v4366_v2 = vcombine.low %v810_v58, %v811_v54  ;;  %v4369_v14 = vcombine.low %v815_v49, %v815_v49  ;;  %v4769_v52 = vld [vmem:[#allocation2 + $0x4c] ss:$0 sps:$4 sm:$0x11]   ;;  %v610_v54 = vld [vmem:[%s5382_s19 + $0x10] sm:$0xff]  ;;  %v615_v58 = vmax.f32 %v611_v53, 0.0 }
  0x68   : > { %v1078_v61 = vrot.slane %v4769_v52, 5  ;;  %v820_v52 = vld [vmem:[#allocation2 + $0x74] sm:$0xf]  ;;  %v818_v53 = vld [vmem:[#allocation2 + $0x68] sm:$0xf] }
  0x69   : > { %v1623_v8 = vshll.u32 %v5367_v56, 16  ;;  %v1734_v48 = vrot.slane %v5367_v56, 5  ;;  %v623_v62 = vsel %vm5400_vm10, 0.0, %v615_v58 }
  0x6a   : > { %1109 = vrot.lane.b32.xlu1 %v1076_v3, %s4983_s21  ;;  %1107 = vrot.lane.b32.xlu0 %v1074_v59, %s4983_s21  ;;  %v736_v59 = vld [vmem:[#allocation2 + $0x44] sm:$0xf]  ;;  %v1620_v3 = vshrl.u32 %v5367_v56, 16 }
  0x6b   : > { %v5377_v10 = vcombine.low %v736_v59, %v737_v60  ;;  %v614_v59 = vmax.f32 %v610_v54, 0.0  ;;  %v1736_v56 = vsel %vm1064_vm7, %v1734_v48, %v1735_v51  ;;  %v821_v51 = vld [vmem:[#allocation2 + $0x78] sm:$0xf]  ;;  %v817_v54 = vld [vmem:[#allocation2 + $0x64] sm:$0xf] }
  0x6d   : > { %v967_v22 = vshrl.u32 %v5377_v10, 16  ;;  %v970_v29 = vshll.u32 %v5377_v10, 16  ;;  %v1077_v60 = vrot.slane %v5377_v10, 5  ;;  %v780_v10 = vld [vmem:[#allocation2 + $0x64] sm:$0xf] }
  0x6e   : > { %1225 = vrot.lane.b32.xlu1 %v4327_v16, %s4979_s23  ;;  %1223 = vrot.lane.b32.xlu0 %v4326_v17, %s4979_s23  ;;  %v1622_v16 = vrot.slane %v1620_v3, 4  ;;  %v1625_v17 = vrot.slane %v1623_v8, 5  ;;  %v4575_v8 = vpack.c.bf16 %v623_v62, %v623_v62 }
  0x6f   : > { %v969_v38 = vrot.slane %v967_v22, 4  ;;  %v972_v39 = vrot.slane %v970_v29, 5  ;;  %v1079_v12 = vsel %vm1064_vm7, %v1077_v60, %v1078_v61  ;;  %v4371_v61 = vcombine.low %v818_v53, %v818_v53 }
  0x70   : > { %v1626_v31 = vor.u32 %v1625_v17, %v1622_v16  ;;  %v777_v16 = vld [vmem:[#allocation2 + $0x54] sm:$0xf]  ;;  %644 = vst.msk [vmem:[#allocation2 + $0xb8] sm:$0xf] %vm555_vm6, %v4575_v8 }
  0x71   : > { %v4330_v0 = vcombine.low %v776_v25, %v777_v16 }
  0x72   : > { %1229 = vrot.lane.b32.xlu1 %v4329_v23, %s4979_s23  ;;  %1227 = vrot.lane.b32.xlu0 %v4328_v32, %s4979_s23  ;;  %v739_v23 = vld [vmem:[#allocation2 + $0x54] sm:$0xf] }
  0x73   : > { %v5395_v32 = vcombine.low %v739_v23, %v740_v24  ;;  %v4347_v23 = vcombine.low %v780_v10, %v781_v13  ;;  %v743_v13 = vld [vmem:[#allocation2 + $0x68] sm:$0xf] }
  0x75   : > { %v975_v40 = vshrl.u32 %v5395_v32, 16  ;;  %v978_v41 = vshll.u32 %v5395_v32, 16 }
  0x76   : > { %1351 = vrot.lane.b32.xlu1 %v1296_v42, %s4982_s20  ;;  %1349 = vrot.lane.b32.xlu0 %v1288_v43, %s4982_s20  ;;  %v4573_v42 = vpack.c.bf16 %v621_v18, %v621_v18  ;;  %v4572_v43 = vpack.c.bf16 %v620_v20, %v620_v20  ;;  %v721_v20 = vsel %vm5104_vm5, 0, %v720_v37 }
  0x77   : > { %v977_v49 = vrot.slane %v975_v40, 4  ;;  %v4776_v40 = vld [vmem:[#allocation2 + $0x5c] ss:$0 sps:$4 sm:$0x11]   ;;  %722 = vst [vmem:[#allocation2 + $0xbc] sm:$0x1] %v721_v20 }
  0x78   : > { %642 = vst.msk [vmem:[#allocation2 + $0xa8] sm:$0xf] %vm555_vm6, %v4573_v42  ;;  %641 = vst.msk [vmem:[#allocation2 + $0xa4] sm:$0xf] %vm555_vm6, %v4572_v43 }
  0x7a   : > { %1435 = vrot.lane.b32.xlu1 %v1403_v7, %s4981_s17  ;;  %1433 = vrot.lane.b32.xlu0 %v1401_v46, %s4981_s17  ;;  %v973_v46 = vor.u32 %v972_v39, %v969_v38  ;;  %v980_v7 = vrot.slane %v978_v41, 5 }
  0x7c   : > { %v981_v55 = vor.u32 %v980_v7, %v977_v49  ;;  %v1410_v7 = vrot.slane %v4347_v23, 5 }
  0x7e   : > { %1439 = vrot.lane.b32.xlu1 %v1406_v57, %s4981_s17  ;;  %1437 = vrot.lane.b32.xlu0 %v1404_v50, %s4981_s17  ;;  %v718_v50 = vsel %vm5104_vm5, 0, %v717_v47  ;;  %v4770_v57 = vld [vmem:[#allocation2 + $0x5c] ss:$0 sps:$4 sm:$0x11]  }
  0x7f   : > { %719 = vst [vmem:[#allocation2 + $0xac] sm:$0x1] %v718_v50  ;;  %v1081_v3 = vrot.slane %v4770_v57, 5  ;;  %v4777_v47 = vld [vmem:[#allocation2 + $0x6c] ss:$0 sps:$4 sm:$0x11]   ;;  %v5472_v57 = vcombine.low %v820_v52, %v821_v51 }
  0x80   : > { %v1411_v50 = vrot.slane %v4777_v47, 5 }
  0x81   : > { %v1639_v8 = vshll.u32 %v5472_v57, 16 }
  0x82   : > { %1555 = vrot.lane.b32.xlu1 %v4367_v1, %s4980_s10  ;;  %1553 = vrot.lane.b32.xlu0 %v4366_v2, %s4980_s10  ;;  %v622_v1 = vsel %vm5400_vm10, 0.0, %v614_v59  ;;  %v1080_v2 = vrot.slane %v5395_v32, 5  ;;  %v1309_v32 = vshll.u32 %v4347_v23, 16  ;;  %v1412_v58 = vsel %vm1064_vm7, %v1410_v7, %v1411_v50  ;;  %v816_v59 = vld [vmem:[#allocation2 + $0x60] sm:$0x8] }
  0x83   : > { %v4574_v9 = vpack.c.bf16 %v622_v1, %v622_v1  ;;  %v4370_v1 = vcombine.low %v816_v59, %v817_v54  ;;  %v4285_v50 = vcombine.low %v5206_v4, %v5206_v4  ;;  %v1740_v4 = vrot.slane %v5472_v57, 5 }
  0x84   : > { %v1082_v24 = vsel %vm1064_vm7, %v1080_v2, %v1081_v3  ;;  %v1311_v39 = vrot.slane %v1309_v32, 5  ;;  %v1636_v3 = vshrl.u32 %v5472_v57, 16 }
  0x85   : > { %643 = vst.msk [vmem:[#allocation2 + $0xb4] sm:$0xf] %vm555_vm6, %v4574_v9 }
  0x86   : > { %1559 = vrot.lane.b32.xlu1 %v4369_v14, %s4980_s10  ;;  %1557 = vrot.lane.b32.xlu0 %v4368_v15, %s4980_s10  ;;  %v681_v14 = vld [vmem:[#allocation2 + $0xb0] sm:$0x8]  ;;  %v778_v15 = vld [vmem:[#allocation2 + $0x58] sm:$0xf]  ;;  %v1638_v25 = vrot.slane %v1636_v3, 4 }
  0x87   : > { %v682_v17 = vsel %vm5062_vm2, 0, %v681_v14  ;;  %v4346_v22 = vcombine.low %v777_v16, %v778_v15  ;;  %v4331_v27 = vcombine.low %v778_v15, %v778_v15  ;;  %v4373_v15 = vcombine.low %v821_v51, %v821_v51 }
  0x88   : > { %683 = vst [vmem:[#allocation2 + $0xb0] sm:$0x8] %v682_v17  ;;  %vm2072_vm2 = vcmask 523264  }
  0x89   : > { %v1301_v33 = vshll.u32 %v4346_v22, 16  ;;  %v1407_v45 = vrot.slane %v4346_v22, 5 }
  0x8a   : > { %1681 = vrot.lane.b32.xlu1 %v1626_v31, %s4985_s13  ;;  %1679 = vrot.lane.b32.xlu0 %v1618_v28, %s4985_s13  ;;  %v1298_v28 = vshrl.u32 %v4346_v22, 16  ;;  %v1306_v31 = vshrl.u32 %v4347_v23, 16  ;;  %v745_v22 = vld [vmem:[#allocation2 + $0x74] sm:$0xf]  ;;  %v746_v23 = vld [vmem:[#allocation2 + $0x78] sm:$0xf] }
  0x8b   : > { %v1303_v18 = vrot.slane %v1301_v33, 5  ;;  %v5489_v33 = vcombine.low %v745_v22, %v746_v23 }
  0x8c   : > { %v1300_v36 = vrot.slane %v1298_v28, 4  ;;  %v1308_v38 = vrot.slane %v1306_v31, 4 }
  0x8e   : > { %1765 = vrot.lane.b32.xlu1 %v1733_v44, %s4986_s25  ;;  %1763 = vrot.lane.b32.xlu0 %v1731_v35, %s4986_s25  ;;  %v4332_v35 = vcombine.low %v779_v30, %v780_v10  ;;  %v1312_v43 = vor.u32 %v1311_v39, %v1308_v38  ;;  %v1304_v44 = vor.u32 %v1303_v18, %v1300_v36  ;;  %v4783_v30 = vld [vmem:[#allocation2 + $0x6c] ss:$0 sps:$4 sm:$0x11]   ;;  %v726_v38 = vld [vmem:[#allocation2 + $0x10] sm:$0x8] }
  0x92   : > { %1767 = vrot.lane.b32.xlu1 %v1734_v48, %s4986_s25  ;;  %1022 = vrot.lane.b32.xlu0 %v973_v46, %s4984_s22  ;;  %v1408_v46 = vrot.slane %v4776_v40, 5  ;;  %v1738_v40 = vrot.slane %v4783_v30, 5 }
  0x94   : > { %v1409_v49 = vsel %vm1064_vm7, %v1407_v45, %v1408_v46 }
  0x96   : > { %1024 = vrot.lane.b32.xlu1 %v981_v55, %s4984_s22  ;;  %1769 = vrot.lane.b32.xlu0 %v1736_v56, %s4986_s25  ;;  %v5468_v55 = vcombine.low %v817_v54, %v818_v53 }
  0x98   : > { %v1628_v62 = vshrl.u32 %v5468_v55, 16  ;;  %v1631_v9 = vshll.u32 %v5468_v55, 16  ;;  %v1737_v20 = vrot.slane %v5468_v55, 5 }
  0x9a   : > { %v5438_v19 = vpop.permute.xlu1 %1221  ;;  %v5440_v21 = vpop.permute.xlu0 %1219  ;;  %1113 = vrot.lane.b32.xlu1 %v1079_v12, %s4983_s21  ;;  %1111 = vrot.lane.b32.xlu0 %v1077_v60, %s4983_s21  ;;  %v742_v12 = vld [vmem:[#allocation2 + $0x64] sm:$0xf]  ;;  %v1630_v17 = vrot.slane %v1628_v62, 4  ;;  %v1633_v28 = vrot.slane %v1631_v9, 5  ;;  %v1739_v51 = vsel %vm1064_vm7, %v1737_v20, %v1738_v40 }
  0x9c   : > { %v1634_v37 = vor.u32 %v1633_v28, %v1630_v17  ;;  %v5538_v28 = vld [vmem:[#allocation2 + $0x74] sm:$0xf] }
  0x9e   : > { %1117 = vrot.lane.b32.xlu1 %v1082_v24, %s4983_s21  ;;  %1115 = vrot.lane.b32.xlu0 %v1080_v2, %s4983_s21  ;;  %v5447_v29 = vpop.permute.xlu1 %1547  ;;  %v5449_v11 = vpop.permute.xlu0 %1545  ;;  %v819_v2 = vld [vmem:[#allocation2 + $0x70] sm:$0x8]  ;;  %v723_v24 = vld [vmem:[#allocation2] sm:$0x8] }
  0x9f   : > { %v4372_v16 = vcombine.low %v819_v2, %v820_v52  ;;  %v4787_v52 = vld [vmem:[#allocation2 + $0x7c] ss:$0 sps:$4 sm:$0x11]   ;;  %v4789_v2 = vld [vmem:[#allocation2 + $0x6c] ss:$0 sps:$4 sm:$0x11]  }
  0xa2   : > { %1233 = vrot.lane.b32.xlu1 %v4331_v27, %s4979_s23  ;;  %1231 = vrot.lane.b32.xlu0 %v4330_v0, %s4979_s23  ;;  %v5455_v41 = vpop.permute.xlu1 %1431  ;;  %v5457_v42 = vpop.permute.xlu0 %1549  ;;  %v1641_v27 = vrot.slane %v1639_v8, 5  ;;  %v5487_v0 = vcombine.low %v742_v12, %v743_v13  ;;  %v1741_v8 = vrot.slane %v4787_v52, 5 }
  0xa4   : > { %v1642_v36 = vor.u32 %v1641_v27, %v1638_v25  ;;  %v983_v39 = vshrl.u32 %v5487_v0, 16  ;;  %v986_v18 = vshll.u32 %v5487_v0, 16  ;;  %v1083_v17 = vrot.slane %v5487_v0, 5  ;;  %v4791_v27 = vld [vmem:[#allocation2 + $0x7c] ss:$0 sps:$4 sm:$0x11]  }
  0xa5   : > { %v1742_v25 = vsel %vm1064_vm7, %v1740_v4, %v1741_v8 }
  0xa6   : > { %1237 = vrot.lane.b32.xlu1 %v4333_v34, %s4979_s23  ;;  %1235 = vrot.lane.b32.xlu0 %v4332_v35, %s4979_s23  ;;  %v5463_v26 = vpop.permute.xlu1 %1347  ;;  %v5465_v48 = vpop.permute.xlu0 %1429  ;;  %v4283_v34 = vcombine.low %v5210_v6, %v5210_v6  ;;  %v4282_v35 = vcombine.low %v723_v24, %v5208_v5  ;;  %v991_v6 = vshrl.u32 %v5489_v33, 16  ;;  %v4284_v5 = vcombine.low %v726_v38, %v5204_v63  ;;  %v5533_v24 = vld [vmem:[#allocation2 + $0x78] sm:$0xf] }
  0xa7   : > { %v1086_v38 = vrot.slane %v5489_v33, 5 }
  0xa8   : > { %v993_v54 = vrot.slane %v991_v6, 4 }
  0xaa   : > { %1355 = vrot.lane.b32.xlu1 %v1312_v43, %s4982_s20  ;;  %1353 = vrot.lane.b32.xlu0 %v1304_v44, %s4982_s20 }
  0xae   : > { %1443 = vrot.lane.b32.xlu1 %v1409_v49, %s4981_s17  ;;  %1441 = vrot.lane.b32.xlu0 %v1407_v45, %s4981_s17  ;;  %v994_v45 = vshll.u32 %v5489_v33, 16  ;;  %v985_v49 = vrot.slane %v983_v39, 4  ;;  %v5558_v39 = vld [vmem:[#allocation2 + $0x84] sm:$0xf] }
  0xb0   : > { %v5475_v56 = vpop.permute.xlu1 %1217  ;;  %v5477_v60 = vpop.permute.xlu0 %1215 }
  0xb2   : > { %1447 = vrot.lane.b32.xlu1 %v1412_v58, %s4981_s17  ;;  %1445 = vrot.lane.b32.xlu0 %v1410_v7, %s4981_s17  ;;  %v988_v7 = vrot.slane %v986_v18, 5 }
  0xb4   : > { %v1100_v10 = vpop.permute.xlu0 %1099  ;;  %v1096_v14 = vpop.permute.xlu1 %1095 }
  0xb6   : > { %1563 = vrot.lane.b32.xlu1 %v4371_v61, %s4980_s10  ;;  %1561 = vrot.lane.b32.xlu0 %v4370_v1, %s4980_s10  ;;  %v996_v61 = vrot.slane %v994_v45, 5  ;;  %v989_v1 = vor.u32 %v988_v7, %v985_v49  ;;  %v782_v7 = vld [vmem:[#allocation2 + $0x70] sm:$0x8] }
  0xb8   : > { %v1426_v31 = vpop.permute.xlu0 %1425  ;;  %v1098_v32 = vpop.permute.xlu1 %1097 }
  0xba   : > { %1567 = vrot.lane.b32.xlu1 %v4373_v15, %s4980_s10  ;;  %1565 = vrot.lane.b32.xlu0 %v4372_v16, %s4980_s10  ;;  %v997_v16 = vor.u32 %v996_v61, %v993_v54 }
  0xbc   : > { %v1102_v43 = vpop.permute.xlu1 %1101  ;;  %v1015_v44 = vpop.permute.xlu0 %1014 }
  0xbd   : > { %v1798_v46 = vsel %vm1795_vm11, %v4282_v35, %v1015_v44  ;;  %v1800_v47 = vsel %vm1795_vm11, %v4283_v34, %v1015_v44 }
  0xbe   : > { %1685 = vrot.lane.b32.xlu1 %v1642_v36, %s4985_s13  ;;  %1683 = vrot.lane.b32.xlu0 %v1634_v37, %s4985_s13  ;;  %v1848_v55 = vsel %vm1846_vm12, %v1798_v46, %v1096_v14  ;;  %v1850_v58 = vsel %vm1846_vm12, %v1800_v47, %v1098_v32 }
  0xbf   : > { %v1891_v13 = vsel %vm1887_vm13, %v1850_v58, %v5475_v56  ;;  %v1889_v14 = vsel %vm1887_vm13, %v1848_v55, %v5477_v60  ;;  %v1084_v56 = vrot.slane %v4789_v2, 5 }
  0xc0   : > { %v1428_v53 = vpop.permute.xlu1 %1427  ;;  %v1017_v63 = vpop.permute.xlu0 %1016 }
  0xc1   : > { %v1803_v59 = vsel %vm1795_vm11, %v4284_v5, %v1017_v63  ;;  %v1805_v3 = vsel %vm1795_vm11, %v4285_v50, %v1017_v63  ;;  %v1085_v37 = vsel %vm1064_vm7, %v1083_v17, %v1084_v56 }
  0xc2   : > { %v1852_v62 = vsel %vm1846_vm12, %v1803_v59, %v1100_v10  ;;  %1773 = vrot.lane.b32.xlu1 %v1739_v51, %s4986_s25  ;;  %1771 = vrot.lane.b32.xlu0 %v1737_v20, %s4986_s25  ;;  %v1854_v22 = vsel %vm1846_vm12, %v1805_v3, %v1102_v43 }
  0xc3   : > { %v1893_v9 = vsel %vm1887_vm13, %v1852_v62, %v5440_v21  ;;  %v1895_v32 = vsel %vm1887_vm13, %v1854_v22, %v5438_v19  ;;  %v5556_v19 = vld [vmem:[#allocation2 + $0x88] sm:$0xf]  ;;  %v4334_v62 = vcombine.low %v782_v7, %v5538_v28 }
  0xc4   : > { %v5519_v12 = vpop.permute.xlu1 %1551  ;;  %v1346_v10 = vpop.permute.xlu0 %1345  ;;  %v1933_v60 = vsel %vm1928_vm14, %v1893_v9, %v5463_v26  ;;  %v5573_v45 = vcombine.low %v5558_v39, %v5556_v19  ;;  %v785_v9 = vld [vmem:[#allocation2 + $0x80] sm:$0x8] }
  0xc5   : > { %v1930_v57 = vsel %vm1928_vm14, %v1889_v14, %v1346_v10  ;;  %v1931_v15 = vsel %vm1928_vm14, %v1891_v13, %v1346_v10  ;;  %v1965_v36 = vsel %vm1959_vm15, %v1933_v60, %v5465_v48  ;;  %v1934_v48 = vsel %vm1928_vm14, %v1895_v32, %v5463_v26 }
  0xc6   : > { %v1961_v21 = vsel %vm1959_vm15, %v1930_v57, %v1426_v31  ;;  %v1963_v23 = vsel %vm1959_vm15, %v1931_v15, %v1428_v53  ;;  %1775 = vrot.lane.b32.xlu1 %v1740_v4, %s4986_s25  ;;  %1026 = vrot.lane.b32.xlu0 %v989_v1, %s4984_s22  ;;  %v5542_v31 = vcombine.low %v5538_v28, %v5533_v24  ;;  %v1322_v4 = vshrl.u32 %v5573_v45, 16  ;;  %v4799_v28 = vld [vmem:[#allocation2 + $0x7c] ss:$0 sps:$4 sm:$0x11]  }
  0xc7   : > { %v2004_v34 = vsel %vm2000_vm0, %v1963_v23, %v5447_v29  ;;  %v2002_v35 = vsel %vm2000_vm0, %v1961_v21, %v5449_v11  ;;  %v1087_v29 = vrot.slane %v4791_v27, 5  ;;  %v4335_v11 = vcombine.low %v5533_v24, %v5533_v24 }
  0xc8   : > { %v1678_v0 = vpop.permute.xlu1 %1677  ;;  %v1676_v30 = vpop.permute.xlu0 %1675  ;;  %v1314_v33 = vshrl.u32 %v5542_v31, 16  ;;  %v2006_v44 = vsel %vm2000_vm0, %v1965_v36, %v5457_v42  ;;  %v1967_v42 = vsel %vm1959_vm15, %v1934_v48, %v5455_v41  ;;  %v1317_v52 = vshll.u32 %v5542_v31, 16 }
  0xc9   : > { %v2043_v18 = vsel %vm2041_vm1, %v2002_v35, %v1676_v30  ;;  %v2044_v20 = vsel %vm2041_vm1, %v2004_v34, %v1676_v30  ;;  %v2046_v50 = vsel %vm2041_vm1, %v2006_v44, %v1678_v0  ;;  %v1088_v51 = vsel %vm1064_vm7, %v1086_v38, %v1087_v29  ;;  %v4800_v29 = vld [vmem:[#allocation2 + $0x8c] ss:$0 sps:$4 sm:$0x11]  }
  0xca   : > { %1028 = vrot.lane.b32.xlu1 %v997_v16, %s4984_s22  ;;  %1777 = vrot.lane.b32.xlu0 %v1742_v25, %s4986_s25  ;;  %v1325_v41 = vshll.u32 %v5573_v45, 16  ;;  %v2008_v13 = vsel %vm2000_vm0, %v1967_v42, %v5519_v12  ;;  %v1316_v10 = vrot.slane %v1314_v33, 4  ;;  %v1319_v22 = vrot.slane %v1317_v52, 5  ;;  %v826_v33 = vld [vmem:[#allocation2 + $0x94] sm:$0xf] }
  0xcb   : > { %v2047_v14 = vsel %vm2041_vm1, %v2008_v13, %v1678_v0  ;;  %v4336_v23 = vcombine.low %v785_v9, %v5558_v39  ;;  %v1324_v56 = vrot.slane %v1322_v4, 4  ;;  %v1414_v39 = vrot.slane %v4799_v28, 5 }
  0xcc   : > { %v1758_v40 = vpop.permute.xlu1 %1757  ;;  %v1756_v43 = vpop.permute.xlu0 %1755  ;;  %v1327_v12 = vrot.slane %v1325_v41, 5  ;;  %v1320_v35 = vor.u32 %v1319_v22, %v1316_v10 }
  0xcd   : > { %v2076_v6 = vsel %vm2072_vm2, %v2044_v20, %v1758_v40  ;;  %v2074_v5 = vsel %vm2072_vm2, %v2043_v18, %v1756_v43  ;;  %v1416_v40 = vrot.slane %v5573_v45, 5  ;;  %v1417_v43 = vrot.slane %v4800_v29, 5  ;;  %v822_v45 = vld [vmem:[#allocation2 + $0x80] sm:$0x8]  ;;  %v4826_v29 = vld [vmem:[#allocation2 + $0x24] sm:$0xf] }
  0xce   : > { %v2121_v26 = vshrl.u32 %v2076_v6, 16  ;;  %v2124_v46 = vshll.u32 %v2076_v6, 16  ;;  %v2114_v47 = vshrl.u32 %v2074_v5, 16  ;;  %v2117_v49 = vshll.u32 %v2074_v5, 16  ;;  %1121 = vrot.lane.b32.xlu1 %v1085_v37, %s4983_s21  ;;  %1119 = vrot.lane.b32.xlu0 %v1083_v17, %s4983_s21  ;;  %v824_v5 = vld [vmem:[#allocation2 + $0x88] sm:$0xf] }
  0xcf   : > { %v4337_v17 = vcombine.low %v5556_v19, %v5556_v19  ;;  %v1413_v19 = vrot.slane %v5542_v31, 5  ;;  %v827_v31 = vld [vmem:[#allocation2 + $0x98] sm:$0xf] }
  0xd0   : > { %v2123_v53 = vrot.slane %v2121_v26, 3  ;;  %v2126_v63 = vrot.slane %v2124_v46, 4  ;;  %v2116_v54 = vrot.slane %v2114_v47, 3  ;;  %v2119_v55 = vrot.slane %v2117_v49, 4  ;;  %v1760_v58 = vpop.permute.xlu1 %1759  ;;  %v5582_v59 = vpop.permute.xlu0 %1018  ;;  %v823_v26 = vld [vmem:[#allocation2 + $0x84] sm:$0xf] }
  0xd1   : > { %v2078_v61 = vsel %vm2072_vm2, %v2046_v50, %v1760_v58  ;;  %v1415_v20 = vsel %vm1064_vm7, %v1413_v19, %v1414_v39  ;;  %v5624_v46 = vcombine.low %v823_v26, %v824_v5  ;;  %v5628_v47 = vcombine.low %v826_v33, %v827_v31  ;;  %v5641_v58 = vld [vmem:[#allocation2 + $0x84] sm:$0xf] }
  0xd2   : > { %v2129_v1 = vshrl.u32 %v2078_v61, 16  ;;  %v2132_v2 = vshll.u32 %v2078_v61, 16  ;;  %1125 = vrot.lane.b32.xlu1 %v1088_v51, %s4983_s21  ;;  %1123 = vrot.lane.b32.xlu0 %v1086_v38, %s4983_s21  ;;  %v2120_v3 = vor.u32 %v2119_v55, %v2116_v54  ;;  %v2127_v8 = vor.u32 %v2126_v63, %v2123_v53  ;;  %v825_v53 = vld [vmem:[#allocation2 + $0x90] sm:$0x8]  ;;  %v5643_v61 = vld [vmem:[#allocation2 + $0x88] sm:$0xf] }
  0xd3   : > { %v1328_v38 = vor.u32 %v1327_v12, %v1324_v56  ;;  %v1418_v49 = vsel %vm1064_vm7, %v1416_v40, %v1417_v43  ;;  %v4375_v50 = vcombine.low %v824_v5, %v824_v5  ;;  %v1644_v51 = vshrl.u32 %v5624_v46, 16  ;;  %v732_v5 = vld [vmem:[#allocation2 + $0x30] sm:$0x8] }
  0xd4   : > { %v5593_v57 = vpop.permute.xlu1 %1020  ;;  %v1762_v15 = vpop.permute.xlu0 %1761  ;;  %v2128_v16 = vsel %vm2113_vm3, %v2120_v3, %v2127_v8  ;;  %v2131_v24 = vrot.slane %v2129_v1, 3  ;;  %v2134_v60 = vrot.slane %v2132_v2, 4  ;;  %v4374_v52 = vcombine.low %v822_v45, %v823_v26  ;;  %v5649_v3 = vld [vmem:[#allocation2 + $0x94] sm:$0xf] }
  0xd5   : > { %v2080_v21 = vsel %vm2072_vm2, %v2047_v14, %v1762_v15  ;;  %4634 = vmatprep.mubr.msk.bf16.mxu0 %vm2307_vm4, %v2128_v16  ;;  %v1652_v63 = vshrl.u32 %v5628_v47, 16  ;;  %v1655_v54 = vshll.u32 %v5628_v47, 16  ;;  %v1647_v55 = vshll.u32 %v5624_v46, 16  ;;  %v5657_v14 = vld [vmem:[#allocation2 + $0x98] sm:$0xf] }
  0xd6   : > { %v2136_v25 = vshrl.u32 %v2080_v21, 16  ;;  %v2139_v27 = vshll.u32 %v2080_v21, 16  ;;  %1241 = vrot.lane.b32.xlu1 %v4335_v11, %s4979_s23  ;;  %1239 = vrot.lane.b32.xlu0 %v4334_v62, %s4979_s23  ;;  %v2135_v36 = vor.u32 %v2134_v60, %v2131_v24  ;;  %v4377_v41 = vcombine.low %v827_v31, %v827_v31  ;;  %v4806_v15 = vld [vmem:[#allocation2 + $0x8c] ss:$0 sps:$4 sm:$0x11]  }
  0xd7   : > { %v4376_v1 = vcombine.low %v825_v53, %v826_v33  ;;  %v1646_v2 = vrot.slane %v1644_v51, 4  ;;  %v1654_v8 = vrot.slane %v1652_v63, 4  ;;  %v1657_v9 = vrot.slane %v1655_v54, 5  ;;  %v4828_v63 = vld [vmem:[#allocation2 + $0x34] sm:$0xf] }
  0xd8   : > { %v2138_v0 = vrot.slane %v2136_v25, 3  ;;  %v2141_v30 = vrot.slane %v2139_v27, 4  ;;  %v5603_v32 = vpop.permute.xlu1 %1105  ;;  %v5605_v34 = vpop.permute.xlu0 %1103  ;;  %v1649_v13 = vrot.slane %v1647_v55, 5  ;;  %v5655_v10 = vcombine.low %v5641_v58, %v5643_v61  ;;  %v729_v25 = vld [vmem:[#allocation2 + $0x20] sm:$0x8] }
  0xd9   : > { %v5665_v22 = vcombine.low %v5649_v3, %v5657_v14  ;;  %v1658_v21 = vor.u32 %v1657_v9, %v1654_v8  ;;  %v1743_v24 = vrot.slane %v5624_v46, 5  ;;  %v1744_v60 = vrot.slane %v4806_v15, 5  ;;  %v5692_v8 = vld [vmem:[#allocation2 + $0x94] sm:$0xf]  ;;  %v4829_v9 = vld [vmem:[#allocation2 + $0x38] sm:$0xf] }
  0xda   : > { %v2142_v37 = vor.u32 %v2141_v30, %v2138_v0  ;;  %1245 = vrot.lane.b32.xlu1 %v4337_v17, %s4979_s23  ;;  %1243 = vrot.lane.b32.xlu0 %v4336_v23, %s4979_s23  ;;  %v1650_v23 = vor.u32 %v1649_v13, %v1646_v2  ;;  %v999_v56 = vshrl.u32 %v5655_v10, 16  ;;  %v1002_v12 = vshll.u32 %v5655_v10, 16  ;;  %v4809_v0 = vld [vmem:[#allocation2 + $0x9c] ss:$0 sps:$4 sm:$0x11]  }
  0xdb   : > { %v1007_v30 = vshrl.u32 %v5665_v22, 16  ;;  %v1745_v39 = vsel %vm1064_vm7, %v1743_v24, %v1744_v60  ;;  %v1089_v33 = vrot.slane %v5655_v10, 5  ;;  %v4288_v54 = vcombine.low %v732_v5, %v4828_v63  ;;  %v5690_v2 = vld [vmem:[#allocation2 + $0x90] sm:$0x8]  ;;  %v5709_v60 = vld [vmem:[#allocation2 + $0xa4] sm:$0xf] }
  0xdc   : > { %v5610_v11 = vpop.permute.xlu1 %1109  ;;  %v5612_v48 = vpop.permute.xlu0 %1107  ;;  %v2143_v18 = vsel %vm2113_vm3, %v2135_v36, %v2142_v37  ;;  %v4810_v36 = vld [vmem:[#allocation2 + $0x8c] ss:$0 sps:$4 sm:$0x11]   ;;  %v1001_v37 = vrot.slane %v999_v56, 4  ;;  %v4289_v13 = vcombine.low %v4829_v9, %v4829_v9 }
  0xdd   : > { %4635 = vmatmul.mubr.msk.bf16.vlgmr.msra.gmra.mrb[0].mxu0 %vm2307_vm4, %v2143_v18  ;;  %v4286_v18 = vcombine.low %v729_v25, %v4826_v29  ;;  %v1009_v26 = vrot.slane %v1007_v30, 4  ;;  %v1090_v45 = vrot.slane %v4810_v36, 5  ;;  %v4338_v30 = vcombine.low %v5690_v2, %v5692_v8  ;;  %v4818_v2 = vld [vmem:[#allocation2 + $0xac] ss:$0 sps:$4 sm:$0x11]  }
  0xde   : > { %1359 = vrot.lane.b32.xlu1 %v1328_v38, %s4982_s20  ;;  %1357 = vrot.lane.b32.xlu0 %v1320_v35, %s4982_s20  ;;  %v1010_v35 = vshll.u32 %v5665_v22, 16  ;;  %v1004_v38 = vrot.slane %v1002_v12, 5 }
  0xe0   : > { %v5620_v44 = vpop.permute.xlu1 %1225  ;;  %v5622_v6 = vpop.permute.xlu0 %1223  ;;  %v1012_v46 = vrot.slane %v1010_v35, 5  ;;  %v1005_v51 = vor.u32 %v1004_v38, %v1001_v37  ;;  %v1813_v35 = vsel %vm1795_vm11, %v4288_v54, %v5593_v57 }
  0xe2   : > { %1451 = vrot.lane.b32.xlu1 %v1415_v20, %s4981_s17  ;;  %1449 = vrot.lane.b32.xlu0 %v1413_v19, %s4981_s17  ;;  %v4811_v19 = vld [vmem:[#allocation2 + $0x9c] ss:$0 sps:$4 sm:$0x11]   ;;  %v4827_v20 = vld [vmem:[#allocation2 + $0x28] sm:$0xf]  ;;  %v1013_v15 = vor.u32 %v1012_v46, %v1009_v26 }
  0xe3   : > { %v1093_v53 = vrot.slane %v4811_v19, 5  ;;  %v1860_v19 = vsel %vm1846_vm12, %v1813_v35, %v5612_v48  ;;  %v1815_v48 = vsel %vm1795_vm11, %v4289_v13, %v5593_v57 }
  0xe4   : > { %v5631_v7 = vpop.permute.xlu1 %1229  ;;  %v5633_v42 = vpop.permute.xlu0 %1227 }
  0xe6   : > { %1455 = vrot.lane.b32.xlu1 %v1418_v49, %s4981_s17  ;;  %1453 = vrot.lane.b32.xlu0 %v1416_v40, %s4981_s17  ;;  %v4287_v40 = vcombine.low %v4827_v20, %v4827_v20  ;;  %v1747_v49 = vrot.slane %v4809_v0, 5 }
  0xe8   : > { %v5645_v62 = vpop.permute.xlu1 %1351  ;;  %v5647_v4 = vpop.permute.xlu0 %1349  ;;  %v1810_v56 = vsel %vm1795_vm11, %v4287_v40, %v5582_v59 }
  0xe9   : > { %v1858_v25 = vsel %vm1846_vm12, %v1810_v56, %v5603_v32 }
  0xea   : > { %1571 = vrot.lane.b32.xlu1 %v4375_v50, %s4980_s10  ;;  %1569 = vrot.lane.b32.xlu0 %v4374_v52, %s4980_s10  ;;  %v1746_v50 = vrot.slane %v5628_v47, 5  ;;  %v1092_v52 = vrot.slane %v5665_v22, 5  ;;  %v1899_v36 = vsel %vm1887_vm13, %v1858_v25, %v5620_v44 }
  0xeb   : > { %v1937_v29 = vsel %vm1928_vm14, %v1899_v36, %v5647_v4  ;;  %v791_v36 = vld [vmem:[#allocation2 + $0xa0] sm:$0x8] }
  0xec   : > { %v5659_v16 = vpop.permute.xlu1 %1435  ;;  %v5661_v17 = vpop.permute.xlu0 %1433  ;;  %v1748_v47 = vsel %vm1064_vm7, %v1746_v50, %v1747_v49  ;;  %v1094_v12 = vsel %vm1064_vm7, %v1092_v52, %v1093_v53  ;;  %v4340_v22 = vcombine.low %v791_v36, %v5709_v60 }
  0xee   : > { %1575 = vrot.lane.b32.xlu1 %v4377_v41, %s4980_s10  ;;  %1573 = vrot.lane.b32.xlu0 %v4376_v1, %s4980_s10  ;;  %v5688_v1 = vld [vmem:[#allocation2 + $0x98] sm:$0xf] }
  0xf0   : > { %v5672_v27 = vpop.permute.xlu1 %1439  ;;  %v5674_v28 = vpop.permute.xlu0 %1437 }
  0xf2   : > { %1689 = vrot.lane.b32.xlu1 %v1658_v21, %s4985_s13  ;;  %1687 = vrot.lane.b32.xlu0 %v1650_v23, %s4985_s13  ;;  %v1091_v21 = vsel %vm1064_vm7, %v1089_v33, %v1090_v45  ;;  %v1808_v23 = vsel %vm1795_vm11, %v4286_v18, %v5582_v59  ;;  %v4339_v59 = vcombine.low %v5688_v1, %v5688_v1 }
  0xf3   : > { %v1856_v0 = vsel %vm1846_vm12, %v1808_v23, %v5605_v34  ;;  %v5727_v34 = vcombine.low %v5692_v8, %v5688_v1  ;;  %v1971_v18 = vsel %vm1959_vm15, %v1937_v29, %v5659_v16  ;;  %v1862_v16 = vsel %vm1846_vm12, %v1815_v48, %v5610_v11 }
  0xf4   : > { %v1556_v43 = vpop.permute.xlu1 %1555  ;;  %v1554_v31 = vpop.permute.xlu0 %1553  ;;  %v1897_v37 = vsel %vm1887_vm13, %v1856_v0, %v5622_v6  ;;  %v1901_v6 = vsel %vm1887_vm13, %v1860_v19, %v5633_v42  ;;  %v1903_v57 = vsel %vm1887_vm13, %v1862_v16, %v5631_v7 }
  0xf5   : > { %v2012_v40 = vsel %vm2000_vm0, %v1971_v18, %v1556_v43  ;;  %v1330_v63 = vshrl.u32 %v5727_v34, 16  ;;  %v1333_v54 = vshll.u32 %v5727_v34, 16 }
  0xf6   : > { %1781 = vrot.lane.b32.xlu1 %v1745_v39, %s4986_s25  ;;  %1779 = vrot.lane.b32.xlu0 %v1743_v24, %s4986_s25  ;;  %v5707_v24 = vld [vmem:[#allocation2 + $0xa8] sm:$0xf]  ;;  %v1936_v39 = vsel %vm1928_vm14, %v1897_v37, %v5647_v4  ;;  %v1939_v4 = vsel %vm1928_vm14, %v1901_v6, %v5645_v62 }
  0xf7   : > { %v5737_v44 = vcombine.low %v5709_v60, %v5707_v24  ;;  %v1969_v20 = vsel %vm1959_vm15, %v1936_v39, %v5661_v17  ;;  %v1973_v17 = vsel %vm1959_vm15, %v1939_v4, %v5674_v28  ;;  %v1940_v28 = vsel %vm1928_vm14, %v1903_v57, %v5645_v62 }
  0xf8   : > { %v5686_v55 = vpop.permute.xlu1 %1559  ;;  %v1558_v41 = vpop.permute.xlu0 %1557  ;;  %v2010_v42 = vsel %vm2000_vm0, %v1969_v20, %v1554_v31  ;;  %v1975_v10 = vsel %vm1959_vm15, %v1940_v28, %v5672_v27  ;;  %v1332_v37 = vrot.slane %v1330_v63, 4  ;;  %v4341_v6 = vcombine.low %v5707_v24, %v5707_v24  ;;  %v4817_v24 = vld [vmem:[#allocation2 + $0x9c] ss:$0 sps:$4 sm:$0x11]   ;;  %v828_v28 = vld [vmem:[#allocation2 + $0xa0] sm:$0x8] }
  0xf9   : > { %v2014_v45 = vsel %vm2000_vm0, %v1973_v17, %v1558_v41  ;;  %v1338_v62 = vshrl.u32 %v5737_v44, 16  ;;  %v2016_v27 = vsel %vm2000_vm0, %v1975_v10, %v5686_v55 }
  0xfa   : > { %1783 = vrot.lane.b32.xlu1 %v1746_v50, %s4986_s25  ;;  %1030 = vrot.lane.b32.xlu0 %v1005_v51, %s4984_s22 }
  0xfc   : > { %v1682_v38 = vpop.permute.xlu1 %1681  ;;  %v1680_v32 = vpop.permute.xlu0 %1679 }
  0xfd   : > { %v2049_v5 = vsel %vm2041_vm1, %v2010_v42, %v1680_v32  ;;  %v2050_v26 = vsel %vm2041_vm1, %v2012_v40, %v1680_v32  ;;  %v2052_v7 = vsel %vm2041_vm1, %v2014_v45, %v1682_v38  ;;  %v2053_v32 = vsel %vm2041_vm1, %v2016_v27, %v1682_v38 }
  0xfe   : > { %1032 = vrot.lane.b32.xlu1 %v1013_v15, %s4984_s22  ;;  %1785 = vrot.lane.b32.xlu0 %v1748_v47, %s4986_s25  ;;  %v1422_v45 = vrot.slane %v5737_v44, 5 }
 0x100   : > { %v1766_v46 = vpop.permute.xlu1 %1765  ;;  %v1764_v49 = vpop.permute.xlu0 %1763 }
 0x101   : > { %v2084_v43 = vsel %vm2072_vm2, %v2050_v26, %v1766_v46  ;;  %v2082_v31 = vsel %vm2072_vm2, %v2049_v5, %v1764_v49  ;;  %v1420_v46 = vrot.slane %v4817_v24, 5 }
 0x102   : > { %v2151_v50 = vshrl.u32 %v2084_v43, 16  ;;  %v2154_v11 = vshll.u32 %v2084_v43, 16  ;;  %v2144_v51 = vshrl.u32 %v2082_v31, 16  ;;  %v2147_v53 = vshll.u32 %v2082_v31, 16  ;;  %1129 = vrot.lane.b32.xlu1 %v1091_v21, %s4983_s21  ;;  %1127 = vrot.lane.b32.xlu0 %v1089_v33, %s4983_s21  ;;  %v832_v31 = vld [vmem:[#allocation2 + $0xb4] sm:$0xf] }
 0x103   : > { %v1341_v21 = vshll.u32 %v5737_v44, 16  ;;  %v1423_v43 = vrot.slane %v4818_v2, 5  ;;  %v4832_v2 = vld [vmem:[#allocation2 + $0x54] sm:$0xf] }
 0x104   : > { %v2153_v41 = vrot.slane %v2151_v50, 3  ;;  %v2156_v9 = vrot.slane %v2154_v11, 4  ;;  %v2146_v13 = vrot.slane %v2144_v51, 3  ;;  %v2149_v15 = vrot.slane %v2147_v53, 4  ;;  %v1768_v47 = vpop.permute.xlu1 %1767  ;;  %v5773_v23 = vpop.permute.xlu0 %1022  ;;  %v830_v51 = vld [vmem:[#allocation2 + $0xa8] sm:$0xf] }
 0x105   : > { %v2086_v33 = vsel %vm2072_vm2, %v2052_v7, %v1768_v47  ;;  %v1343_v55 = vrot.slane %v1341_v21, 5  ;;  %v829_v53 = vld [vmem:[#allocation2 + $0xa4] sm:$0xf] }
 0x106   : > { %v2157_v56 = vor.u32 %v2156_v9, %v2153_v41  ;;  %v2150_v25 = vor.u32 %v2149_v15, %v2146_v13  ;;  %v2159_v0 = vshrl.u32 %v2086_v33, 16  ;;  %v2162_v35 = vshll.u32 %v2086_v33, 16  ;;  %1133 = vrot.lane.b32.xlu1 %v1094_v12, %s4983_s21  ;;  %1131 = vrot.lane.b32.xlu0 %v1092_v52, %s4983_s21  ;;  %v831_v15 = vld [vmem:[#allocation2 + $0xb0] sm:$0x8] }
 0x107   : > { %v1335_v12 = vrot.slane %v1333_v54, 5  ;;  %v1340_v52 = vrot.slane %v1338_v62, 4  ;;  %v4390_v7 = vcombine.low %v829_v53, %v830_v51  ;;  %v1424_v54 = vsel %vm1064_vm7, %v1422_v45, %v1423_v43 }
 0x108   : > { %v5787_v19 = vpop.permute.xlu1 %1024  ;;  %v1770_v39 = vpop.permute.xlu0 %1769  ;;  %v2158_v29 = vsel %vm2113_vm3, %v2150_v25, %v2157_v56  ;;  %v2161_v20 = vrot.slane %v2159_v0, 3  ;;  %v2164_v48 = vrot.slane %v2162_v35, 4  ;;  %v4379_v9 = vcombine.low %v830_v51, %v830_v51 }
 0x109   : > { %v2088_v18 = vsel %vm2072_vm2, %v2053_v32, %v1770_v39  ;;  %4638 = vmatprep.mubr.msk.bf16.mxu0 %vm2307_vm4, %v2158_v29  ;;  %v1336_v17 = vor.u32 %v1335_v12, %v1332_v37  ;;  %v1344_v1 = vor.u32 %v1343_v55, %v1340_v52  ;;  %v4378_v13 = vcombine.low %v828_v28, %v829_v53  ;;  %v4824_v32 = vld [vmem:[#allocation2 + $0xac] ss:$0 sps:$4 sm:$0x11]   ;;  %v4825_v52 = vld [vmem:[#allocation2 + $0xbc] ss:$0 sps:$4 sm:$0x11]  }
 0x10a   : > { %v2166_v38 = vshrl.u32 %v2088_v18, 16  ;;  %v2169_v4 = vshll.u32 %v2088_v18, 16  ;;  %1249 = vrot.lane.b32.xlu1 %v4339_v59, %s4979_s23  ;;  %1247 = vrot.lane.b32.xlu0 %v4338_v30, %s4979_s23  ;;  %v2165_v5 = vor.u32 %v2164_v48, %v2161_v20  ;;  %v1419_v59 = vrot.slane %v5727_v34, 5  ;;  %v833_v34 = vld [vmem:[#allocation2 + $0xb8] sm:$0xf] }
 0x10b   : > { %v4391_v63 = vcombine.low %v832_v31, %v833_v34  ;;  %v1660_v33 = vshrl.u32 %v4390_v7, 16  ;;  %v1663_v62 = vshll.u32 %v4390_v7, 16  ;;  %v4381_v25 = vcombine.low %v833_v34, %v833_v34  ;;  %v735_v48 = vld [vmem:[#allocation2 + $0x40] sm:$0x8] }
 0x10c   : > { %v2168_v40 = vrot.slane %v2166_v38, 3  ;;  %v2171_v42 = vrot.slane %v2169_v4, 4  ;;  %v5803_v60 = vpop.permute.xlu1 %1113  ;;  %v5805_v16 = vpop.permute.xlu0 %1111  ;;  %v1421_v57 = vsel %vm1064_vm7, %v1419_v59, %v1420_v46  ;;  %v4380_v0 = vcombine.low %v831_v15, %v832_v31  ;;  %v4833_v31 = vld [vmem:[#allocation2 + $0x58] sm:$0xf] }
 0x10d   : > { %v1668_v47 = vshrl.u32 %v4391_v63, 16  ;;  %v1671_v10 = vshll.u32 %v4391_v63, 16  ;;  %v1662_v27 = vrot.slane %v1660_v33, 4  ;;  %v1665_v37 = vrot.slane %v1663_v62, 5 }
 0x10e   : > { %v2172_v26 = vor.u32 %v2171_v42, %v2168_v40  ;;  %1253 = vrot.lane.b32.xlu1 %v4341_v6, %s4979_s23  ;;  %1251 = vrot.lane.b32.xlu0 %v4340_v22, %s4979_s23  ;;  %v1749_v18 = vrot.slane %v4390_v7, 5  ;;  %v1750_v22 = vrot.slane %v4824_v32, 5  ;;  %v1752_v4 = vrot.slane %v4391_v63, 5 }
 0x10f   : > { %v1670_v35 = vrot.slane %v1668_v47, 4  ;;  %v1673_v36 = vrot.slane %v1671_v10, 5  ;;  %v1666_v12 = vor.u32 %v1665_v37, %v1662_v27  ;;  %v1753_v24 = vrot.slane %v4825_v52, 5 }
 0x110   : > { %v5810_v8 = vpop.permute.xlu1 %1117  ;;  %v5812_v30 = vpop.permute.xlu0 %1115  ;;  %v2173_v49 = vsel %vm2113_vm3, %v2165_v5, %v2172_v26  ;;  %v1751_v38 = vsel %vm1064_vm7, %v1749_v18, %v1750_v22  ;;  %v4830_v5 = vld [vmem:[#allocation2 + $0x44] sm:$0xf]  ;;  %v4293_v51 = vcombine.low %v4833_v31, %v4833_v31 }
 0x111   : > { %4639 = vmatmul.mubr.msk.bf16.gmra.mrb[4].mxu0 %vm2307_vm4, %v2173_v49  ;;  %v1674_v6 = vor.u32 %v1673_v36, %v1670_v35  ;;  %v4290_v26 = vcombine.low %v735_v48, %v4830_v5  ;;  %v1754_v46 = vsel %vm1064_vm7, %v1752_v4, %v1753_v24 }
 0x112   : > { %1363 = vrot.lane.b32.xlu1 %v1344_v1, %s4982_s20  ;;  %1361 = vrot.lane.b32.xlu0 %v1336_v17, %s4982_s20  ;;  %v738_v17 = vld [vmem:[#allocation2 + $0x50] sm:$0x8]  ;;  %v4831_v1 = vld [vmem:[#allocation2 + $0x48] sm:$0xf] }
 0x113   : > { %v4292_v49 = vcombine.low %v738_v17, %v4832_v2  ;;  %v1818_v43 = vsel %vm1795_vm11, %v4290_v26, %v5773_v23 }
 0x114   : > { %v5820_v50 = vpop.permute.xlu1 %1233  ;;  %v5822_v11 = vpop.permute.xlu0 %1231  ;;  %v1864_v28 = vsel %vm1846_vm12, %v1818_v43, %v5805_v16 }
 0x115   : > { %v1823_v7 = vsel %vm1795_vm11, %v4292_v49, %v5787_v19 }
 0x116   : > { %1459 = vrot.lane.b32.xlu1 %v1421_v57, %s4981_s17  ;;  %1457 = vrot.lane.b32.xlu0 %v1419_v59, %s4981_s17  ;;  %v4291_v59 = vcombine.low %v4831_v1, %v4831_v1 }
 0x118   : > { %v5827_v41 = vpop.permute.xlu1 %1237  ;;  %v5829_v44 = vpop.permute.xlu0 %1235  ;;  %v1820_v34 = vsel %vm1795_vm11, %v4291_v59, %v5773_v23  ;;  %v1905_v23 = vsel %vm1887_vm13, %v1864_v28, %v5822_v11 }
 0x119   : > { %v1866_v53 = vsel %vm1846_vm12, %v1820_v34, %v5803_v60 }
 0x11a   : > { %1463 = vrot.lane.b32.xlu1 %v1424_v54, %s4981_s17  ;;  %1461 = vrot.lane.b32.xlu0 %v1422_v45, %s4981_s17  ;;  %v1907_v63 = vsel %vm1887_vm13, %v1866_v53, %v5820_v50  ;;  %v1825_v50 = vsel %vm1795_vm11, %v4293_v51, %v5787_v19 }
 0x11b   : > { %v1870_v62 = vsel %vm1846_vm12, %v1825_v50, %v5810_v8 }
 0x11c   : > { %v5833_v21 = vpop.permute.xlu1 %1355  ;;  %v1354_v56 = vpop.permute.xlu0 %1353  ;;  %v1911_v19 = vsel %vm1887_vm13, %v1870_v62, %v5827_v41  ;;  %v744_v62 = vld [vmem:[#allocation2 + $0x70] sm:$0x8] }
 0x11d   : > { %v1942_v15 = vsel %vm1928_vm14, %v1905_v23, %v1354_v56  ;;  %v1943_v60 = vsel %vm1928_vm14, %v1907_v63, %v1354_v56 }
 0x11e   : > { %1579 = vrot.lane.b32.xlu1 %v4379_v9, %s4980_s10  ;;  %1577 = vrot.lane.b32.xlu0 %v4378_v13, %s4980_s10  ;;  %v1868_v13 = vsel %vm1846_vm12, %v1823_v7, %v5812_v30 }
 0x11f   : > { %v1909_v16 = vsel %vm1887_vm13, %v1868_v13, %v5829_v44 }
 0x120   : > { %v1444_v39 = vpop.permute.xlu1 %1443  ;;  %v1442_v29 = vpop.permute.xlu0 %1441  ;;  %v1945_v11 = vsel %vm1928_vm14, %v1909_v16, %v5833_v21 }
 0x121   : > { %v1979_v47 = vsel %vm1959_vm15, %v1943_v60, %v1444_v39  ;;  %v1977_v10 = vsel %vm1959_vm15, %v1942_v15, %v1442_v29 }
 0x122   : > { %1583 = vrot.lane.b32.xlu1 %v4381_v25, %s4980_s10  ;;  %1581 = vrot.lane.b32.xlu0 %v4380_v0, %s4980_s10 }
 0x124   : > { %v5839_v55 = vpop.permute.xlu1 %1447  ;;  %v1446_v20 = vpop.permute.xlu0 %1445 }
 0x125   : > { %v1981_v56 = vsel %vm1959_vm15, %v1945_v11, %v1446_v20  ;;  %v741_v11 = vld [vmem:[#allocation2 + $0x60] sm:$0x8] }
 0x126   : > { %1693 = vrot.lane.b32.xlu1 %v1674_v6, %s4985_s13  ;;  %1691 = vrot.lane.b32.xlu0 %v1666_v12, %s4985_s13  ;;  %v1946_v6 = vsel %vm1928_vm14, %v1911_v19, %v5833_v21 }
 0x128   : > { %v1564_v40 = vpop.permute.xlu1 %1563  ;;  %v1562_v42 = vpop.permute.xlu0 %1561 }
 0x129   : > { %v2020_v33 = vsel %vm2000_vm0, %v1979_v47, %v1564_v40  ;;  %v2018_v30 = vsel %vm2000_vm0, %v1977_v10, %v1562_v42 }
 0x12a   : > { %1789 = vrot.lane.b32.xlu1 %v1751_v38, %s4986_s25  ;;  %1787 = vrot.lane.b32.xlu0 %v1749_v18, %s4986_s25  ;;  %v1983_v38 = vsel %vm1959_vm15, %v1946_v6, %v5839_v55 }
 0x12c   : > { %v1568_v57 = vpop.permute.xlu1 %1567  ;;  %v1566_v45 = vpop.permute.xlu0 %1565 }
 0x12d   : > { %v2022_v36 = vsel %vm2000_vm0, %v1981_v56, %v1566_v45  ;;  %v2024_v5 = vsel %vm2000_vm0, %v1983_v38, %v1568_v57  ;;  %v4834_v56 = vld [vmem:[#allocation2 + $0x64] sm:$0xf] }
 0x12e   : > { %1793 = vrot.lane.b32.xlu1 %v1754_v46, %s4986_s25  ;;  %1791 = vrot.lane.b32.xlu0 %v1752_v4, %s4986_s25 }
 0x130   : > { %v1686_v54 = vpop.permute.xlu1 %1685  ;;  %v1684_v9 = vpop.permute.xlu0 %1683 }
 0x131   : > { %v2055_v44 = vsel %vm2041_vm1, %v2018_v30, %v1684_v9  ;;  %v2056_v25 = vsel %vm2041_vm1, %v2020_v33, %v1684_v9  ;;  %v2058_v12 = vsel %vm2041_vm1, %v2022_v36, %v1686_v54  ;;  %v2059_v21 = vsel %vm2041_vm1, %v2024_v5, %v1686_v54 }
 0x134   : > { %v1774_v0 = vpop.permute.xlu1 %1773  ;;  %v1772_v35 = vpop.permute.xlu0 %1771 }
 0x135   : > { %v2092_v27 = vsel %vm2072_vm2, %v2056_v25, %v1774_v0  ;;  %v2090_v37 = vsel %vm2072_vm2, %v2055_v44, %v1772_v35  ;;  %v4294_v44 = vcombine.low %v741_v11, %v4834_v56  ;;  %v4835_v25 = vld [vmem:[#allocation2 + $0x68] sm:$0xf]  ;;  %v4836_v35 = vld [vmem:[#allocation2 + $0x74] sm:$0xf] }
 0x136   : > { %v2181_v32 = vshrl.u32 %v2092_v27, 16  ;;  %v2184_v39 = vshll.u32 %v2092_v27, 16  ;;  %v2174_v8 = vshrl.u32 %v2090_v37, 16  ;;  %v2177_v29 = vshll.u32 %v2090_v37, 16 }
 0x137   : > { %v4295_v0 = vcombine.low %v4835_v25, %v4835_v25  ;;  %v4296_v19 = vcombine.low %v744_v62, %v4836_v35 }
 0x138   : > { %v2183_v18 = vrot.slane %v2181_v32, 3  ;;  %v2186_v22 = vrot.slane %v2184_v39, 4  ;;  %v2176_v52 = vrot.slane %v2174_v8, 3  ;;  %v2179_v20 = vrot.slane %v2177_v29, 4  ;;  %v1776_v41 = vpop.permute.xlu1 %1775  ;;  %v1027_v48 = vpop.permute.xlu0 %1026  ;;  %v4837_v39 = vld [vmem:[#allocation2 + $0x78] sm:$0xf] }
 0x139   : > { %v2094_v4 = vsel %vm2072_vm2, %v2058_v12, %v1776_v41  ;;  %v1828_v37 = vsel %vm1795_vm11, %v4294_v44, %v1027_v48  ;;  %v1830_v32 = vsel %vm1795_vm11, %v4295_v0, %v1027_v48  ;;  %v4297_v8 = vcombine.low %v4837_v39, %v4837_v39 }
 0x13a   : > { %v2187_v24 = vor.u32 %v2186_v22, %v2183_v18  ;;  %v2180_v40 = vor.u32 %v2179_v20, %v2176_v52  ;;  %v2189_v42 = vshrl.u32 %v2094_v4, 16  ;;  %v2192_v17 = vshll.u32 %v2094_v4, 16 }
 0x13c   : > { %v1029_v26 = vpop.permute.xlu1 %1028  ;;  %v1778_v1 = vpop.permute.xlu0 %1777  ;;  %v2188_v59 = vsel %vm2113_vm3, %v2180_v40, %v2187_v24  ;;  %v2191_v2 = vrot.slane %v2189_v42, 3  ;;  %v2194_v55 = vrot.slane %v2192_v17, 4 }
 0x13d   : > { %v2096_v46 = vsel %vm2072_vm2, %v2059_v21, %v1778_v1  ;;  %4642 = vmatprep.mubr.msk.bf16.mxu0 %vm2307_vm4, %v2188_v59  ;;  %v1833_v12 = vsel %vm1795_vm11, %v4296_v19, %v1029_v26  ;;  %v1835_v42 = vsel %vm1795_vm11, %v4297_v8, %v1029_v26 }
 0x13e   : > { %v2196_v49 = vshrl.u32 %v2096_v46, 16  ;;  %v2199_v45 = vshll.u32 %v2096_v46, 16  ;;  %v2195_v53 = vor.u32 %v2194_v55, %v2191_v2 }
 0x140   : > { %v2198_v43 = vrot.slane %v2196_v49, 3  ;;  %v2201_v34 = vrot.slane %v2199_v45, 4  ;;  %v1122_v31 = vpop.permute.xlu1 %1121  ;;  %v1120_v51 = vpop.permute.xlu0 %1119 }
 0x141   : > { %v1874_v29 = vsel %vm1846_vm12, %v1830_v32, %v1122_v31  ;;  %v1872_v6 = vsel %vm1846_vm12, %v1828_v37, %v1120_v51 }
 0x142   : > { %v2202_v57 = vor.u32 %v2201_v34, %v2198_v43 }
 0x144   : > { %v1126_v28 = vpop.permute.xlu1 %1125  ;;  %v1124_v7 = vpop.permute.xlu0 %1123  ;;  %v2203_v63 = vsel %vm2113_vm3, %v2195_v53, %v2202_v57 }
 0x145   : > { %4643 = vmatmul.mubr.msk.bf16.gmra.mrb[8].mxu0 %vm2307_vm4, %v2203_v63  ;;  %v1876_v41 = vsel %vm1846_vm12, %v1833_v12, %v1124_v7  ;;  %v1878_v1 = vsel %vm1846_vm12, %v1835_v42, %v1126_v28 }
 0x148   : > { %v1242_v23 = vpop.permute.xlu1 %1241  ;;  %v1240_v54 = vpop.permute.xlu0 %1239 }
 0x149   : > { %v1915_v18 = vsel %vm1887_vm13, %v1874_v29, %v1242_v23  ;;  %v1913_v22 = vsel %vm1887_vm13, %v1872_v6, %v1240_v54 }
 0x14c   : > { %v1246_v9 = vpop.permute.xlu1 %1245  ;;  %v1244_v13 = vpop.permute.xlu0 %1243 }
 0x14d   : > { %v1917_v4 = vsel %vm1887_vm13, %v1876_v41, %v1244_v13  ;;  %v1919_v45 = vsel %vm1887_vm13, %v1878_v1, %v1246_v9  ;;  %v750_v1 = vld [vmem:[#allocation2 + $0x90] sm:$0x8] }
 0x150   : > { %v1360_v15 = vpop.permute.xlu1 %1359  ;;  %v1358_v60 = vpop.permute.xlu0 %1357 }
 0x151   : > { %v1948_v38 = vsel %vm1928_vm14, %v1913_v22, %v1358_v60  ;;  %v1949_v48 = vsel %vm1928_vm14, %v1915_v18, %v1358_v60  ;;  %v1951_v17 = vsel %vm1928_vm14, %v1917_v4, %v1360_v15  ;;  %v1952_v28 = vsel %vm1928_vm14, %v1919_v45, %v1360_v15 }
 0x154   : > { %v1452_v16 = vpop.permute.xlu1 %1451  ;;  %v1450_v47 = vpop.permute.xlu0 %1449 }
 0x155   : > { %v1987_v24 = vsel %vm1959_vm15, %v1949_v48, %v1452_v16  ;;  %v1985_v40 = vsel %vm1959_vm15, %v1948_v38, %v1450_v47 }
 0x158   : > { %v1456_v10 = vpop.permute.xlu1 %1455  ;;  %v1454_v50 = vpop.permute.xlu0 %1453 }
 0x159   : > { %v1989_v59 = vsel %vm1959_vm15, %v1951_v17, %v1454_v50  ;;  %v1991_v16 = vsel %vm1959_vm15, %v1952_v28, %v1456_v10  ;;  %v747_v17 = vld [vmem:[#allocation2 + $0x80] sm:$0x8] }
 0x15c   : > { %v1572_v33 = vpop.permute.xlu1 %1571  ;;  %v1570_v30 = vpop.permute.xlu0 %1569 }
 0x15d   : > { %v2028_v5 = vsel %vm2000_vm0, %v1987_v24, %v1572_v33  ;;  %v2026_v21 = vsel %vm2000_vm0, %v1985_v40, %v1570_v30 }
 0x160   : > { %v1576_v36 = vpop.permute.xlu1 %1575  ;;  %v1574_v27 = vpop.permute.xlu0 %1573 }
 0x161   : > { %v2030_v26 = vsel %vm2000_vm0, %v1989_v59, %v1574_v27  ;;  %v2032_v62 = vsel %vm2000_vm0, %v1991_v16, %v1576_v36  ;;  %v4298_v59 = vcombine.low %v747_v17, %v5641_v58 }
 0x164   : > { %v1690_v52 = vpop.permute.xlu1 %1689  ;;  %v1688_v20 = vpop.permute.xlu0 %1687 }
 0x165   : > { %v2061_v46 = vsel %vm2041_vm1, %v2026_v21, %v1688_v20  ;;  %v2062_v2 = vsel %vm2041_vm1, %v2028_v5, %v1688_v20  ;;  %v2064_v7 = vsel %vm2041_vm1, %v2030_v26, %v1690_v52  ;;  %v2065_v15 = vsel %vm2041_vm1, %v2032_v62, %v1690_v52 }
 0x168   : > { %v1782_v55 = vpop.permute.xlu1 %1781  ;;  %v1780_v49 = vpop.permute.xlu0 %1779 }
 0x169   : > { %v2100_v43 = vsel %vm2072_vm2, %v2062_v2, %v1782_v55  ;;  %v2098_v34 = vsel %vm2072_vm2, %v2061_v46, %v1780_v49  ;;  %v4299_v46 = vcombine.low %v5643_v61, %v5643_v61  ;;  %v4300_v2 = vcombine.low %v750_v1, %v5649_v3 }
 0x16a   : > { %v2211_v31 = vshrl.u32 %v2100_v43, 16  ;;  %v2214_v51 = vshll.u32 %v2100_v43, 16  ;;  %v2204_v53 = vshrl.u32 %v2098_v34, 16  ;;  %v2207_v57 = vshll.u32 %v2098_v34, 16 }
 0x16b   : > { %v4301_v55 = vcombine.low %v5657_v14, %v5657_v14 }
 0x16c   : > { %v2213_v63 = vrot.slane %v2211_v31, 3  ;;  %v2216_v23 = vrot.slane %v2214_v51, 4  ;;  %v2206_v54 = vrot.slane %v2204_v53, 3  ;;  %v2209_v13 = vrot.slane %v2207_v57, 4  ;;  %v1784_v60 = vpop.permute.xlu1 %1783  ;;  %v1031_v9 = vpop.permute.xlu0 %1030 }
 0x16d   : > { %v2102_v47 = vsel %vm2072_vm2, %v2064_v7, %v1784_v60  ;;  %v1838_v26 = vsel %vm1795_vm11, %v4298_v59, %v1031_v9  ;;  %v1840_v43 = vsel %vm1795_vm11, %v4299_v46, %v1031_v9 }
 0x16e   : > { %v2217_v50 = vor.u32 %v2216_v23, %v2213_v63  ;;  %v2210_v11 = vor.u32 %v2209_v13, %v2206_v54  ;;  %v2219_v33 = vshrl.u32 %v2102_v47, 16  ;;  %v2222_v30 = vshll.u32 %v2102_v47, 16 }
 0x170   : > { %v1033_v56 = vpop.permute.xlu1 %1032  ;;  %v1786_v44 = vpop.permute.xlu0 %1785  ;;  %v2218_v25 = vsel %vm2113_vm3, %v2210_v11, %v2217_v50  ;;  %v2221_v35 = vrot.slane %v2219_v33, 3  ;;  %v2224_v10 = vrot.slane %v2222_v30, 4 }
 0x171   : > { %v2104_v0 = vsel %vm2072_vm2, %v2065_v15, %v1786_v44  ;;  %4646 = vmatprep.mubr.msk.bf16.mxu0 %vm2307_vm4, %v2218_v25  ;;  %v1843_v58 = vsel %vm1795_vm11, %v4300_v2, %v1033_v56  ;;  %v1845_v51 = vsel %vm1795_vm11, %v4301_v55, %v1033_v56  ;;  %v5981_v2 = vld [vmem:[%s6638_s4] ss:$0 sm:$0xff] }
 0x172   : > { %v2226_v19 = vshrl.u32 %v2104_v0, 16  ;;  %v2229_v27 = vshll.u32 %v2104_v0, 16  ;;  %v2225_v29 = vor.u32 %v2224_v10, %v2221_v35 }
 0x174   : > { %v2228_v37 = vrot.slane %v2226_v19, 3  ;;  %v2231_v32 = vrot.slane %v2229_v27, 4  ;;  %v1130_v39 = vpop.permute.xlu1 %1129  ;;  %v1128_v8 = vpop.permute.xlu0 %1127 }
 0x175   : > { %v1882_v34 = vsel %vm1846_vm12, %v1840_v43, %v1130_v39  ;;  %v1880_v31 = vsel %vm1846_vm12, %v1838_v26, %v1128_v8 }
 0x176   : > { %v2232_v36 = vor.u32 %v2231_v32, %v2228_v37 }
 0x178   : > { %v1134_v6 = vpop.permute.xlu1 %1133  ;;  %v1132_v12 = vpop.permute.xlu0 %1131  ;;  %v2233_v18 = vsel %vm2113_vm3, %v2225_v29, %v2232_v36 }
 0x179   : > { %4647 = vmatmul.mubr.msk.bf16.gmra.mrb[12].mxu0 %vm2307_vm4, %v2233_v18  ;;  %v1886_v57 = vsel %vm1846_vm12, %v1845_v51, %v1134_v6  ;;  %v1884_v28 = vsel %vm1846_vm12, %v1843_v58, %v1132_v12 }
 0x17c   : > { %v1250_v22 = vpop.permute.xlu1 %1249  ;;  %v1248_v52 = vpop.permute.xlu0 %1247 }
 0x17d   : > { %v1923_v61 = vsel %vm1887_vm13, %v1882_v34, %v1250_v22  ;;  %v1921_v3 = vsel %vm1887_vm13, %v1880_v31, %v1248_v52 }
 0x180   : > { %v1254_v20 = vpop.permute.xlu1 %1253  ;;  %v1252_v41 = vpop.permute.xlu0 %1251 }
 0x181   : > { %v1927_v23 = vsel %vm1887_vm13, %v1886_v57, %v1254_v20  ;;  %v1925_v54 = vsel %vm1887_vm13, %v1884_v28, %v1252_v41 }
 0x184   : > { %v1364_v38 = vpop.permute.xlu1 %1363  ;;  %v1362_v48 = vpop.permute.xlu0 %1361 }
 0x185   : > { %v1954_v7 = vsel %vm1928_vm14, %v1921_v3, %v1362_v48  ;;  %v1955_v63 = vsel %vm1928_vm14, %v1923_v61, %v1362_v48  ;;  %v1957_v9 = vsel %vm1928_vm14, %v1925_v54, %v1364_v38  ;;  %v1958_v16 = vsel %vm1928_vm14, %v1927_v23, %v1364_v38 }
 0x188   : > { %v1460_v4 = vpop.permute.xlu1 %1459  ;;  %v1458_v24 = vpop.permute.xlu0 %1457 }
 0x189   : > { %v1995_v13 = vsel %vm1959_vm15, %v1955_v63, %v1460_v4  ;;  %v1993_v60 = vsel %vm1959_vm15, %v1954_v7, %v1458_v24 }
 0x18c   : > { %v1464_v40 = vpop.permute.xlu1 %1463  ;;  %v1462_v42 = vpop.permute.xlu0 %1461 }
 0x18d   : > { %v1999_v11 = vsel %vm1959_vm15, %v1958_v16, %v1464_v40  ;;  %v1997_v33 = vsel %vm1959_vm15, %v1957_v9, %v1462_v42 }
 0x190   : > { %v1580_v5 = vpop.permute.xlu1 %1579  ;;  %v1578_v21 = vpop.permute.xlu0 %1577 }
 0x191   : > { %v2036_v47 = vsel %vm2000_vm0, %v1995_v13, %v1580_v5  ;;  %v2034_v50 = vsel %vm2000_vm0, %v1993_v60, %v1578_v21 }
 0x194   : > { %v1584_v49 = vpop.permute.xlu1 %1583  ;;  %v1582_v45 = vpop.permute.xlu0 %1581 }
 0x195   : > { %v2040_v44 = vsel %vm2000_vm0, %v1999_v11, %v1584_v49  ;;  %v2038_v25 = vsel %vm2000_vm0, %v1997_v33, %v1582_v45 }
 0x198   : > { %v1694_v53 = vpop.permute.xlu1 %1693  ;;  %v1692_v14 = vpop.permute.xlu0 %1691 }
 0x199   : > { %v2067_v30 = vsel %vm2041_vm1, %v2034_v50, %v1692_v14  ;;  %v2068_v62 = vsel %vm2041_vm1, %v2036_v47, %v1692_v14  ;;  %v2070_v32 = vsel %vm2041_vm1, %v2038_v25, %v1694_v53  ;;  %v2071_v39 = vsel %vm2041_vm1, %v2040_v44, %v1694_v53 }
 0x19c   : > { %v1790_v15 = vpop.permute.xlu1 %1789  ;;  %v1788_v56 = vpop.permute.xlu0 %1787 }
 0x19d   : > { %v2108_v0 = vsel %vm2072_vm2, %v2068_v62, %v1790_v15  ;;  %v2106_v35 = vsel %vm2072_vm2, %v2067_v30, %v1788_v56 }
 0x19e   : > { %v2241_v10 = vshrl.u32 %v2108_v0, 16  ;;  %v2244_v19 = vshll.u32 %v2108_v0, 16  ;;  %v2234_v27 = vshrl.u32 %v2106_v35, 16  ;;  %v2237_v37 = vshll.u32 %v2106_v35, 16 }
 0x1a0   : > { %v2243_v8 = vrot.slane %v2241_v10, 3  ;;  %v2246_v29 = vrot.slane %v2244_v19, 4  ;;  %v2236_v36 = vrot.slane %v2234_v27, 3  ;;  %v2239_v6 = vrot.slane %v2237_v37, 4  ;;  %v1794_v12 = vpop.permute.xlu1 %1793  ;;  %v1792_v18 = vpop.permute.xlu0 %1791 }
 0x1a1   : > { %v2112_v22 = vsel %vm2072_vm2, %v2071_v39, %v1794_v12  ;;  %v2110_v52 = vsel %vm2072_vm2, %v2070_v32, %v1792_v18 }
 0x1a2   : > { %v2247_v20 = vor.u32 %v2246_v29, %v2243_v8  ;;  %v2240_v41 = vor.u32 %v2239_v6, %v2236_v36  ;;  %v2256_v38 = vshrl.u32 %v2112_v22, 16  ;;  %v2259_v48 = vshll.u32 %v2112_v22, 16 }
 0x1a3   : > { %v2249_v4 = vshrl.u32 %v2110_v52, 16  ;;  %v2252_v24 = vshll.u32 %v2110_v52, 16 }
 0x1a4   : > { %v2258_v40 = vrot.slane %v2256_v38, 3  ;;  %v2261_v42 = vrot.slane %v2259_v48, 4  ;;  %v2248_v17 = vsel %vm2113_vm3, %v2240_v41, %v2247_v20 }
 0x1a5   : > { %v2251_v5 = vrot.slane %v2249_v4, 3  ;;  %v2254_v21 = vrot.slane %v2252_v24, 4  ;;  %4650 = vmatprep.mubr.msk.bf16.mxu0 %vm2307_vm4, %v2248_v17 }
 0x1a6   : > { %v2262_v1 = vor.u32 %v2261_v42, %v2258_v40 }
 0x1a7   : > { %v2255_v59 = vor.u32 %v2254_v21, %v2251_v5 }
 0x1a9   : > { %v2263_v46 = vsel %vm2113_vm3, %v2255_v59, %v2262_v1 }
 0x1aa   : > { %4651 = vmatmul.mubr.msk.bf16.gmra.mrb[16].mxu0 %vm2307_vm4, %v2263_v46 }
 0x1b0   : > { %v4636_v55 = vpop.f32.mrb[0].mxu0 }
 0x1b1   : > { %v2385_v49 = vadd.f32 %v4636_v55, %v5981_v2  ;;  %v2376_v45 = vpop.f32.mrb[1].mxu0 }
 0x1b2   : > { %v2377_v26 = vadd.f32 %v5981_v2, %v2376_v45  ;;  %v4637_v43 = vpop.f32.mrb[2].mxu0 }
 0x1b3   : > { %v2457_v34 = vmax.f32 %v2385_v49, 0.0  ;;  %v2388_v31 = vadd.f32 %v4637_v43, %v5981_v2  ;;  %v2379_v58 = vpop.f32.mrb[3].mxu0 }
 0x1b4   : > { %v2455_v51 = vmax.f32 %v2377_v26, 0.0  ;;  %v2380_v61 = vadd.f32 %v5981_v2, %v2379_v58 }
 0x1b5   : > { %v4578_v3 = vpack.c.bf16 %v2457_v34, %v2457_v34  ;;  %v2458_v53 = vmax.f32 %v2388_v31, 0.0 }
 0x1b6   : > { %v4576_v14 = vpack.c.bf16 %v2455_v51, %v2455_v51  ;;  %v2456_v57 = vmax.f32 %v2380_v61, 0.0 }
 0x1b7   : > { %2557 = vst.msk [vmem:[#allocation3 + $0x14] sm:$0xf] %vm555_vm6, %v4578_v3  ;;  %v4579_v28 = vpack.c.bf16 %v2458_v53, %v2458_v53 }
 0x1b8   : > { %2555 = vst.msk [vmem:[#allocation3 + $0x4] sm:$0xf] %vm555_vm6, %v4576_v14  ;;  %v4577_v7 = vpack.c.bf16 %v2456_v57, %v2456_v57 }
 0x1b9   : > { %2558 = vst.msk [vmem:[#allocation3 + $0x18] sm:$0xf] %vm555_vm6, %v4579_v28 }
 0x1ba   : > { %2556 = vst.msk [vmem:[#allocation3 + $0x8] sm:$0xf] %vm555_vm6, %v4577_v7 }
 0x1e4   : > { %v4640_v63 = vpop.f32.mrb[4].mxu0 }
 0x1e5   : > { %v2401_v23 = vadd.f32 %v4640_v63, %v5981_v2  ;;  %v2392_v54 = vpop.f32.mrb[5].mxu0 }
 0x1e6   : > { %v2393_v13 = vadd.f32 %v5981_v2, %v2392_v54  ;;  %v4641_v60 = vpop.f32.mrb[6].mxu0 }
 0x1e7   : > { %v2461_v9 = vmax.f32 %v2401_v23, 0.0  ;;  %v2404_v16 = vadd.f32 %v4641_v60, %v5981_v2  ;;  %v2395_v47 = vpop.f32.mrb[7].mxu0  ;;  %v4987_v23 = vmov (!%p4438_p13), 0  }
 0x1e8   : > { %v2459_v50 = vmax.f32 %v2393_v13, 0.0  ;;  %v2396_v11 = vadd.f32 %v5981_v2, %v2395_v47  ;;  %2638 = vst.msk [vmem:[#allocation3 + $0x4] sm:$0xf] (!%p4438_p13), %vm555_vm6, %v4987_v23  ;;  %2639 = vst.msk [vmem:[#allocation3 + $0x8] sm:$0xf] (!%p4438_p13), %vm555_vm6, %v4987_v23 }
 0x1e9   : > { %v4582_v33 = vpack.c.bf16 %v2461_v9, %v2461_v9  ;;  %v2462_v30 = vmax.f32 %v2404_v16, 0.0 }
 0x1ea   : > { %v4580_v62 = vpack.c.bf16 %v2459_v50, %v2459_v50  ;;  %v2460_v15 = vmax.f32 %v2396_v11, 0.0 }
 0x1eb   : > { %2561 = vst.msk [vmem:[#allocation3 + $0x34] sm:$0xf] %vm555_vm6, %v4582_v33  ;;  %v4583_v56 = vpack.c.bf16 %v2462_v30, %v2462_v30 }
 0x1ec   : > { %2559 = vst.msk [vmem:[#allocation3 + $0x24] sm:$0xf] %vm555_vm6, %v4580_v62  ;;  %v4581_v44 = vpack.c.bf16 %v2460_v15, %v2460_v15 }
 0x1ed   : > { %2562 = vst.msk [vmem:[#allocation3 + $0x38] sm:$0xf] %vm555_vm6, %v4583_v56 }
 0x1ee   : > { %2560 = vst.msk [vmem:[#allocation3 + $0x28] sm:$0xf] %vm555_vm6, %v4581_v44 }
 0x218   : > { %v4644_v25 = vpop.f32.mrb[8].mxu0 }
 0x219   : > { %v2417_v0 = vadd.f32 %v4644_v25, %v5981_v2  ;;  %v2408_v35 = vpop.f32.mrb[9].mxu0 }
 0x21a   : > { %v2409_v10 = vadd.f32 %v5981_v2, %v2408_v35  ;;  %v4645_v19 = vpop.f32.mrb[10].mxu0 }
 0x21b   : > { %v2465_v27 = vmax.f32 %v2417_v0, 0.0  ;;  %v2420_v37 = vadd.f32 %v4645_v19, %v5981_v2  ;;  %v2411_v32 = vpop.f32.mrb[11].mxu0 }
 0x21c   : > { %v2463_v39 = vmax.f32 %v2409_v10, 0.0  ;;  %v2412_v8 = vadd.f32 %v5981_v2, %v2411_v32 }
 0x21d   : > { %v4586_v29 = vpack.c.bf16 %v2465_v27, %v2465_v27  ;;  %v2466_v36 = vmax.f32 %v2420_v37, 0.0 }
 0x21e   : > { %v4584_v6 = vpack.c.bf16 %v2463_v39, %v2463_v39  ;;  %v2464_v12 = vmax.f32 %v2412_v8, 0.0 }
 0x21f   : > { %2565 = vst.msk [vmem:[#allocation3 + $0x54] sm:$0xf] %vm555_vm6, %v4586_v29  ;;  %v4587_v18 = vpack.c.bf16 %v2466_v36, %v2466_v36 }
 0x220   : > { %2563 = vst.msk [vmem:[#allocation3 + $0x44] sm:$0xf] %vm555_vm6, %v4584_v6  ;;  %v4585_v22 = vpack.c.bf16 %v2464_v12, %v2464_v12 }
 0x221   : > { %2566 = vst.msk [vmem:[#allocation3 + $0x58] sm:$0xf] %vm555_vm6, %v4587_v18 }
 0x222   : > { %2564 = vst.msk [vmem:[#allocation3 + $0x48] sm:$0xf] %vm555_vm6, %v4585_v22 }
 0x24c   : > { %v4648_v52 = vpop.f32.mrb[12].mxu0 }
 0x24d   : > { %v2433_v20 = vadd.f32 %v4648_v52, %v5981_v2  ;;  %v2424_v41 = vpop.f32.mrb[13].mxu0 }
 0x24e   : > { %v2425_v38 = vadd.f32 %v5981_v2, %v2424_v41  ;;  %v4649_v48 = vpop.f32.mrb[14].mxu0 }
 0x24f   : > { %v2469_v4 = vmax.f32 %v2433_v20, 0.0  ;;  %v2436_v24 = vadd.f32 %v4649_v48, %v5981_v2  ;;  %v2427_v40 = vpop.f32.mrb[15].mxu0 }
 0x250   : > { %v2467_v42 = vmax.f32 %v2425_v38, 0.0  ;;  %v2428_v17 = vadd.f32 %v5981_v2, %v2427_v40 }
 0x251   : > { %v4590_v5 = vpack.c.bf16 %v2469_v4, %v2469_v4  ;;  %v2470_v21 = vmax.f32 %v2436_v24, 0.0 }
 0x252   : > { %v4588_v1 = vpack.c.bf16 %v2467_v42, %v2467_v42  ;;  %v2468_v59 = vmax.f32 %v2428_v17, 0.0 }
 0x253   : > { %2569 = vst.msk [vmem:[#allocation3 + $0x74] sm:$0xf] %vm555_vm6, %v4590_v5  ;;  %v4591_v46 = vpack.c.bf16 %v2470_v21, %v2470_v21 }
 0x254   : > { %2567 = vst.msk [vmem:[#allocation3 + $0x64] sm:$0xf] %vm555_vm6, %v4588_v1  ;;  %v4589_v55 = vpack.c.bf16 %v2468_v59, %v2468_v59 }
 0x255   : > { %2570 = vst.msk [vmem:[#allocation3 + $0x78] sm:$0xf] %vm555_vm6, %v4591_v46 }
 0x256   : > { %2568 = vst.msk [vmem:[#allocation3 + $0x68] sm:$0xf] %vm555_vm6, %v4589_v55 }
 0x27d   : > { %v4652_v49 = vpop.f32.mrb[16].mxu0 }
 0x27e   : > { %v2449_v45 = vadd.f32 %v4652_v49, %v5981_v2  ;;  %v2440_v26 = vpop.f32.mrb[17].mxu0 }
 0x27f   : > { %v2441_v43 = vadd.f32 %v5981_v2, %v2440_v26  ;;  %v4653_v34 = vpop.f32.mrb[18].mxu0 }
 0x280   : > { %v2473_v31 = vmax.f32 %v2449_v45, 0.0  ;;  %v2452_v58 = vadd.f32 %v4653_v34, %v5981_v2  ;;  %v2443_v51 = vpop.f32.mrb[19].mxu0 }
 0x281   : > { %v2471_v61 = vmax.f32 %v2441_v43, 0.0  ;;  %v2444_v3 = vadd.f32 %v5981_v2, %v2443_v51  ;;  %2637 = sbr.rel (%p4438_p13) target bundleno = 648 (0x288), region = 52 }
 0x282   : > { %v4594_v53 = vpack.c.bf16 %v2473_v31, %v2473_v31  ;;  %v2474_v14 = vmax.f32 %v2452_v58, 0.0 }
 0x283   : > { %v4592_v57 = vpack.c.bf16 %v2471_v61, %v2471_v61  ;;  %v2472_v28 = vmax.f32 %v2444_v3, 0.0 }
 0x284   : > { %2573 = vst.msk [vmem:[#allocation3 + $0x94] sm:$0xf] %vm555_vm6, %v4594_v53  ;;  %v4595_v7 = vpack.c.bf16 %v2474_v14, %v2474_v14 }
 0x285   : > { %2571 = vst.msk [vmem:[#allocation3 + $0x84] sm:$0xf] %vm555_vm6, %v4592_v57  ;;  %v4593_v63 = vpack.c.bf16 %v2472_v28, %v2472_v28 }
 0x286   : > { %2574 = vst.msk [vmem:[#allocation3 + $0x98] sm:$0xf] %vm555_vm6, %v4595_v7 }
 0x287   : > { %2572 = vst.msk [vmem:[#allocation3 + $0x88] sm:$0xf] %vm555_vm6, %v4593_v63 }
 0x288 PF: > { %p4439_p0 = scmp.ne.s32.totalorder %s4961_s24, 1 }
 0x289   : > { %v4988_v2 = vmov (!%p4439_p0), 0  }
 0x28a   : > { %2642 = sbr.rel (%p4439_p0) target bundleno = 657 (0x291), region = 56  ;;  %2644 = vst.msk [vmem:[#allocation3 + $0x94] sm:$0xf] (!%p4439_p0), %vm555_vm6, %v4988_v2  ;;  %2645 = vst.msk [vmem:[#allocation3 + $0x98] sm:$0xf] (!%p4439_p0), %vm555_vm6, %v4988_v2 }
 0x291 PF: > { %v6029_v54 = vld [vmem:[#allocation3 + $0x14] sm:$0xf]  ;;  %v6031_v13 = vld [vmem:[#allocation3 + $0x18] sm:$0xf]  ;;  %v6033_v60 = vld [vmem:[#allocation3 + $0x4] sm:$0xf] }
 0x292   : > { %v4457_v9 = vcombine.low %v6029_v54, %v6031_v13  ;;  %v6037_v16 = vld [vmem:[#allocation3 + $0x8] sm:$0xf]  ;;  %v4840_v50 = vld [vmem:[#allocation3 + $0xc] ss:$0 sps:$4 sm:$0x11]   ;;  %v4902_v63 = vld [vmem:[%s6639_s5] sm:$0xff]  }
 0x293   : > { %v4456_v47 = vcombine.low %v6033_v60, %v6037_v16  ;;  %v4841_v11 = vld [vmem:[#allocation3 + $0x1c] ss:$0 sps:$4 sm:$0x11]   ;;  %v2921_v56 = vrot.slane %v4840_v50, 5  ;;  %v2684_v37 = vld [vmem:[#allocation3 + $0x28] sm:$0xf]  ;;  %4654 = vmatprep.subr.bf16.mxu1 %v4902_v63 }
 0x294   : > { %v2923_v33 = vrot.slane %v4457_v9, 5  ;;  %v2825_v30 = vshrl.u32 %v4457_v9, 16  ;;  %v2828_v62 = vshll.u32 %v4457_v9, 16  ;;  %v2924_v0 = vrot.slane %v4841_v11, 5  ;;  %v2683_v39 = vld [vmem:[#allocation3 + $0x24] sm:$0xf]  ;;  %4655 = vmatpush3.bf16.msra.mxu1 %v4902_v63 }
 0x295   : > { %v2920_v15 = vrot.slane %v4456_v47, 5  ;;  %v2817_v44 = vshrl.u32 %v4456_v47, 16  ;;  %v2820_v25 = vshll.u32 %v4456_v47, 16  ;;  %v2681_v29 = vld [vmem:[#allocation3 + $0x18] sm:$0xf]  ;;  %v4489_v22 = vcombine.low %v2683_v39, %v2684_v37 }
 0x296   : > { %2948 = vrot.lane.b32.xlu0 %v2923_v33, %s4983_s21  ;;  %v2827_v19 = vrot.slane %v2825_v30, 4  ;;  %v2830_v27 = vrot.slane %v2828_v62, 5  ;;  %v2680_v36 = vld [vmem:[#allocation3 + $0x14] sm:$0xf]  ;;  %v2679_v12 = vld [vmem:[#allocation3 + $0x10] sm:$0x8]  ;;  %v2925_v52 = vsel %vm1064_vm7, %v2923_v33, %v2924_v0  ;;  %v4473_v20 = vcombine.low %v2681_v29, %v2681_v29 }
 0x297   : > { %2944 = vrot.lane.b32.xlu1 %v2920_v15, %s4983_s21  ;;  %v2819_v35 = vrot.slane %v2817_v44, 4  ;;  %v2822_v10 = vrot.slane %v2820_v25, 5  ;;  %v2922_v32 = vsel %vm1064_vm7, %v2920_v15, %v2921_v56  ;;  %v4488_v18 = vcombine.low %v2680_v36, %v2681_v29  ;;  %v2682_v38 = vld [vmem:[#allocation3 + $0x20] sm:$0x8]  ;;  %v2717_v51 = vld [vmem:[#allocation3 + $0x38] sm:$0xf] }
 0x298   : > { %v2831_v6 = vor.u32 %v2830_v27, %v2827_v19  ;;  %v4472_v41 = vcombine.low %v2679_v12, %v2680_v36  ;;  %v3089_v48 = vshrl.u32 %v4489_v22, 16  ;;  %v3092_v4 = vshll.u32 %v4489_v22, 16  ;;  %v4848_v46 = vld [vmem:[#allocation3 + $0x1c] ss:$0 sps:$4 sm:$0x11]   ;;  %v4905_v15 = vld [vmem:[%s6639_s5 + $0x8] sm:$0xff]  }
 0x299   : > { %v2823_v8 = vor.u32 %v2822_v10, %v2819_v35  ;;  %v3081_v24 = vshrl.u32 %v4488_v18, 16  ;;  %v3084_v40 = vshll.u32 %v4488_v18, 16  ;;  %v4475_v42 = vcombine.low %v2684_v37, %v2684_v37  ;;  %v4849_v43 = vld [vmem:[#allocation3 + $0x2c] ss:$0 sps:$4 sm:$0x11]   ;;  %4656 = vmatprep.subr.bf16.mxu1 %v4905_v15 }
 0x29a   : > { %v4474_v17 = vcombine.low %v2682_v38, %v2683_v39  ;;  %v3091_v5 = vrot.slane %v3089_v48, 4  ;;  %v3094_v21 = vrot.slane %v3092_v4, 5  ;;  %v3184_v45 = vrot.slane %v4488_v18, 5  ;;  %v2716_v61 = vld [vmem:[#allocation3 + $0x34] sm:$0xf]  ;;  %4657 = vmatpush3.bf16.msra.mxu1 %v4905_v15 }
 0x29b   : > { %2946 = vrot.lane.b32.xlu1 %v2922_v32, %s4983_s21  ;;  %2880 = vrot.lane.b32.xlu0 %v2823_v8, %s4984_s22  ;;  %v3083_v1 = vrot.slane %v3081_v24, 4  ;;  %v3086_v59 = vrot.slane %v3084_v40, 5  ;;  %v3185_v26 = vrot.slane %v4848_v46, 5  ;;  %v3187_v31 = vrot.slane %v4489_v22, 5  ;;  %v2714_v3 = vld [vmem:[#allocation3 + $0x28] sm:$0xf] }
 0x29c   : > { %v3095_v55 = vor.u32 %v3094_v21, %v3091_v5  ;;  %v3188_v58 = vrot.slane %v4849_v43, 5  ;;  %v2713_v53 = vld [vmem:[#allocation3 + $0x24] sm:$0xf]  ;;  %v2712_v14 = vld [vmem:[#allocation3 + $0x20] sm:$0x8]  ;;  %v6058_v28 = vcombine.low %v2716_v61, %v2717_v51  ;;  %v4505_v23 = vcombine.low %v2714_v3, %v2714_v3  ;;  %v4907_v39 = vld [vmem:[%s6639_s5 + $0x10] sm:$0xff]  }
 0x29d   : > { %v3087_v49 = vor.u32 %v3086_v59, %v3083_v1  ;;  %v3186_v34 = vsel %vm1064_vm7, %v3184_v45, %v3185_v26  ;;  %v4520_v57 = vcombine.low %v2713_v53, %v2714_v3  ;;  %v4504_v2 = vcombine.low %v2712_v14, %v2713_v53  ;;  %v2715_v9 = vld [vmem:[#allocation3 + $0x30] sm:$0x8]  ;;  %v6064_v47 = vld [vmem:[#allocation3 + $0x24] sm:$0xf]  ;;  %v6070_v62 = vld [vmem:[#allocation3 + $0x28] sm:$0xf]  ;;  %4658 = vmatprep.subr.bf16.mxu1 %v4907_v39 }
 0x29e   : > { %v3189_v7 = vsel %vm1064_vm7, %v3187_v31, %v3188_v58  ;;  %v3353_v50 = vshrl.u32 %v6058_v28, 16  ;;  %v3356_v11 = vshll.u32 %v6058_v28, 16  ;;  %v4507_v56 = vcombine.low %v2717_v51, %v2717_v51  ;;  %v4856_v25 = vld [vmem:[#allocation3 + $0x2c] ss:$0 sps:$4 sm:$0x11]   ;;  %4659 = vmatpush3.bf16.msra.mxu1 %v4907_v39 }
 0x29f   : > { %2950 = vrot.lane.b32.xlu1 %v2925_v52, %s4983_s21  ;;  %2882 = vrot.lane.b32.xlu0 %v2831_v6, %s4984_s22  ;;  %v3345_v33 = vshrl.u32 %v4520_v57, 16  ;;  %v3348_v30 = vshll.u32 %v4520_v57, 16  ;;  %v4506_v44 = vcombine.low %v2715_v9, %v2716_v61  ;;  %v4458_v0 = vcombine.low %v6064_v47, %v6070_v62  ;;  %v6079_v37 = vld [vmem:[#allocation3 + $0x34] sm:$0xf]  ;;  %v6081_v32 = vld [vmem:[#allocation3 + $0x38] sm:$0xf] }
 0x2a0   : > { %v3355_v35 = vrot.slane %v3353_v50, 4  ;;  %v3358_v10 = vrot.slane %v3356_v11, 5  ;;  %v4459_v12 = vcombine.low %v6079_v37, %v6081_v32  ;;  %v3448_v18 = vrot.slane %v4520_v57, 5  ;;  %v4909_v52 = vld [vmem:[%s6639_s5 + $0x18] sm:$0xff]   ;;  %v2689_v58 = vld [vmem:[#allocation3 + $0x44] sm:$0xf] }
 0x2a1   : > { %v3347_v19 = vrot.slane %v3345_v33, 4  ;;  %v3350_v27 = vrot.slane %v3348_v30, 5  ;;  %v2833_v8 = vshrl.u32 %v4458_v0, 16  ;;  %v2836_v6 = vshll.u32 %v4458_v0, 16  ;;  %4660 = vmatprep.subr.bf16.mxu1 %v4909_v52  ;;  %v2687_v51 = vld [vmem:[#allocation3 + $0x38] sm:$0xf] }
 0x2a2   : > { %v3359_v29 = vor.u32 %v3358_v10, %v3355_v35  ;;  %v3449_v22 = vrot.slane %v4856_v25, 5  ;;  %v2841_v38 = vshrl.u32 %v4459_v12, 16  ;;  %v2844_v48 = vshll.u32 %v4459_v12, 16  ;;  %v4859_v24 = vld [vmem:[#allocation3 + $0x3c] ss:$0 sps:$4 sm:$0x11]   ;;  %4661 = vmatpush3.bf16.msra.mxu1 %v4909_v52 }
 0x2a3   : > { %3042 = vrot.lane.b32.xlu1 %v4473_v20, %s4979_s23  ;;  %3040 = vrot.lane.b32.xlu0 %v4472_v41, %s4979_s23  ;;  %v3351_v36 = vor.u32 %v3350_v27, %v3347_v19  ;;  %v2835_v20 = vrot.slane %v2833_v8, 4  ;;  %v2838_v41 = vrot.slane %v2836_v6, 5  ;;  %v3451_v40 = vrot.slane %v6058_v28, 5  ;;  %v4860_v1 = vld [vmem:[#allocation3 + $0x2c] ss:$0 sps:$4 sm:$0x11]  }
 0x2a4   : > { %v3450_v4 = vsel %vm1064_vm7, %v3448_v18, %v3449_v22  ;;  %v2846_v5 = vrot.slane %v2844_v48, 5  ;;  %v3452_v21 = vrot.slane %v4859_v24, 5  ;;  %v4861_v46 = vld [vmem:[#allocation3 + $0x3c] ss:$0 sps:$4 sm:$0x11]   ;;  %v2929_v26 = vrot.slane %v4459_v12, 5 }
 0x2a5   : > { %v2930_v43 = vrot.slane %v4861_v46, 5  ;;  %v2686_v61 = vld [vmem:[#allocation3 + $0x34] sm:$0xf]  ;;  %v2685_v3 = vld [vmem:[#allocation3 + $0x30] sm:$0x8] }
 0x2a6   : > { %v4490_v53 = vcombine.low %v2686_v61, %v2687_v51  ;;  %v4915_v28 = vld [vmem:[%s6639_s5 + $0x20] ss:$0 sps:$4 sm:$0xff]   ;;  %v4476_v63 = vcombine.low %v2685_v3, %v2686_v61  ;;  %v4868_v35 = vld [vmem:[#allocation3 + $0x3c] ss:$0 sps:$4 sm:$0x11]  }
 0x2a7   : > { %3046 = vrot.lane.b32.xlu1 %v4475_v42, %s4979_s23  ;;  %3044 = vrot.lane.b32.xlu0 %v4474_v17, %s4979_s23  ;;  %v2839_v42 = vor.u32 %v2838_v41, %v2835_v20  ;;  %v2843_v17 = vrot.slane %v2841_v38, 4  ;;  %v2931_v57 = vsel %vm1064_vm7, %v2929_v26, %v2930_v43  ;;  %v3191_v39 = vrot.slane %v4868_v35, 5  ;;  %v4869_v8 = vld [vmem:[#allocation3 + $0x4c] ss:$0 sps:$4 sm:$0x11]  }
 0x2a8   : > { %4681 = vmatprep.subr.msk.bf16.mxu1 %vm2338_vm9, %v4915_v28  ;;  %v3097_v11 = vshrl.u32 %v4490_v53, 16  ;;  %v3100_v33 = vshll.u32 %v4490_v53, 16  ;;  %v3190_v27 = vrot.slane %v4490_v53, 5  ;;  %v3194_v6 = vrot.slane %v4869_v8, 5  ;;  %v2723_v12 = vld [vmem:[#allocation3 + $0x58] sm:$0xf] }
 0x2a9   : > { %v2847_v59 = vor.u32 %v2846_v5, %v2843_v17  ;;  %v2720_v22 = vld [vmem:[#allocation3 + $0x48] sm:$0xf]  ;;  %v2719_v52 = vld [vmem:[#allocation3 + $0x44] sm:$0xf]  ;;  %v2718_v20 = vld [vmem:[#allocation3 + $0x40] sm:$0x8]  ;;  %v4511_v46 = vcombine.low %v2723_v12, %v2723_v12 }
 0x2aa   : > { %v3099_v25 = vrot.slane %v3097_v11, 4  ;;  %v4522_v41 = vcombine.low %v2719_v52, %v2720_v22  ;;  %v4508_v24 = vcombine.low %v2718_v20, %v2719_v52  ;;  %v4879_v11 = vld [vmem:[#allocation3 + $0x5c] ss:$0 sps:$4 sm:$0x11]  }
 0x2ab   : > { %3146 = vrot.lane.b32.xlu1 %v3095_v55, %s4982_s20  ;;  %3144 = vrot.lane.b32.xlu0 %v3087_v49, %s4982_s20  ;;  %v3453_v55 = vsel %vm1064_vm7, %v3451_v40, %v3452_v21  ;;  %v2926_v49 = vrot.slane %v4458_v0, 5  ;;  %v3102_v0 = vrot.slane %v3100_v33, 5 }
 0x2ac   : > { %v3361_v21 = vshrl.u32 %v4522_v41, 16 }
 0x2ad   : > { %v3103_v19 = vor.u32 %v3102_v0, %v3099_v25  ;;  %v4880_v25 = vld [vmem:[#allocation3 + $0x4c] ss:$0 sps:$4 sm:$0x11]  }
 0x2af   : > { %3210 = vrot.lane.b32.xlu1 %v3186_v34, %s4981_s17  ;;  %3208 = vrot.lane.b32.xlu0 %v3184_v45, %s4981_s17  ;;  %v2927_v45 = vrot.slane %v4860_v1, 5  ;;  %v2690_v34 = vld [vmem:[#allocation3 + $0x48] sm:$0xf]  ;;  %v3364_v1 = vshll.u32 %v4522_v41, 16 }
 0x2b0   : > { %v4491_v14 = vcombine.low %v2689_v58, %v2690_v34  ;;  %v4479_v30 = vcombine.low %v2690_v34, %v2690_v34  ;;  %v3363_v34 = vrot.slane %v3361_v21, 4 }
 0x2b2   : > { %v3105_v9 = vshrl.u32 %v4491_v14, 16  ;;  %v3108_v50 = vshll.u32 %v4491_v14, 16 }
 0x2b3   : > { %3214 = vrot.lane.b32.xlu1 %v3189_v7, %s4981_s17  ;;  %3212 = vrot.lane.b32.xlu0 %v3187_v31, %s4981_s17  ;;  %v2928_v31 = vsel %vm1064_vm7, %v2926_v49, %v2927_v45  ;;  %v4477_v7 = vcombine.low %v2687_v51, %v2687_v51  ;;  %v6137_v51 = vld [vmem:[#allocation3 + $0x58] sm:$0xf] }
 0x2b7   : > { %3306 = vrot.lane.b32.xlu1 %v4505_v23, %s4980_s10  ;;  %3304 = vrot.lane.b32.xlu0 %v4504_v2, %s4980_s10  ;;  %v3940_v23 = vsel %vm2338_vm9, %v4915_v28, 0  ;;  %v2688_v2 = vld [vmem:[#allocation3 + $0x40] sm:$0x8]  ;;  %v3454_v28 = vrot.slane %v4522_v41, 5 }
 0x2b8   : > { %4663 = vmatpush3.bf16.msra.mxu1 %v3940_v23  ;;  %v4478_v15 = vcombine.low %v2688_v2, %v2689_v58  ;;  %v6135_v58 = vld [vmem:[#allocation3 + $0x54] sm:$0xf] }
 0x2bb   : > { %3310 = vrot.lane.b32.xlu1 %v4507_v56, %s4980_s10  ;;  %3308 = vrot.lane.b32.xlu0 %v4506_v44, %s4980_s10  ;;  %v3107_v56 = vrot.slane %v3105_v9, 4  ;;  %v3110_v44 = vrot.slane %v3108_v50, 5 }
 0x2bd   : > { %v3111_v10 = vor.u32 %v3110_v44, %v3107_v56  ;;  %v3458_v44 = vrot.slane %v4879_v11, 5  ;;  %v2728_v11 = vld [vmem:[#allocation3 + $0x74] sm:$0xf] }
 0x2bf   : > { %3410 = vrot.lane.b32.xlu1 %v3359_v29, %s4985_s13  ;;  %3408 = vrot.lane.b32.xlu0 %v3351_v36, %s4985_s13  ;;  %v3192_v29 = vsel %vm1064_vm7, %v3190_v27, %v3191_v39  ;;  %v3193_v36 = vrot.slane %v4491_v14, 5 }
 0x2c1   : > { %v3195_v48 = vsel %vm1064_vm7, %v3193_v36, %v3194_v6  ;;  %v2695_v6 = vld [vmem:[#allocation3 + $0x64] sm:$0xf] }
 0x2c3   : > { %3474 = vrot.lane.b32.xlu1 %v3450_v4, %s4986_s25  ;;  %3472 = vrot.lane.b32.xlu0 %v3448_v18, %s4986_s25  ;;  %v2722_v18 = vld [vmem:[#allocation3 + $0x54] sm:$0xf]  ;;  %v4509_v4 = vcombine.low %v2720_v22, %v2720_v22  ;;  %v2691_v22 = vld [vmem:[#allocation3 + $0x50] sm:$0x8] }
 0x2c4   : > { %v4523_v38 = vcombine.low %v2722_v18, %v2723_v12  ;;  %v2693_v12 = vld [vmem:[#allocation3 + $0x58] sm:$0xf] }
 0x2c6   : > { %v3369_v17 = vshrl.u32 %v4523_v38, 16  ;;  %v3372_v5 = vshll.u32 %v4523_v38, 16  ;;  %v3457_v33 = vrot.slane %v4523_v38, 5  ;;  %v4481_v38 = vcombine.low %v2693_v12, %v2693_v12 }
 0x2c7   : > { %3476 = vrot.lane.b32.xlu1 %v3451_v40, %s4986_s25  ;;  %2884 = vrot.lane.b32.xlu0 %v2839_v42, %s4984_s22  ;;  %v2721_v40 = vld [vmem:[#allocation3 + $0x50] sm:$0x8]  ;;  %v6125_v42 = vld [vmem:[#allocation3 + $0x44] sm:$0xf] }
 0x2c8   : > { %v3374_v43 = vrot.slane %v3372_v5, 5  ;;  %v3459_v35 = vsel %vm1064_vm7, %v3457_v33, %v3458_v44  ;;  %v2724_v44 = vld [vmem:[#allocation3 + $0x60] sm:$0x8] }
 0x2cb   : > { %2886 = vrot.lane.b32.xlu1 %v2847_v59, %s4984_s22  ;;  %3478 = vrot.lane.b32.xlu0 %v3453_v55, %s4986_s25  ;;  %v6129_v59 = vld [vmem:[#allocation3 + $0x48] sm:$0xf]  ;;  %v4510_v55 = vcombine.low %v2721_v40, %v2722_v18  ;;  %v2692_v18 = vld [vmem:[#allocation3 + $0x54] sm:$0xf] }
 0x2cc   : > { %v4460_v45 = vcombine.low %v6125_v42, %v6129_v59  ;;  %v4492_v52 = vcombine.low %v2692_v18, %v2693_v12 }
 0x2ce   : > { %v2849_v61 = vshrl.u32 %v4460_v45, 16  ;;  %v2852_v14 = vshll.u32 %v4460_v45, 16  ;;  %v3116_v5 = vshll.u32 %v4492_v52, 16 }
 0x2cf   : > { %2954 = vrot.lane.b32.xlu1 %v2928_v31, %s4983_s21  ;;  %2952 = vrot.lane.b32.xlu0 %v2926_v49, %s4983_s21  ;;  %v4876_v49 = vld [vmem:[#allocation3 + $0x4c] ss:$0 sps:$4 sm:$0x11]   ;;  %v3366_v31 = vrot.slane %v3364_v1, 5 }
 0x2d0   : > { %v2854_v23 = vrot.slane %v2852_v14, 5  ;;  %v3196_v14 = vrot.slane %v4492_v52, 5 }
 0x2d1   : > { %v3367_v53 = vor.u32 %v3366_v31, %v3363_v34  ;;  %v4890_v34 = vld [vmem:[#allocation3 + $0x5c] ss:$0 sps:$4 sm:$0x11]  }
 0x2d3   : > { %2958 = vrot.lane.b32.xlu1 %v2931_v57, %s4983_s21  ;;  %2956 = vrot.lane.b32.xlu0 %v2929_v26, %s4983_s21  ;;  %v3371_v26 = vrot.slane %v3369_v17, 4  ;;  %v4461_v57 = vcombine.low %v6135_v58, %v6137_v51  ;;  %v3113_v17 = vshrl.u32 %v4492_v52, 16 }
 0x2d5   : > { %v3375_v3 = vor.u32 %v3374_v43, %v3371_v26  ;;  %v2857_v2 = vshrl.u32 %v4461_v57, 16  ;;  %v2860_v9 = vshll.u32 %v4461_v57, 16  ;;  %v2935_v8 = vrot.slane %v4461_v57, 5 }
 0x2d6   : > { %v3115_v26 = vrot.slane %v3113_v17, 4  ;;  %v3118_v43 = vrot.slane %v3116_v5, 5  ;;  %v3197_v57 = vrot.slane %v4890_v34, 5 }
 0x2d7   : > { %3050 = vrot.lane.b32.xlu1 %v4477_v7, %s4979_s23  ;;  %3048 = vrot.lane.b32.xlu0 %v4476_v63, %s4979_s23  ;;  %v3455_v7 = vrot.slane %v4876_v49, 5  ;;  %v2851_v63 = vrot.slane %v2849_v61, 4  ;;  %v2862_v56 = vrot.slane %v2860_v9, 5 }
 0x2d9   : > { %v3456_v50 = vsel %vm1064_vm7, %v3454_v28, %v3455_v7 }
 0x2db   : > { %3054 = vrot.lane.b32.xlu1 %v4479_v30, %s4979_s23  ;;  %3052 = vrot.lane.b32.xlu0 %v4478_v15, %s4979_s23  ;;  %v2855_v30 = vor.u32 %v2854_v23, %v2851_v63  ;;  %v2859_v15 = vrot.slane %v2857_v2, 4  ;;  %v3198_v23 = vsel %vm1064_vm7, %v3196_v14, %v3197_v57 }
 0x2dd   : > { %v2863_v0 = vor.u32 %v2862_v56, %v2859_v15  ;;  %v2726_v15 = vld [vmem:[#allocation3 + $0x68] sm:$0xf]  ;;  %v2725_v56 = vld [vmem:[#allocation3 + $0x64] sm:$0xf] }
 0x2df   : > { %3150 = vrot.lane.b32.xlu1 %v3111_v10, %s4982_s20  ;;  %3148 = vrot.lane.b32.xlu0 %v3103_v19, %s4982_s20  ;;  %v2932_v10 = vrot.slane %v4460_v45, 5  ;;  %v2933_v19 = vrot.slane %v4880_v25, 5  ;;  %v6184_v25 = vcombine.low %v2725_v56, %v2726_v15 }
 0x2e1   : > { %v2934_v39 = vsel %vm1064_vm7, %v2932_v10, %v2933_v19  ;;  %v3377_v12 = vshrl.u32 %v6184_v25, 16 }
 0x2e3   : > { %3218 = vrot.lane.b32.xlu1 %v3192_v29, %s4981_s17  ;;  %3216 = vrot.lane.b32.xlu0 %v3190_v27, %s4981_s17  ;;  %v4881_v27 = vld [vmem:[#allocation3 + $0x5c] ss:$0 sps:$4 sm:$0x11]   ;;  %v3379_v17 = vrot.slane %v3377_v12, 4 }
 0x2e4   : > { %v2936_v29 = vrot.slane %v4881_v27, 5  ;;  %v4513_v27 = vcombine.low %v2726_v15, %v2726_v15 }
 0x2e6   : > { %v2937_v41 = vsel %vm1064_vm7, %v2935_v8, %v2936_v29  ;;  %v6193_v29 = vld [vmem:[#allocation3 + $0x64] sm:$0xf] }
 0x2e7   : > { %3222 = vrot.lane.b32.xlu1 %v3195_v48, %s4981_s17  ;;  %3220 = vrot.lane.b32.xlu0 %v3193_v36, %s4981_s17  ;;  %v2696_v36 = vld [vmem:[#allocation3 + $0x68] sm:$0xf]  ;;  %v4480_v48 = vcombine.low %v2691_v22, %v2692_v18  ;;  %v3380_v18 = vshll.u32 %v6184_v25, 16 }
 0x2e8   : > { %v4493_v20 = vcombine.low %v2695_v6, %v2696_v36  ;;  %v6201_v22 = vld [vmem:[#allocation3 + $0x68] sm:$0xf] }
 0x2e9   : > { %v3382_v5 = vrot.slane %v3380_v18, 5 }
 0x2ea   : > { %v3124_v40 = vshll.u32 %v4493_v20, 16  ;;  %v3199_v2 = vrot.slane %v4493_v20, 5 }
 0x2eb   : > { %3314 = vrot.lane.b32.xlu1 %v4509_v4, %s4980_s10  ;;  %3312 = vrot.lane.b32.xlu0 %v4508_v24, %s4980_s10  ;;  %v2694_v4 = vld [vmem:[#allocation3 + $0x60] sm:$0x8]  ;;  %v3121_v24 = vshrl.u32 %v4493_v20, 16  ;;  %v3383_v34 = vor.u32 %v3382_v5, %v3379_v17  ;;  %v6247_v17 = vld [vmem:[#allocation3 + $0x78] sm:$0xf] }
 0x2ec   : > { %v3126_v45 = vrot.slane %v3124_v40, 5 }
 0x2ed   : > { %v3123_v49 = vrot.slane %v3121_v24, 4 }
 0x2ef   : > { %3318 = vrot.lane.b32.xlu1 %v4511_v46, %s4980_s10  ;;  %3316 = vrot.lane.b32.xlu0 %v4510_v55, %s4980_s10  ;;  %v4483_v46 = vcombine.low %v2696_v36, %v2696_v36  ;;  %v4482_v55 = vcombine.low %v2694_v4, %v2695_v6  ;;  %v6209_v4 = vcombine.low %v6193_v29, %v6201_v22 }
 0x2f3   : > { %3414 = vrot.lane.b32.xlu1 %v3375_v3, %s4985_s13  ;;  %3412 = vrot.lane.b32.xlu0 %v3367_v53, %s4985_s13  ;;  %v3127_v3 = vor.u32 %v3126_v45, %v3123_v49  ;;  %v3119_v53 = vor.u32 %v3118_v43, %v3115_v26  ;;  %v2865_v26 = vshrl.u32 %v6209_v4, 16 }
 0x2f7   : > { %3482 = vrot.lane.b32.xlu1 %v3456_v50, %s4986_s25  ;;  %3480 = vrot.lane.b32.xlu0 %v3454_v28, %s4986_s25  ;;  %v4893_v28 = vld [vmem:[#allocation3 + $0x6c] ss:$0 sps:$4 sm:$0x11]   ;;  %v2729_v50 = vld [vmem:[#allocation3 + $0x78] sm:$0xf] }
 0x2f8   : > { %v3200_v9 = vrot.slane %v4893_v28, 5  ;;  %v2646_v28 = vld [vmem:[#allocation3] sm:$0x8] }
 0x2fb   : > { %3484 = vrot.lane.b32.xlu1 %v3457_v33, %s4986_s25  ;;  %2888 = vrot.lane.b32.xlu0 %v2855_v30, %s4984_s22 }
 0x2ff   : > { %2890 = vrot.lane.b32.xlu1 %v2863_v0, %s4984_s22  ;;  %3486 = vrot.lane.b32.xlu0 %v3459_v35, %s4986_s25  ;;  %v6186_v0 = vcombine.low %v2728_v11, %v2729_v50  ;;  %v3201_v35 = vsel %vm1064_vm7, %v3199_v2, %v3200_v9  ;;  %v2649_v9 = vld [vmem:[#allocation3 + $0x10] sm:$0x8] }
 0x300   : > { %v4442_v12 = vcombine.low %v2649_v9, %v6029_v54 }
 0x301   : > { %v3385_v36 = vshrl.u32 %v6186_v0, 16  ;;  %v3388_v6 = vshll.u32 %v6186_v0, 16  ;;  %v3463_v18 = vrot.slane %v6186_v0, 5 }
 0x303   : > { %2962 = vrot.lane.b32.xlu1 %v2934_v39, %s4983_s21  ;;  %2960 = vrot.lane.b32.xlu0 %v2932_v10, %s4983_s21  ;;  %v4512_v39 = vcombine.low %v2724_v44, %v2725_v56  ;;  %v3387_v24 = vrot.slane %v3385_v36, 4  ;;  %v3390_v40 = vrot.slane %v3388_v6, 5  ;;  %v4908_v6 = vld [vmem:[#allocation3 + $0x7c] ss:$0 sps:$4 sm:$0x11]  }
 0x305   : > { %v3391_v43 = vor.u32 %v3390_v40, %v3387_v24 }
 0x307   : > { %2966 = vrot.lane.b32.xlu1 %v2937_v41, %s4983_s21  ;;  %2964 = vrot.lane.b32.xlu0 %v2935_v8, %s4983_s21  ;;  %v2727_v8 = vld [vmem:[#allocation3 + $0x70] sm:$0x8]  ;;  %v4515_v41 = vcombine.low %v2729_v50, %v2729_v50  ;;  %v2867_v50 = vrot.slane %v2865_v26, 4  ;;  %v2942_v26 = vrot.slane %v4908_v6, 5 }
 0x308   : > { %v6159_v21 = vpop.permute.xlu0 %2948 }
 0x309   : > { %v6161_v1 = vpop.permute.xlu1 %2944 }
 0x30b   : > { %3058 = vrot.lane.b32.xlu1 %v4481_v38, %s4979_s23  ;;  %3056 = vrot.lane.b32.xlu0 %v4480_v48, %s4979_s23  ;;  %v4514_v38 = vcombine.low %v2727_v8, %v2728_v11  ;;  %v4900_v48 = vld [vmem:[#allocation3 + $0x6c] ss:$0 sps:$4 sm:$0x11]   ;;  %v4904_v11 = vld [vmem:[#allocation3 + $0x7c] ss:$0 sps:$4 sm:$0x11]  }
 0x30c   : > { %v3461_v57 = vrot.slane %v4900_v48, 5 }
 0x30d   : > { %v6165_v31 = vpop.permute.xlu1 %2946  ;;  %v6167_v61 = vpop.permute.xlu0 %2880 }
 0x30f   : > { %3062 = vrot.lane.b32.xlu1 %v4483_v46, %s4979_s23  ;;  %3060 = vrot.lane.b32.xlu0 %v4482_v55, %s4979_s23  ;;  %v6213_v46 = vld [vmem:[#allocation3 + $0x74] sm:$0xf]  ;;  %v6215_v55 = vld [vmem:[#allocation3 + $0x78] sm:$0xf] }
 0x311   : > { %v6171_v7 = vpop.permute.xlu1 %2950  ;;  %v6173_v63 = vpop.permute.xlu0 %2882 }
 0x313   : > { %3154 = vrot.lane.b32.xlu1 %v3127_v3, %s4982_s20  ;;  %3152 = vrot.lane.b32.xlu0 %v3119_v53, %s4982_s20  ;;  %v2868_v3 = vshll.u32 %v6209_v4, 16  ;;  %v6227_v53 = vcombine.low %v6213_v46, %v6215_v55 }
 0x315   : > { %v6178_v33 = vpop.permute.xlu1 %3042  ;;  %v6180_v30 = vpop.permute.xlu0 %3040  ;;  %v2870_v15 = vrot.slane %v2868_v3, 5  ;;  %v2873_v56 = vshrl.u32 %v6227_v53, 16  ;;  %v2876_v44 = vshll.u32 %v6227_v53, 16  ;;  %v4443_v3 = vcombine.low %v6031_v13, %v6031_v13 }
 0x316   : > { %v4485_v13 = vcombine.low %v6247_v17, %v6247_v17 }
 0x317   : > { %3226 = vrot.lane.b32.xlu1 %v3198_v23, %s4981_s17  ;;  %3224 = vrot.lane.b32.xlu0 %v3196_v14, %s4981_s17  ;;  %v3460_v14 = vrot.slane %v6184_v25, 5  ;;  %v2871_v48 = vor.u32 %v2870_v15, %v2867_v50  ;;  %v2875_v24 = vrot.slane %v2873_v56, 4  ;;  %v2878_v40 = vrot.slane %v2876_v44, 5 }
 0x319   : > { %v6189_v10 = vpop.permute.xlu1 %3046  ;;  %v6191_v19 = vpop.permute.xlu0 %3044  ;;  %v3462_v25 = vsel %vm1064_vm7, %v3460_v14, %v3461_v57  ;;  %v3511_v57 = vsel %vm1795_vm11, %v4442_v12, %v6173_v63 }
 0x31b   : > { %3230 = vrot.lane.b32.xlu1 %v3201_v35, %s4981_s17  ;;  %3228 = vrot.lane.b32.xlu0 %v3199_v2, %s4981_s17  ;;  %v4906_v35 = vld [vmem:[#allocation3 + $0x6c] ss:$0 sps:$4 sm:$0x11]  }
 0x31d   : > { %v6203_v52 = vpop.permute.xlu1 %3146  ;;  %v6205_v20 = vpop.permute.xlu0 %3144 }
 0x31f   : > { %3322 = vrot.lane.b32.xlu1 %v4513_v27, %s4980_s10  ;;  %3320 = vrot.lane.b32.xlu0 %v4512_v39, %s4980_s10  ;;  %v4441_v27 = vcombine.low %v6037_v16, %v6037_v16  ;;  %v4440_v39 = vcombine.low %v2646_v28, %v6033_v60  ;;  %v2939_v16 = vrot.slane %v4906_v35, 5 }
 0x321   : > { %v6217_v49 = vpop.permute.xlu1 %3210  ;;  %v6219_v45 = vpop.permute.xlu0 %3208  ;;  %v3508_v60 = vsel %vm1795_vm11, %v4441_v27, %v6167_v61  ;;  %v3506_v54 = vsel %vm1795_vm11, %v4440_v39, %v6167_v61  ;;  %v2879_v61 = vor.u32 %v2878_v40, %v2875_v24  ;;  %v6289_v27 = vld [vmem:[#allocation3 + $0x84] sm:$0xf] }
 0x322   : > { %v3547_v9 = vsel %vm1846_vm12, %v3508_v60, %v6165_v31  ;;  %v3545_v50 = vsel %vm1846_vm12, %v3506_v54, %v6161_v1 }
 0x323   : > { %3326 = vrot.lane.b32.xlu1 %v4515_v41, %s4980_s10  ;;  %3324 = vrot.lane.b32.xlu0 %v4514_v38, %s4980_s10  ;;  %v3464_v41 = vrot.slane %v4904_v11, 5  ;;  %v2938_v38 = vrot.slane %v6209_v4, 5  ;;  %v2941_v4 = vrot.slane %v6227_v53, 5  ;;  %v3579_v15 = vsel %vm1887_vm13, %v3547_v9, %v6178_v33 }
 0x324   : > { %v3577_v56 = vsel %vm1887_vm13, %v3545_v50, %v6180_v30  ;;  %v3513_v33 = vsel %vm1795_vm11, %v4443_v3, %v6173_v63  ;;  %v3549_v30 = vsel %vm1846_vm12, %v3511_v57, %v6159_v21  ;;  %v3610_v39 = vsel %vm1928_vm14, %v3579_v15, %v6205_v20 }
 0x325   : > { %v6230_v23 = vpop.permute.xlu1 %3214  ;;  %v6232_v2 = vpop.permute.xlu0 %3212  ;;  %v2940_v28 = vsel %vm1064_vm7, %v2938_v38, %v2939_v16  ;;  %v2943_v31 = vsel %vm1064_vm7, %v2941_v4, %v2942_v26  ;;  %v3609_v6 = vsel %vm1928_vm14, %v3577_v56, %v6205_v20  ;;  %v3581_v12 = vsel %vm1887_vm13, %v3549_v30, %v6191_v19 }
 0x326   : > { %v3612_v21 = vsel %vm1928_vm14, %v3581_v12, %v6203_v52 }
 0x327   : > { %3418 = vrot.lane.b32.xlu1 %v3391_v43, %s4985_s13  ;;  %3416 = vrot.lane.b32.xlu0 %v3383_v34, %s4985_s13  ;;  %v6256_v43 = vld [vmem:[#allocation3 + $0x70] sm:$0x8]  ;;  %v6258_v34 = vld [vmem:[#allocation3 + $0x74] sm:$0xf] }
 0x328   : > { %v4484_v11 = vcombine.low %v6256_v43, %v6258_v34  ;;  %v6285_v1 = vcombine.low %v6258_v34, %v6247_v17  ;;  %v4922_v43 = vld [vmem:[#allocation3 + $0x8c] ss:$0 sps:$4 sm:$0x11]  }
 0x329   : > { %v3307_v8 = vpop.permute.xlu1 %3306  ;;  %v3305_v36 = vpop.permute.xlu0 %3304 }
 0x32b   : > { %3490 = vrot.lane.b32.xlu1 %v3462_v25, %s4986_s25  ;;  %3488 = vrot.lane.b32.xlu0 %v3460_v14, %s4986_s25  ;;  %v3465_v14 = vsel %vm1064_vm7, %v3463_v18, %v3464_v41  ;;  %v6287_v25 = vld [vmem:[#allocation3 + $0x88] sm:$0xf]  ;;  %v3633_v41 = vsel %vm1959_vm15, %v3609_v6, %v6219_v45  ;;  %v3637_v45 = vsel %vm1959_vm15, %v3612_v21, %v6232_v2 }
 0x32c   : > { %v3665_v20 = vsel %vm2000_vm0, %v3633_v41, %v3305_v36  ;;  %v6313_v19 = vcombine.low %v6289_v27, %v6287_v25  ;;  %v4487_v41 = vcombine.low %v6287_v25, %v6287_v25 }
 0x32d   : > { %v6253_v0 = vpop.permute.xlu1 %3310  ;;  %v3309_v5 = vpop.permute.xlu0 %3308 }
 0x32e   : > { %v3669_v36 = vsel %vm2000_vm0, %v3637_v45, %v3309_v5  ;;  %v3132_v5 = vshll.u32 %v6285_v1, 16  ;;  %v3140_v30 = vshll.u32 %v6313_v19, 16 }
 0x32f   : > { %3492 = vrot.lane.b32.xlu1 %v3463_v18, %s4986_s25  ;;  %2892 = vrot.lane.b32.xlu0 %v2871_v48, %s4984_s22  ;;  %v3635_v18 = vsel %vm1959_vm15, %v3610_v39, %v6217_v49  ;;  %v3551_v49 = vsel %vm1846_vm12, %v3513_v33, %v6171_v7  ;;  %v2700_v33 = vld [vmem:[#allocation3 + $0x80] sm:$0x8] }
 0x330   : > { %v3667_v63 = vsel %vm2000_vm0, %v3635_v18, %v3307_v8  ;;  %v3583_v8 = vsel %vm1887_vm13, %v3551_v49, %v6189_v10  ;;  %v3129_v10 = vshrl.u32 %v6285_v1, 16 }
 0x331   : > { %v3411_v44 = vpop.permute.xlu1 %3410  ;;  %v3409_v35 = vpop.permute.xlu0 %3408  ;;  %v3613_v2 = vsel %vm1928_vm14, %v3583_v8, %v6203_v52  ;;  %v3137_v52 = vshrl.u32 %v6313_v19, 16 }
 0x332   : > { %v3698_v24 = vsel %vm2041_vm1, %v3667_v63, %v3409_v35  ;;  %v3697_v16 = vsel %vm2041_vm1, %v3665_v20, %v3409_v35  ;;  %v3700_v57 = vsel %vm2041_vm1, %v3669_v36, %v3411_v44  ;;  %v3131_v45 = vrot.slane %v3129_v10, 4 }
 0x333   : > { %2894 = vrot.lane.b32.xlu1 %v2879_v61, %s4984_s22  ;;  %3494 = vrot.lane.b32.xlu0 %v3465_v14, %s4986_s25  ;;  %v3206_v10 = vrot.slane %v4922_v43, 5 }
 0x335   : > { %v3475_v48 = vpop.permute.xlu1 %3474  ;;  %v3473_v40 = vpop.permute.xlu0 %3472 }
 0x336   : > { %v3723_v60 = vsel %vm2072_vm2, %v3698_v24, %v3475_v48  ;;  %v3721_v54 = vsel %vm2072_vm2, %v3697_v16, %v3473_v40  ;;  %v3142_v48 = vrot.slane %v3140_v30, 5 }
 0x337   : > { %v3759_v26 = vshrl.u32 %v3723_v60, 16  ;;  %v3762_v7 = vshll.u32 %v3723_v60, 16  ;;  %v3752_v3 = vshrl.u32 %v3721_v54, 16  ;;  %v3755_v14 = vshll.u32 %v3721_v54, 16  ;;  %2970 = vrot.lane.b32.xlu1 %v2940_v28, %s4983_s21  ;;  %2968 = vrot.lane.b32.xlu0 %v2938_v38, %s4983_s21 }
 0x338   : > { %v3639_v28 = vsel %vm1959_vm15, %v3613_v2, %v6230_v23 }
 0x339   : > { %v3761_v61 = vrot.slane %v3759_v26, 3  ;;  %v3764_v9 = vrot.slane %v3762_v7, 4  ;;  %v3754_v50 = vrot.slane %v3752_v3, 3  ;;  %v3757_v15 = vrot.slane %v3755_v14, 4  ;;  %v3477_v56 = vpop.permute.xlu1 %3476  ;;  %v6333_v35 = vpop.permute.xlu0 %2884 }
 0x33a   : > { %v3725_v38 = vsel %vm2072_vm2, %v3700_v57, %v3477_v56  ;;  %v3671_v23 = vsel %vm2000_vm0, %v3639_v28, %v6253_v0  ;;  %v3134_v0 = vrot.slane %v3132_v5, 5  ;;  %v3202_v7 = vrot.slane %v6285_v1, 5  ;;  %v2735_v1 = vld [vmem:[#allocation3 + $0x98] sm:$0xf]  ;;  %v2734_v5 = vld [vmem:[#allocation3 + $0x94] sm:$0xf] }
 0x33b   : > { %v3767_v39 = vshrl.u32 %v3725_v38, 16  ;;  %v3770_v6 = vshll.u32 %v3725_v38, 16  ;;  %2974 = vrot.lane.b32.xlu1 %v2943_v31, %s4983_s21  ;;  %2972 = vrot.lane.b32.xlu0 %v2941_v4, %s4983_s21  ;;  %v3758_v12 = vor.u32 %v3757_v15, %v3754_v50  ;;  %v3765_v18 = vor.u32 %v3764_v9, %v3761_v61  ;;  %v2732_v50 = vld [vmem:[#allocation3 + $0x88] sm:$0xf]  ;;  %v2731_v15 = vld [vmem:[#allocation3 + $0x84] sm:$0xf] }
 0x33c   : > { %v3701_v63 = vsel %vm2041_vm1, %v3671_v23, %v3411_v44  ;;  %v4486_v31 = vcombine.low %v2700_v33, %v6289_v27  ;;  %v3139_v4 = vrot.slane %v3137_v52, 4  ;;  %v4921_v44 = vld [vmem:[#allocation3 + $0x7c] ss:$0 sps:$4 sm:$0x11]   ;;  %v3135_v54 = vor.u32 %v3134_v0, %v3131_v45  ;;  %v2730_v56 = vld [vmem:[#allocation3 + $0x80] sm:$0x8] }
 0x33d   : > { %v6348_v21 = vpop.permute.xlu1 %2886  ;;  %v3479_v20 = vpop.permute.xlu0 %3478  ;;  %v3766_v49 = vsel %vm2113_vm3, %v3758_v12, %v3765_v18  ;;  %v3769_v24 = vrot.slane %v3767_v39, 3  ;;  %v3772_v40 = vrot.slane %v3770_v6, 4  ;;  %v3203_v3 = vrot.slane %v4921_v44, 5  ;;  %v2733_v6 = vld [vmem:[#allocation3 + $0x90] sm:$0x8] }
 0x33e   : > { %v3727_v53 = vsel %vm2072_vm2, %v3701_v63, %v3479_v20  ;;  %4664 = vmatprep.mubr.msk.bf16.mxu1 %vm2307_vm4, %v3766_v49  ;;  %v3205_v57 = vrot.slane %v6313_v19, 5  ;;  %v4526_v28 = vcombine.low %v2731_v15, %v2732_v50  ;;  %v4527_v38 = vcombine.low %v2734_v5, %v2735_v1  ;;  %v4929_v0 = vld [vmem:[#allocation3 + $0x8c] ss:$0 sps:$4 sm:$0x11]  }
 0x33f   : > { %v3774_v25 = vshrl.u32 %v3727_v53, 16  ;;  %v3777_v16 = vshll.u32 %v3727_v53, 16  ;;  %3066 = vrot.lane.b32.xlu1 %v4485_v13, %s4979_s23  ;;  %3064 = vrot.lane.b32.xlu0 %v4484_v11, %s4979_s23  ;;  %v3773_v26 = vor.u32 %v3772_v40, %v3769_v24  ;;  %v3143_v13 = vor.u32 %v3142_v48, %v3139_v4 }
 0x340   : > { %v3204_v2 = vsel %vm1064_vm7, %v3202_v7, %v3203_v3  ;;  %v3207_v33 = vsel %vm1064_vm7, %v3205_v57, %v3206_v10  ;;  %v4517_v30 = vcombine.low %v2732_v50, %v2732_v50  ;;  %v4516_v39 = vcombine.low %v2730_v56, %v2731_v15 }
 0x341   : > { %v3776_v27 = vrot.slane %v3774_v25, 3  ;;  %v3779_v8 = vrot.slane %v3777_v16, 4  ;;  %v6363_v36 = vpop.permute.xlu1 %2954  ;;  %v6365_v60 = vpop.permute.xlu0 %2952  ;;  %v3401_v12 = vshrl.u32 %v4527_v38, 16  ;;  %v3404_v18 = vshll.u32 %v4527_v38, 16 }
 0x342   : > { %v3393_v23 = vshrl.u32 %v4526_v28, 16  ;;  %v4519_v49 = vcombine.low %v2735_v1, %v2735_v1  ;;  %v3466_v44 = vrot.slane %v4526_v28, 5 }
 0x343   : > { %3070 = vrot.lane.b32.xlu1 %v4487_v41, %s4979_s23  ;;  %3068 = vrot.lane.b32.xlu0 %v4486_v31, %s4979_s23  ;;  %v3780_v17 = vor.u32 %v3779_v8, %v3776_v27  ;;  %v3396_v41 = vshll.u32 %v4526_v28, 16  ;;  %v4518_v31 = vcombine.low %v2733_v6, %v2734_v5  ;;  %v3403_v45 = vrot.slane %v3401_v12, 4  ;;  %v4930_v8 = vld [vmem:[#allocation3 + $0x9c] ss:$0 sps:$4 sm:$0x11]  }
 0x344   : > { %v3406_v53 = vrot.slane %v3404_v18, 5  ;;  %v3395_v4 = vrot.slane %v3393_v23, 4  ;;  %v3467_v27 = vrot.slane %v4929_v0, 5  ;;  %v3470_v3 = vrot.slane %v4930_v8, 5 }
 0x345   : > { %v6370_v34 = vpop.permute.xlu1 %2958  ;;  %v6372_v11 = vpop.permute.xlu0 %2956  ;;  %v3781_v14 = vsel %vm2113_vm3, %v3773_v26, %v3780_v17  ;;  %v3398_v48 = vrot.slane %v3396_v41, 5  ;;  %v2652_v17 = vld [vmem:[#allocation3 + $0x20] sm:$0x8] }
 0x346   : > { %4665 = vmatmul.mubr.msk.bf16.vlgmr.msra.gmra.mrb[0].mxu1 %vm2307_vm4, %v3781_v14  ;;  %v3407_v25 = vor.u32 %v3406_v53, %v3403_v45  ;;  %v4444_v10 = vcombine.low %v2652_v17, %v6064_v47 }
 0x347   : > { %3158 = vrot.lane.b32.xlu1 %v3143_v13, %s4982_s20  ;;  %3156 = vrot.lane.b32.xlu0 %v3135_v54, %s4982_s20  ;;  %v3399_v16 = vor.u32 %v3398_v48, %v3395_v4  ;;  %v3468_v13 = vsel %vm1064_vm7, %v3466_v44, %v3467_v27 }
 0x348   : > { %v3516_v28 = vsel %vm1795_vm11, %v4444_v10, %v6333_v35 }
 0x349   : > { %v6380_v61 = vpop.permute.xlu1 %3050  ;;  %v6382_v9 = vpop.permute.xlu0 %3048 }
 0x34b   : > { %3234 = vrot.lane.b32.xlu1 %v3204_v2, %s4981_s17  ;;  %3232 = vrot.lane.b32.xlu0 %v3202_v7, %s4981_s17  ;;  %v3469_v7 = vrot.slane %v4527_v38, 5  ;;  %v2655_v2 = vld [vmem:[#allocation3 + $0x30] sm:$0x8] }
 0x34c   : > { %v4446_v5 = vcombine.low %v2655_v2, %v6079_v37  ;;  %v4447_v37 = vcombine.low %v6081_v32, %v6081_v32 }
 0x34d   : > { %v6387_v52 = vpop.permute.xlu1 %3054  ;;  %v6389_v19 = vpop.permute.xlu0 %3052  ;;  %v3471_v1 = vsel %vm1064_vm7, %v3469_v7, %v3470_v3 }
 0x34e   : > { %v3521_v38 = vsel %vm1795_vm11, %v4446_v5, %v6348_v21 }
 0x34f   : > { %3238 = vrot.lane.b32.xlu1 %v3207_v33, %s4981_s17  ;;  %3236 = vrot.lane.b32.xlu0 %v3205_v57, %s4981_s17  ;;  %v4445_v57 = vcombine.low %v6070_v62, %v6070_v62  ;;  %v3553_v62 = vsel %vm1846_vm12, %v3516_v28, %v6365_v60 }
 0x351   : > { %v6393_v63 = vpop.permute.xlu1 %3150  ;;  %v3149_v20 = vpop.permute.xlu0 %3148  ;;  %v3518_v56 = vsel %vm1795_vm11, %v4445_v57, %v6333_v35  ;;  %v3585_v35 = vsel %vm1887_vm13, %v3553_v62, %v6382_v9 }
 0x352   : > { %v3555_v47 = vsel %vm1846_vm12, %v3518_v56, %v6363_v36  ;;  %v3557_v36 = vsel %vm1846_vm12, %v3521_v38, %v6372_v11  ;;  %v3615_v60 = vsel %vm1928_vm14, %v3585_v35, %v3149_v20 }
 0x353   : > { %3330 = vrot.lane.b32.xlu1 %v4517_v30, %s4980_s10  ;;  %3328 = vrot.lane.b32.xlu0 %v4516_v39, %s4980_s10  ;;  %v3587_v33 = vsel %vm1887_vm13, %v3555_v47, %v6380_v61  ;;  %v3589_v32 = vsel %vm1887_vm13, %v3557_v36, %v6389_v19  ;;  %v3523_v61 = vsel %vm1795_vm11, %v4447_v37, %v6348_v21 }
 0x354   : > { %v3616_v6 = vsel %vm1928_vm14, %v3587_v33, %v3149_v20  ;;  %v3618_v9 = vsel %vm1928_vm14, %v3589_v32, %v6393_v63  ;;  %v3559_v41 = vsel %vm1846_vm12, %v3523_v61, %v6370_v34 }
 0x355   : > { %v3219_v24 = vpop.permute.xlu1 %3218  ;;  %v3217_v40 = vpop.permute.xlu0 %3216  ;;  %v3591_v21 = vsel %vm1887_vm13, %v3559_v41, %v6387_v52 }
 0x356   : > { %v3643_v12 = vsel %vm1959_vm15, %v3616_v6, %v3219_v24  ;;  %v3641_v18 = vsel %vm1959_vm15, %v3615_v60, %v3217_v40 }
 0x357   : > { %3334 = vrot.lane.b32.xlu1 %v4519_v49, %s4980_s10  ;;  %3332 = vrot.lane.b32.xlu0 %v4518_v31, %s4980_s10 }
 0x359   : > { %v6399_v54 = vpop.permute.xlu1 %3222  ;;  %v3221_v26 = vpop.permute.xlu0 %3220 }
 0x35a   : > { %v3645_v20 = vsel %vm1959_vm15, %v3618_v9, %v3221_v26 }
 0x35b   : > { %3422 = vrot.lane.b32.xlu1 %v3407_v25, %s4985_s13  ;;  %3420 = vrot.lane.b32.xlu0 %v3399_v16, %s4985_s13  ;;  %v3619_v25 = vsel %vm1928_vm14, %v3591_v21, %v6393_v63 }
 0x35d   : > { %v3315_v43 = vpop.permute.xlu1 %3314  ;;  %v3313_v14 = vpop.permute.xlu0 %3312 }
 0x35e   : > { %v3675_v23 = vsel %vm2000_vm0, %v3643_v12, %v3315_v43  ;;  %v3673_v11 = vsel %vm2000_vm0, %v3641_v18, %v3313_v14 }
 0x35f   : > { %3498 = vrot.lane.b32.xlu1 %v3468_v13, %s4986_s25  ;;  %3496 = vrot.lane.b32.xlu0 %v3466_v44, %s4986_s25  ;;  %v3647_v13 = vsel %vm1959_vm15, %v3619_v25, %v6399_v54  ;;  %v4451_v25 = vcombine.low %v6137_v51, %v6137_v51 }
 0x361   : > { %v3319_v50 = vpop.permute.xlu1 %3318  ;;  %v3317_v15 = vpop.permute.xlu0 %3316 }
 0x362   : > { %v3677_v53 = vsel %vm2000_vm0, %v3645_v20, %v3317_v15  ;;  %v3679_v57 = vsel %vm2000_vm0, %v3647_v13, %v3319_v50  ;;  %v2658_v20 = vld [vmem:[#allocation3 + $0x40] sm:$0x8] }
 0x363   : > { %3502 = vrot.lane.b32.xlu1 %v3471_v1, %s4986_s25  ;;  %3500 = vrot.lane.b32.xlu0 %v3469_v7, %s4986_s25  ;;  %v4448_v21 = vcombine.low %v2658_v20, %v6125_v42 }
 0x365   : > { %v3415_v30 = vpop.permute.xlu1 %3414  ;;  %v3413_v39 = vpop.permute.xlu0 %3412 }
 0x366   : > { %v3704_v49 = vsel %vm2041_vm1, %v3675_v23, %v3413_v39  ;;  %v3703_v31 = vsel %vm2041_vm1, %v3673_v11, %v3413_v39  ;;  %v3706_v16 = vsel %vm2041_vm1, %v3677_v53, %v3415_v30  ;;  %v3707_v10 = vsel %vm2041_vm1, %v3679_v57, %v3415_v30 }
 0x369   : > { %v3483_v19 = vpop.permute.xlu1 %3482  ;;  %v3481_v45 = vpop.permute.xlu0 %3480 }
 0x36a   : > { %v3731_v4 = vsel %vm2072_vm2, %v3704_v49, %v3483_v19  ;;  %v3729_v48 = vsel %vm2072_vm2, %v3703_v31, %v3481_v45  ;;  %v2661_v31 = vld [vmem:[#allocation3 + $0x50] sm:$0x8]  ;;  %v4449_v45 = vcombine.low %v6129_v59, %v6129_v59 }
 0x36b   : > { %v3789_v0 = vshrl.u32 %v3731_v4, 16  ;;  %v3792_v24 = vshll.u32 %v3731_v4, 16  ;;  %v3782_v34 = vshrl.u32 %v3729_v48, 16  ;;  %v3785_v40 = vshll.u32 %v3729_v48, 16 }
 0x36c   : > { %v4450_v53 = vcombine.low %v2661_v31, %v6135_v58 }
 0x36d   : > { %v3791_v44 = vrot.slane %v3789_v0, 3  ;;  %v3794_v27 = vrot.slane %v3792_v24, 4  ;;  %v3784_v8 = vrot.slane %v3782_v34, 3  ;;  %v3787_v26 = vrot.slane %v3785_v40, 4  ;;  %v3485_v52 = vpop.permute.xlu1 %3484  ;;  %v2889_v17 = vpop.permute.xlu0 %2888 }
 0x36e   : > { %v3733_v7 = vsel %vm2072_vm2, %v3706_v16, %v3485_v52  ;;  %v3528_v0 = vsel %vm1795_vm11, %v4449_v45, %v2889_v17  ;;  %v3526_v24 = vsel %vm1795_vm11, %v4448_v21, %v2889_v17 }
 0x36f   : > { %v3797_v3 = vshrl.u32 %v3733_v7, 16  ;;  %v3800_v43 = vshll.u32 %v3733_v7, 16  ;;  %v3788_v14 = vor.u32 %v3787_v26, %v3784_v8  ;;  %v3795_v2 = vor.u32 %v3794_v27, %v3791_v44 }
 0x371   : > { %v2891_v63 = vpop.permute.xlu1 %2890  ;;  %v3487_v1 = vpop.permute.xlu0 %3486  ;;  %v3796_v5 = vsel %vm2113_vm3, %v3788_v14, %v3795_v2  ;;  %v3799_v56 = vrot.slane %v3797_v3, 3  ;;  %v3802_v54 = vrot.slane %v3800_v43, 4 }
 0x372   : > { %v3735_v15 = vsel %vm2072_vm2, %v3707_v10, %v3487_v1  ;;  %4668 = vmatprep.mubr.msk.bf16.mxu1 %vm2307_vm4, %v3796_v5  ;;  %v3531_v16 = vsel %vm1795_vm11, %v4450_v53, %v2891_v63  ;;  %v3533_v13 = vsel %vm1795_vm11, %v4451_v25, %v2891_v63 }
 0x373   : > { %v3804_v28 = vshrl.u32 %v3735_v15, 16  ;;  %v3807_v47 = vshll.u32 %v3735_v15, 16  ;;  %v3803_v35 = vor.u32 %v3802_v54, %v3799_v56 }
 0x375   : > { %v3806_v62 = vrot.slane %v3804_v28, 3  ;;  %v3809_v37 = vrot.slane %v3807_v47, 4  ;;  %v2963_v38 = vpop.permute.xlu1 %2962  ;;  %v2961_v33 = vpop.permute.xlu0 %2960 }
 0x376   : > { %v3563_v34 = vsel %vm1846_vm12, %v3528_v0, %v2963_v38  ;;  %v3561_v40 = vsel %vm1846_vm12, %v3526_v24, %v2961_v33 }
 0x377   : > { %v3810_v50 = vor.u32 %v3809_v37, %v3806_v62 }
 0x379   : > { %v2967_v39 = vpop.permute.xlu1 %2966  ;;  %v2965_v36 = vpop.permute.xlu0 %2964  ;;  %v3811_v30 = vsel %vm2113_vm3, %v3803_v35, %v3810_v50 }
 0x37a   : > { %4669 = vmatmul.mubr.msk.bf16.gmra.mrb[4].mxu1 %vm2307_vm4, %v3811_v30  ;;  %v3565_v27 = vsel %vm1846_vm12, %v3531_v16, %v2965_v36  ;;  %v3567_v14 = vsel %vm1846_vm12, %v3533_v13, %v2967_v39 }
 0x37d   : > { %v3059_v6 = vpop.permute.xlu1 %3058  ;;  %v3057_v60 = vpop.permute.xlu0 %3056 }
 0x37e   : > { %v3595_v59 = vsel %vm1887_vm13, %v3563_v34, %v3059_v6  ;;  %v3593_v42 = vsel %vm1887_vm13, %v3561_v40, %v3057_v60 }
 0x381   : > { %v3063_v32 = vpop.permute.xlu1 %3062  ;;  %v3061_v12 = vpop.permute.xlu0 %3060 }
 0x382   : > { %v3597_v52 = vsel %vm1887_vm13, %v3565_v27, %v3061_v12  ;;  %v3599_v15 = vsel %vm1887_vm13, %v3567_v14, %v3063_v32  ;;  %v2667_v14 = vld [vmem:[#allocation3 + $0x70] sm:$0x8] }
 0x385   : > { %v3155_v18 = vpop.permute.xlu1 %3154  ;;  %v3153_v61 = vpop.permute.xlu0 %3152 }
 0x386   : > { %v3622_v8 = vsel %vm1928_vm14, %v3595_v59, %v3153_v61  ;;  %v3621_v26 = vsel %vm1928_vm14, %v3593_v42, %v3153_v61  ;;  %v3624_v7 = vsel %vm1928_vm14, %v3597_v52, %v3155_v18  ;;  %v3625_v38 = vsel %vm1928_vm14, %v3599_v15, %v3155_v18 }
 0x389   : > { %v3227_v9 = vpop.permute.xlu1 %3226  ;;  %v3225_v23 = vpop.permute.xlu0 %3224 }
 0x38a   : > { %v3651_v17 = vsel %vm1959_vm15, %v3622_v8, %v3227_v9  ;;  %v3649_v51 = vsel %vm1959_vm15, %v3621_v26, %v3225_v23 }
 0x38d   : > { %v3231_v11 = vpop.permute.xlu1 %3230  ;;  %v3229_v41 = vpop.permute.xlu0 %3228 }
 0x38e   : > { %v3653_v2 = vsel %vm1959_vm15, %v3624_v7, %v3229_v41  ;;  %v3655_v60 = vsel %vm1959_vm15, %v3625_v38, %v3231_v11  ;;  %v2664_v7 = vld [vmem:[#allocation3 + $0x60] sm:$0x8] }
 0x391   : > { %v3323_v19 = vpop.permute.xlu1 %3322  ;;  %v3321_v49 = vpop.permute.xlu0 %3320 }
 0x392   : > { %v3683_v3 = vsel %vm2000_vm0, %v3651_v17, %v3323_v19  ;;  %v3681_v43 = vsel %vm2000_vm0, %v3649_v51, %v3321_v49 }
 0x395   : > { %v3327_v4 = vpop.permute.xlu1 %3326  ;;  %v3325_v48 = vpop.permute.xlu0 %3324 }
 0x396   : > { %v3685_v63 = vsel %vm2000_vm0, %v3653_v2, %v3325_v48  ;;  %v3687_v41 = vsel %vm2000_vm0, %v3655_v60, %v3327_v4  ;;  %v4453_v2 = vcombine.low %v6201_v22, %v6201_v22 }
 0x399   : > { %v3419_v58 = vpop.permute.xlu1 %3418  ;;  %v3417_v44 = vpop.permute.xlu0 %3416 }
 0x39a   : > { %v3710_v10 = vsel %vm2041_vm1, %v3683_v3, %v3417_v44  ;;  %v3709_v1 = vsel %vm2041_vm1, %v3681_v43, %v3417_v44  ;;  %v3712_v33 = vsel %vm2041_vm1, %v3685_v63, %v3419_v58  ;;  %v3713_v18 = vsel %vm2041_vm1, %v3687_v41, %v3419_v58 }
 0x39d   : > { %v3491_v57 = vpop.permute.xlu1 %3490  ;;  %v3489_v5 = vpop.permute.xlu0 %3488 }
 0x39e   : > { %v3739_v56 = vsel %vm2072_vm2, %v3710_v10, %v3491_v57  ;;  %v3737_v54 = vsel %vm2072_vm2, %v3709_v1, %v3489_v5  ;;  %v4452_v57 = vcombine.low %v2664_v7, %v6193_v29  ;;  %v4455_v10 = vcombine.low %v6215_v55, %v6215_v55 }
 0x39f   : > { %v3819_v28 = vshrl.u32 %v3739_v56, 16  ;;  %v3822_v47 = vshll.u32 %v3739_v56, 16  ;;  %v3812_v62 = vshrl.u32 %v3737_v54, 16  ;;  %v3815_v37 = vshll.u32 %v3737_v54, 16 }
 0x3a0   : > { %v4454_v1 = vcombine.low %v2667_v14, %v6213_v46 }
 0x3a1   : > { %v3821_v35 = vrot.slane %v3819_v28, 3  ;;  %v3824_v50 = vrot.slane %v3822_v47, 4  ;;  %v3814_v39 = vrot.slane %v3812_v62, 3  ;;  %v3817_v36 = vrot.slane %v3815_v37, 4  ;;  %v3493_v30 = vpop.permute.xlu1 %3492  ;;  %v2893_v6 = vpop.permute.xlu0 %2892 }
 0x3a2   : > { %v3741_v32 = vsel %vm2072_vm2, %v3712_v33, %v3493_v30  ;;  %v3538_v63 = vsel %vm1795_vm11, %v4453_v2, %v2893_v6  ;;  %v3536_v56 = vsel %vm1795_vm11, %v4452_v57, %v2893_v6 }
 0x3a3   : > { %v3827_v12 = vshrl.u32 %v3741_v32, 16  ;;  %v3830_v61 = vshll.u32 %v3741_v32, 16  ;;  %v3818_v9 = vor.u32 %v3817_v36, %v3814_v39  ;;  %v3825_v23 = vor.u32 %v3824_v50, %v3821_v35 }
 0x3a5   : > { %v2895_v20 = vpop.permute.xlu1 %2894  ;;  %v3495_v19 = vpop.permute.xlu0 %3494  ;;  %v3826_v49 = vsel %vm2113_vm3, %v3818_v9, %v3825_v23  ;;  %v3829_v45 = vrot.slane %v3827_v12, 3  ;;  %v3832_v11 = vrot.slane %v3830_v61, 4 }
 0x3a6   : > { %v3743_v31 = vsel %vm2072_vm2, %v3713_v18, %v3495_v19  ;;  %4672 = vmatprep.mubr.msk.bf16.mxu1 %vm2307_vm4, %v3826_v49  ;;  %v3543_v47 = vsel %vm1795_vm11, %v4455_v10, %v2895_v20  ;;  %v3541_v22 = vsel %vm1795_vm11, %v4454_v1, %v2895_v20  ;;  %v6553_v10 = vld [vmem:[%s6640_s6] ss:$0 sm:$0xff] }
 0x3a7   : > { %v3834_v21 = vshrl.u32 %v3743_v31, 16  ;;  %v3837_v53 = vshll.u32 %v3743_v31, 16  ;;  %v3833_v40 = vor.u32 %v3832_v11, %v3829_v45 }
 0x3a9   : > { %v3836_v48 = vrot.slane %v3834_v21, 3  ;;  %v3839_v0 = vrot.slane %v3837_v53, 4  ;;  %v2971_v24 = vpop.permute.xlu1 %2970  ;;  %v2969_v34 = vpop.permute.xlu0 %2968 }
 0x3aa   : > { %v3571_v54 = vsel %vm1846_vm12, %v3538_v63, %v2971_v24  ;;  %v3569_v28 = vsel %vm1846_vm12, %v3536_v56, %v2969_v34  ;;  %v4039_v56 = vld [vmem:[%s5092_s15] sm:$0xff] }
 0x3ab   : > { %v3840_v4 = vor.u32 %v3839_v0, %v3836_v48 }
 0x3ad   : > { %v2975_v25 = vpop.permute.xlu1 %2974  ;;  %v2973_v16 = vpop.permute.xlu0 %2972  ;;  %v3841_v59 = vsel %vm2113_vm3, %v3833_v40, %v3840_v4 }
 0x3ae   : > { %4673 = vmatmul.mubr.msk.bf16.gmra.mrb[8].mxu1 %vm2307_vm4, %v3841_v59  ;;  %v3575_v37 = vsel %vm1846_vm12, %v3543_v47, %v2975_v25  ;;  %v3573_v38 = vsel %vm1846_vm12, %v3541_v22, %v2973_v16  ;;  %v4042_v47 = vld [vmem:[%s5092_s15 + $0x18] sm:$0xff] }
 0x3b1   : > { %v3067_v42 = vpop.permute.xlu1 %3066  ;;  %v3065_v58 = vpop.permute.xlu0 %3064 }
 0x3b2   : > { %v3603_v29 = vsel %vm1887_vm13, %v3571_v54, %v3067_v42  ;;  %v3601_v55 = vsel %vm1887_vm13, %v3569_v28, %v3065_v58 }
 0x3b5   : > { %v3071_v44 = vpop.permute.xlu1 %3070  ;;  %v3069_v27 = vpop.permute.xlu0 %3068 }
 0x3b6   : > { %v3607_v50 = vsel %vm1887_vm13, %v3575_v37, %v3071_v44  ;;  %v3605_v39 = vsel %vm1887_vm13, %v3573_v38, %v3069_v27 }
 0x3b9   : > { %v3159_v8 = vpop.permute.xlu1 %3158  ;;  %v3157_v26 = vpop.permute.xlu0 %3156 }
 0x3ba   : > { %v3628_v33 = vsel %vm1928_vm14, %v3603_v29, %v3157_v26  ;;  %v3627_v35 = vsel %vm1928_vm14, %v3601_v55, %v3157_v26  ;;  %v3631_v6 = vsel %vm1928_vm14, %v3607_v50, %v3159_v8  ;;  %v3630_v60 = vsel %vm1928_vm14, %v3605_v39, %v3159_v8  ;;  %v4045_v50 = vld [vmem:[%s5092_s15 + $0x30] sm:$0xff] }
 0x3bd   : > { %v3235_v52 = vpop.permute.xlu1 %3234  ;;  %v3233_v17 = vpop.permute.xlu0 %3232 }
 0x3be   : > { %v3659_v36 = vsel %vm1959_vm15, %v3628_v33, %v3235_v52  ;;  %v3657_v30 = vsel %vm1959_vm15, %v3627_v35, %v3233_v17 }
 0x3c1   : > { %v3239_v51 = vpop.permute.xlu1 %3238  ;;  %v3237_v13 = vpop.permute.xlu0 %3236 }
 0x3c2   : > { %v3663_v61 = vsel %vm1959_vm15, %v3631_v6, %v3239_v51  ;;  %v3661_v9 = vsel %vm1959_vm15, %v3630_v60, %v3237_v13 }
 0x3c5   : > { %v3331_v3 = vpop.permute.xlu1 %3330  ;;  %v3329_v43 = vpop.permute.xlu0 %3328 }
 0x3c6   : > { %v3691_v32 = vsel %vm2000_vm0, %v3659_v36, %v3331_v3  ;;  %v3689_v12 = vsel %vm2000_vm0, %v3657_v30, %v3329_v43  ;;  %v4043_v30 = vld [vmem:[%s5092_s15 + $0x20] sm:$0xff] }
 0x3c9   : > { %v3335_v5 = vpop.permute.xlu1 %3334  ;;  %v3333_v15 = vpop.permute.xlu0 %3332 }
 0x3ca   : > { %v3695_v19 = vsel %vm2000_vm0, %v3663_v61, %v3335_v5  ;;  %v3693_v49 = vsel %vm2000_vm0, %v3661_v9, %v3333_v15  ;;  %v4041_v5 = vld [vmem:[%s5092_s15 + $0x10] sm:$0xff] }
 0x3cd   : > { %v3423_v62 = vpop.permute.xlu1 %3422  ;;  %v3421_v46 = vpop.permute.xlu0 %3420 }
 0x3ce   : > { %v3716_v41 = vsel %vm2041_vm1, %v3691_v32, %v3421_v46  ;;  %v3715_v20 = vsel %vm2041_vm1, %v3689_v12, %v3421_v46  ;;  %v3719_v0 = vsel %vm2041_vm1, %v3695_v19, %v3423_v62  ;;  %v3718_v24 = vsel %vm2041_vm1, %v3693_v49, %v3423_v62  ;;  %v4040_v62 = vld [vmem:[%s5092_s15 + $0x8] sm:$0xff]  ;;  %v4046_v32 = vld [vmem:[%s5092_s15 + $0x38] sm:$0xff] }
 0x3d1   : > { %v3499_v23 = vpop.permute.xlu1 %3498  ;;  %v3497_v18 = vpop.permute.xlu0 %3496 }
 0x3d2   : > { %v3747_v31 = vsel %vm2072_vm2, %v3716_v41, %v3499_v23  ;;  %v3745_v45 = vsel %vm2072_vm2, %v3715_v20, %v3497_v18  ;;  %v4044_v23 = vld [vmem:[%s5092_s15 + $0x28] sm:$0xff] }
 0x3d3   : > { %v3849_v11 = vshrl.u32 %v3747_v31, 16  ;;  %v3852_v21 = vshll.u32 %v3747_v31, 16  ;;  %v3842_v53 = vshrl.u32 %v3745_v45, 16  ;;  %v3845_v48 = vshll.u32 %v3745_v45, 16  ;;  %v4049_v31 = vld [vmem:[%s5092_s15 + $0x50] sm:$0xff] }
 0x3d5   : > { %v3851_v34 = vrot.slane %v3849_v11, 3  ;;  %v3854_v40 = vrot.slane %v3852_v21, 4  ;;  %v3844_v4 = vrot.slane %v3842_v53, 3  ;;  %v3847_v25 = vrot.slane %v3845_v48, 4  ;;  %v3503_v16 = vpop.permute.xlu1 %3502  ;;  %v3501_v59 = vpop.permute.xlu0 %3500  ;;  %v4047_v21 = vld [vmem:[%s5092_s15 + $0x40] sm:$0xff] }
 0x3d6   : > { %v3751_v42 = vsel %vm2072_vm2, %v3719_v0, %v3503_v16  ;;  %v3749_v58 = vsel %vm2072_vm2, %v3718_v24, %v3501_v59  ;;  %v4050_v0 = vld [vmem:[%s5092_s15 + $0x58] sm:$0xff] }
 0x3d7   : > { %v3864_v44 = vshrl.u32 %v3751_v42, 16  ;;  %v3867_v27 = vshll.u32 %v3751_v42, 16  ;;  %v3857_v8 = vshrl.u32 %v3749_v58, 16  ;;  %v3860_v26 = vshll.u32 %v3749_v58, 16 }
 0x3d8   : > { %v3848_v52 = vor.u32 %v3847_v25, %v3844_v4  ;;  %v3855_v17 = vor.u32 %v3854_v40, %v3851_v34  ;;  %v4048_v4 = vld [vmem:[%s5092_s15 + $0x48] sm:$0xff] }
 0x3d9   : > { %v3866_v51 = vrot.slane %v3864_v44, 3  ;;  %v3869_v13 = vrot.slane %v3867_v27, 4  ;;  %v3859_v7 = vrot.slane %v3857_v8, 3  ;;  %v3862_v3 = vrot.slane %v3860_v26, 4  ;;  %v4053_v44 = vld [vmem:[%s5092_s15 + $0x70] sm:$0xff]  ;;  %v4051_v26 = vld [vmem:[%s5092_s15 + $0x60] sm:$0xff] }
 0x3da   : > { %v3856_v43 = vsel %vm2113_vm3, %v3848_v52, %v3855_v17 }
 0x3db   : > { %4676 = vmatprep.mubr.msk.bf16.mxu1 %vm2307_vm4, %v3856_v43  ;;  %v3863_v14 = vor.u32 %v3862_v3, %v3859_v7  ;;  %v3870_v2 = vor.u32 %v3869_v13, %v3866_v51  ;;  %v4054_v51 = vld [vmem:[%s5092_s15 + $0x78] sm:$0xff]  ;;  %v4052_v43 = vld [vmem:[%s5092_s15 + $0x68] sm:$0xff] }
 0x3dd   : > { %v3871_v57 = vsel %vm2113_vm3, %v3863_v14, %v3870_v2 }
 0x3de   : > { %4677 = vmatmul.mubr.msk.bf16.gmra.mrb[12].mxu1 %vm2307_vm4, %v3871_v57 }
 0x419   : > { %v4666_v1 = vpop.f32.mrb[0].mxu1 }
 0x41a   : > { %v3985_v15 = vadd.f32 %v4666_v1, %v6553_v10  ;;  %v3976_v63 = vpop.f32.mrb[1].mxu1 }
 0x41b   : > { %v3977_v54 = vadd.f32 %v6553_v10, %v3976_v63  ;;  %v4667_v28 = vpop.f32.mrb[2].mxu1 }
 0x41c   : > { %v4057_v22 = vadd.f32 %v4041_v5, %v3985_v15  ;;  %v3988_v29 = vadd.f32 %v4667_v28, %v6553_v10  ;;  %v3979_v55 = vpop.f32.mrb[3].mxu1 }
 0x41d   : > { %v4055_v46 = vadd.f32 %v4039_v56, %v3977_v54  ;;  %v3980_v37 = vadd.f32 %v6553_v10, %v3979_v55 }
 0x41e   : > { %4073 = vst.msk [vmem:[%s5097_s18 + $0x10] sm:$0xff] %vm1795_vm11, %v4057_v22  ;;  %v4058_v38 = vadd.f32 %v4042_v47, %v3988_v29 }
 0x41f   : > { %4071 = vst.msk [vmem:[%s5097_s18] sm:$0xff] %vm1795_vm11, %v4055_v46  ;;  %v4056_v33 = vadd.f32 %v4040_v62, %v3980_v37 }
 0x420   : > { %4074 = vst.msk [vmem:[%s5097_s18 + $0x18] sm:$0xff] %vm1795_vm11, %v4058_v38 }
 0x421   : > { %4072 = vst.msk [vmem:[%s5097_s18 + $0x8] sm:$0xff] %vm1795_vm11, %v4056_v33 }
 0x44d   : > { %v4670_v35 = vpop.f32.mrb[4].mxu1 }
 0x44e   : > { %v4001_v39 = vadd.f32 %v4670_v35, %v6553_v10  ;;  %v3992_v36 = vpop.f32.mrb[5].mxu1 }
 0x44f   : > { %v3993_v6 = vadd.f32 %v6553_v10, %v3992_v36  ;;  %v4671_v60 = vpop.f32.mrb[6].mxu1 }
 0x450   : > { %v4061_v12 = vadd.f32 %v4045_v50, %v4001_v39  ;;  %v4004_v61 = vadd.f32 %v4671_v60, %v6553_v10  ;;  %v3995_v9 = vpop.f32.mrb[7].mxu1 }
 0x451   : > { %v4059_v41 = vadd.f32 %v4043_v30, %v3993_v6  ;;  %v3996_v20 = vadd.f32 %v6553_v10, %v3995_v9 }
 0x452   : > { %4077 = vst.msk [vmem:[%s5097_s18 + $0x30] sm:$0xff] %vm1795_vm11, %v4061_v12  ;;  %v4062_v18 = vadd.f32 %v4046_v32, %v4004_v61 }
 0x453   : > { %4075 = vst.msk [vmem:[%s5097_s18 + $0x20] sm:$0xff] %vm1795_vm11, %v4059_v41  ;;  %v4060_v19 = vadd.f32 %v4044_v23, %v3996_v20 }
 0x454   : > { %4078 = vst.msk [vmem:[%s5097_s18 + $0x38] sm:$0xff] %vm1795_vm11, %v4062_v18 }
 0x455   : > { %4076 = vst.msk [vmem:[%s5097_s18 + $0x28] sm:$0xff] %vm1795_vm11, %v4060_v19 }
 0x481   : > { %v4674_v49 = vpop.f32.mrb[8].mxu1 }
 0x482   : > { %v4017_v45 = vadd.f32 %v4674_v49, %v6553_v10  ;;  %v4008_v11 = vpop.f32.mrb[9].mxu1 }
 0x483   : > { %v4009_v53 = vadd.f32 %v6553_v10, %v4008_v11  ;;  %v4675_v48 = vpop.f32.mrb[10].mxu1 }
 0x484   : > { %v4065_v24 = vadd.f32 %v4049_v31, %v4017_v45  ;;  %v4020_v34 = vadd.f32 %v4675_v48, %v6553_v10  ;;  %v4011_v40 = vpop.f32.mrb[11].mxu1 }
 0x485   : > { %v4063_v25 = vadd.f32 %v4047_v21, %v4009_v53  ;;  %v4012_v16 = vadd.f32 %v6553_v10, %v4011_v40 }
 0x486   : > { %4081 = vst.msk [vmem:[%s5097_s18 + $0x50] sm:$0xff] %vm1795_vm11, %v4065_v24  ;;  %v4066_v59 = vadd.f32 %v4050_v0, %v4020_v34 }
 0x487   : > { %4079 = vst.msk [vmem:[%s5097_s18 + $0x40] sm:$0xff] %vm1795_vm11, %v4063_v25  ;;  %v4064_v42 = vadd.f32 %v4048_v4, %v4012_v16 }
 0x488   : > { %4082 = vst.msk [vmem:[%s5097_s18 + $0x58] sm:$0xff] %vm1795_vm11, %v4066_v59 }
 0x489   : > { %4080 = vst.msk [vmem:[%s5097_s18 + $0x48] sm:$0xff] %vm1795_vm11, %v4064_v42 }
 0x4b1   : > { %v4678_v58 = vpop.f32.mrb[12].mxu1 }
 0x4b2   : > { %v4033_v27 = vadd.f32 %v4678_v58, %v6553_v10  ;;  %v4024_v8 = vpop.f32.mrb[13].mxu1 }
 0x4b3   : > { %v4025_v52 = vadd.f32 %v6553_v10, %v4024_v8  ;;  %v4679_v17 = vpop.f32.mrb[14].mxu1 }
 0x4b4   : > { %v4069_v13 = vadd.f32 %v4053_v44, %v4033_v27  ;;  %v4036_v7 = vadd.f32 %v4679_v17, %v6553_v10  ;;  %v4027_v3 = vpop.f32.mrb[15].mxu1 }
 0x4b5   : > { %v4067_v14 = vadd.f32 %v4051_v26, %v4025_v52  ;;  %v4028_v2 = vadd.f32 %v6553_v10, %v4027_v3 }
 0x4b6   : > { %4085 = vst.msk [vmem:[%s5097_s18 + $0x70] sm:$0xff] %vm1795_vm11, %v4069_v13  ;;  %v4070_v57 = vadd.f32 %v4054_v51, %v4036_v7 }
 0x4b7   : > { %4083 = vst.msk [vmem:[%s5097_s18 + $0x60] sm:$0xff] %vm1795_vm11, %v4067_v14  ;;  %v4068_v1 = vadd.f32 %v4052_v43, %v4028_v2 }
 0x4b8   : > { %4086 = vst.msk [vmem:[%s5097_s18 + $0x78] sm:$0xff] %vm1795_vm11, %v4070_v57 }
 0x4b9   : > { %4084 = vst.msk [vmem:[%s5097_s18 + $0x68] sm:$0xff] %vm1795_vm11, %v4068_v1 }
 0x4ba PF: > { %s17_s28 = sadd.s32 1, %s4977_s28   ;;  %s6651_s24 = smov %s4969_s26 }
 0x4bb   : > { %p14_p1 = scmp.ge.s32.totalorder %s17_s28, 6   ;;  %s6652_s25 = smov %s4973_s27 }
 0x4bc   : > { %s6653_s26 = smov %s6656_s29  ;;  %s6654_s27 = smov %s6660_s30 }
 0x4bd   :  { %16 = sbr.rel (!%p14_p1) target bundleno = 3 (0x3), region = 98 }

</bundles_post_ra>
